<compile_context>
chip_gen: v7x
topology: tpu7x:2x2x1
jax: 0.10.0
libtpu: 0.0.40
codegen_flags: <defaults>
</compile_context>

<pallas_src>
import functools

import jax
import jax.numpy as jnp
from jax import lax
from jax.experimental import pallas as pl
from jax.experimental.pallas import tpu as pltpu  # noqa: F401  (no TPU-specific params needed at these sizes)


# ----------------------------- in-kernel helpers ------------------------------

def _layernorm(x, g, b, eps=1e-5):
    mean = jnp.mean(x, axis=-1, keepdims=True)
    var = jnp.mean((x - mean) ** 2, axis=-1, keepdims=True)
    return (x - mean) * lax.rsqrt(var + eps) * g + b


def _run_lstm_direction(g_in, w_hh, T, R, H, reverse):
    """One LSTM direction with the input projection already hoisted.

    g_in: (T*R, 4H) = x @ W_ih + b, rows ordered t*R + r (PyTorch gate order i,f,g,o).
    w_hh: (H, 4H).  Returns a list of T hidden states (each (R, H)) in POSITION order.
    The reverse direction iterates positions backwards (no data reversal).
    One fused (R,H) @ (H,4H) matmul per step; the first step skips it (h0 == 0).
    """
    h = jnp.zeros((R, H), jnp.float32)
    c = jnp.zeros((R, H), jnp.float32)
    hs = [None] * T
    order = range(T - 1, -1, -1) if reverse else range(T)
    for idx, t in enumerate(order):                   # short static loop (T <= 8)
        gates = g_in[t * R:(t + 1) * R, :]
        if idx > 0:
            gates = gates + jnp.dot(h, w_hh, preferred_element_type=jnp.float32)
        i = jax.nn.sigmoid(gates[:, 0 * H:1 * H])
        f = jax.nn.sigmoid(gates[:, 1 * H:2 * H])
        g = jnp.tanh(gates[:, 2 * H:3 * H])
        o = jax.nn.sigmoid(gates[:, 3 * H:4 * H])
        c = (f * c + i * g) if idx > 0 else (i * g)   # c0 == 0
        h = o * jnp.tanh(c)
        hs[t] = h
    return hs


# ------------------------------- fused kernel ---------------------------------

def _nernet_kernel(ce_ref, we_ref, lnc_g_ref, lnc_b_ref,
                   c_wih_ref, c_b_ref, cf_whh_ref,
                   m_ww_ref, m_wcf_ref, m_wcb_ref, m_b_ref,
                   mf_whh_ref, mb_whh_ref,
                   fc1_wf_ref, fc1_wb_ref, fc1_b_ref, ln1_g_ref, ln1_b_ref,
                   clf_w_ref, clf_b_ref,
                   out_ref, *, S, B, Wc, Hc, Hm):
    f32 = jnp.float32
    N = S * B                              # number of tokens, rows ordered s*B + b

    # ---- char-embedding LayerNorm (fused prologue) ---------------------------
    xc = _layernorm(ce_ref[...], lnc_g_ref[...], lnc_b_ref[...])      # (Wc*N, Dc)

    # ---- char BiLSTM: both directions' input projections in ONE matmul -------
    g_c = jnp.dot(xc, c_wih_ref[...], preferred_element_type=f32) + c_b_ref[...]  # (Wc*N, 8Hc)
    g_cf = g_c[:, :4 * Hc]                                            # fwd gates
    hs_cf = _run_lstm_direction(g_cf, cf_whh_ref[...], Wc, N, Hc, reverse=False)
    h_char_f = hs_cf[Wc - 1]                                          # (N, Hc)

    # Only char position Wc-1 of the backward direction is consumed downstream
    # (== the first backward step from a zero state), so compute exactly one step.
    g_cb = g_c[(Wc - 1) * N:, 4 * Hc:]                                # (N, 4Hc)
    ig = jax.nn.sigmoid(g_cb[:, 0 * Hc:1 * Hc])
    gg = jnp.tanh(g_cb[:, 2 * Hc:3 * Hc])
    og = jax.nn.sigmoid(g_cb[:, 3 * Hc:4 * Hc])
    h_char_b = og * jnp.tanh(ig * gg)      # c_prev = 0 -> forget gate irrelevant

    # ---- main BiLSTM: split-input, direction-merged projection (3 matmuls) ---
    g_m = (jnp.dot(we_ref[...], m_ww_ref[...], preferred_element_type=f32)
           + jnp.dot(h_char_f, m_wcf_ref[...], preferred_element_type=f32)
           + jnp.dot(h_char_b, m_wcb_ref[...], preferred_element_type=f32)
           + m_b_ref[...])                                            # (N, 8Hm)
    g_mf = g_m[:, :4 * Hm]                                            # 128-lane aligned
    g_mb = g_m[:, 4 * Hm:]
    hs_mf = _run_lstm_direction(g_mf, mf_whh_ref[...], S, B, Hm, reverse=False)
    hs_mb = _run_lstm_direction(g_mb, mb_whh_ref[...], S, B, Hm, reverse=True)
    h_fwd = jnp.concatenate(hs_mf, axis=0)                            # (N, Hm)
    h_bwd = jnp.concatenate(hs_mb, axis=0)                            # (N, Hm)

    # ---- head: fc1 (split halves) -> LayerNorm -> ReLU -> classifier ---------
    h1 = (jnp.dot(h_fwd, fc1_wf_ref[...], preferred_element_type=f32)
          + jnp.dot(h_bwd, fc1_wb_ref[...], preferred_element_type=f32)
          + fc1_b_ref[...])
    h1 = _layernorm(h1, ln1_g_ref[...], ln1_b_ref[...])
    h1 = jnp.maximum(h1, 0.0)
    # Classifier weights are padded to 128 lanes -> the single HBM store is lane-dense.
    out_ref[...] = (jnp.dot(h1, clf_w_ref[...], preferred_element_type=f32)
                    + clf_b_ref[...])


# ------------------------------- wrapper / model -------------------------------

_LANE = 128   # classifier output padded to a full lane tile


def nernet_forward(params, x_word, x_char):
    """x_word: (B, S) int32 ids; x_char: (B, S, Wc) int32 ids -> (B, S, n_labels)."""
    B, S = x_word.shape
    Wc = x_char.shape[-1]
    N = S * B
    Dw = params["word_emb"].shape[1]
    Hc = params["char_lstm_f"][1].shape[0]
    Hm = params["main_lstm_f"][1].shape[0]
    n_labels = params["clf_b"].shape[-1]

    # Embedding gathers + layout prep (glue, not a hot path). Token rows are
    # ordered n = s*B + b (time-major) so the kernel never transposes.
    we = jnp.take(params["word_emb"], x_word, axis=0)                 # (B, S, Dw)
    we2 = jnp.transpose(we, (1, 0, 2)).reshape(N, Dw)
    ce = jnp.take(params["char_emb"], x_char, axis=0)                 # (B, S, Wc, Dc)
    Dc = ce.shape[-1]
    ce2 = jnp.transpose(ce, (2, 1, 0, 3)).reshape(Wc * N, Dc)         # row = w*N + s*B + b

    # Merge the two directions' input-projection weights along the output lanes,
    # so the kernel does one matmul per input piece and recovers the fwd/bwd gate
    # halves with lane-tile-aligned slices.
    cf_wih, cf_whh, cf_b = params["char_lstm_f"]
    cb_wih, cb_whh, cb_b = params["char_lstm_b"]       # cb_whh unused (single bwd step from zero state)
    c_wih = jnp.concatenate([cf_wih, cb_wih], axis=1)                 # (Dc, 8Hc)
    c_b = jnp.concatenate([cf_b, cb_b], axis=1)                       # (1, 8Hc)

    mf_wih, mf_whh, mf_b = params["main_lstm_f"]
    mb_wih, mb_whh, mb_b = params["main_lstm_b"]
    m_wih = jnp.concatenate([mf_wih, mb_wih], axis=1)                 # (Dw+2Hc, 8Hm)
    m_ww, m_wcf, m_wcb = m_wih[:Dw], m_wih[Dw:Dw + Hc], m_wih[Dw + Hc:]
    m_b = jnp.concatenate([mf_b, mb_b], axis=1)                       # (1, 8Hm)

    fc1_wf, fc1_wb = params["fc1_w"][:Hm], params["fc1_w"][Hm:]

    # Pad the classifier to a full 128-lane tile (lane-dense output store).
    clf_w = jnp.zeros((Hm, _LANE), jnp.float32).at[:, :n_labels].set(params["clf_w"])
    clf_b = jnp.zeros((1, _LANE), jnp.float32).at[:, :n_labels].set(params["clf_b"])

    kernel = functools.partial(_nernet_kernel, S=S, B=B, Wc=Wc, Hc=Hc, Hm=Hm)
    out = pl.pallas_call(
        kernel,
        out_shape=jax.ShapeDtypeStruct((N, _LANE), jnp.float32),
    )(ce2, we2, params["ln_char_g"], params["ln_char_b"],
      c_wih, c_b, cf_whh,
      m_ww, m_wcf, m_wcb, m_b, mf_whh, mb_whh,
      fc1_wf, fc1_wb, params["fc1_b"], params["ln1_g"], params["ln1_b"],
      clf_w, clf_b)

    logits = out[:, :n_labels].reshape(S, B, n_labels)
    return jnp.transpose(logits, (1, 0, 2))                           # (B, S, n_labels)


# --------------------------- deterministic params ------------------------------

def init_params(key, *, word_vocab=50, char_vocab=30, d_word=32, d_char=16,
                h_char=16, h_main=32, n_labels=10, pad_word=0, pad_char=0):
    ks = jax.random.split(key, 16)

    def u(k, shape, scale):
        return jax.random.uniform(k, shape, jnp.float32, -scale, scale)

    def lstm_dir(k, d_in, h):
        k1, k2, k3 = jax.random.split(k, 3)
        s = 1.0 / float(jnp.sqrt(h))
        return (u(k1, (d_in, 4 * h), s),     # W_ih^T
                u(k2, (h, 4 * h), s),        # W_hh^T
                u(k3, (1, 4 * h), s))        # b_ih + b_hh (combined)

    d_main_in = d_word + 2 * h_char
    s1 = 1.0 / float(jnp.sqrt(2 * h_main))
    s2 = 1.0 / float(jnp.sqrt(h_main))
    return dict(
        word_emb=u(ks[0], (word_vocab, d_word), 0.5).at[pad_word].set(0.0),
        char_emb=u(ks[1], (char_vocab, d_char), 0.5).at[pad_char].set(0.0),
        ln_char_g=u(ks[2], (1, d_char), 0.1) + 1.0,
        ln_char_b=u(ks[3], (1, d_char), 0.1),
        char_lstm_f=lstm_dir(ks[4], d_char, h_char),
        char_lstm_b=lstm_dir(ks[5], d_char, h_char),
        main_lstm_f=lstm_dir(ks[6], d_main_in, h_main),
        main_lstm_b=lstm_dir(ks[7], d_main_in, h_main),
        fc1_w=u(ks[8], (2 * h_main, h_main), s1),
        fc1_b=u(ks[9], (1, h_main), s1),
        ln1_g=u(ks[10], (1, h_main), 0.1) + 1.0,
        ln1_b=u(ks[11], (1, h_main), 0.1),
        clf_w=u(ks[12], (h_main, n_labels), s2),
        clf_b=u(ks[13], (1, n_labels), s2),
    )


# ------------------------------ pure-JAX reference -----------------------------

def _ref_lstm_dir(x_tbd, w_ih, w_hh, b):
    H = w_hh.shape[0]
    B = x_tbd.shape[1]

    def step(carry, x_t):
        h, c = carry
        gates = x_t @ w_ih + h @ w_hh + b[0]
        i = jax.nn.sigmoid(gates[:, :H])
        f = jax.nn.sigmoid(gates[:, H:2 * H])
        g = jnp.tanh(gates[:, 2 * H:3 * H])
        o = jax.nn.sigmoid(gates[:, 3 * H:])
        c = f * c + i * g
        h = o * jnp.tanh(c)
        return (h, c), h

    init = (jnp.zeros((B, H), jnp.float32), jnp.zeros((B, H), jnp.float32))
    _, hs = lax.scan(step, init, x_tbd)
    return hs


def _ref_bilstm(x_btd, pf, pb):
    x_tbd = jnp.transpose(x_btd, (1, 0, 2))
    hf = _ref_lstm_dir(x_tbd, *pf)
    hb = _ref_lstm_dir(x_tbd[::-1], *pb)[::-1]
    return jnp.transpose(jnp.concatenate([hf, hb], -1), (1, 0, 2))


def _ref_ln(x, g, b):
    m = jnp.mean(x, -1, keepdims=True)
    v = jnp.mean((x - m) ** 2, -1, keepdims=True)
    return (x - m) * lax.rsqrt(v + 1e-5) * g + b


def ref_forward(params, x_word, x_char):
    B, S = x_word.shape
    Wc = x_char.shape[-1]
    we = jnp.take(params["word_emb"], x_word, axis=0)
    ce = jnp.take(params["char_emb"], x_char, axis=0)
    ce = _ref_ln(ce, params["ln_char_g"][0], params["ln_char_b"][0])
    ce = ce.reshape(B * S, Wc, -1)
    ch = _ref_bilstm(ce, params["char_lstm_f"], params["char_lstm_b"])
    ch = ch[:, -1, :].reshape(B, S, -1)
    x = jnp.concatenate([we, ch], axis=-1)
    x = _ref_bilstm(x, params["main_lstm_f"], params["main_lstm_b"])
    h = x @ params["fc1_w"] + params["fc1_b"][0]
    h = _ref_ln(h, params["ln1_g"][0], params["ln1_b"][0])
    h = jnp.maximum(h, 0.0)
    return h @ params["clf_w"] + params["clf_b"][0]


# ----------------------------------- main ---------------------------------------

if __name__ == "__main__":
    key = jax.random.PRNGKey(0)
    kp, kw, kc = jax.random.split(key, 3)

    B, S, W = 2, 8, 6           # batch, sentence_len, word_len (chars per word)
    N_LABELS = 10
    params = init_params(kp, n_labels=N_LABELS)

    x_word = jax.random.randint(kw, (B, S), 0, 50, dtype=jnp.int32)
    x_char = jax.random.randint(kc, (B, S, W), 0, 30, dtype=jnp.int32)

    out = jax.jit(nernet_forward)(params, x_word, x_char)
    out = jax.block_until_ready(out)
    assert out.shape == (B, S, N_LABELS)

    ref = ref_forward(params, x_word, x_char)
    err = float(jnp.max(jnp.abs(out - ref)))
    assert jnp.allclose(out, ref, atol=2e-3, rtol=2e-3), f"max abs err {err}"

    print("KERNEL_OK")
</pallas_src>

<mosaic_0001>
module attributes {stable_mosaic.version = 11 : i64} {
  func.func @_nernet_kernel(%arg0: memref<96x16xf32, #tpu.memory_space<vmem>>, %arg1: memref<16x32xf32, #tpu.memory_space<vmem>>, %arg2: memref<1x16xf32, #tpu.memory_space<vmem>>, %arg3: memref<1x16xf32, #tpu.memory_space<vmem>>, %arg4: memref<16x128xf32, #tpu.memory_space<vmem>>, %arg5: memref<1x128xf32, #tpu.memory_space<vmem>>, %arg6: memref<16x64xf32, #tpu.memory_space<vmem>>, %arg7: memref<32x256xf32, #tpu.memory_space<vmem>>, %arg8: memref<16x256xf32, #tpu.memory_space<vmem>>, %arg9: memref<16x256xf32, #tpu.memory_space<vmem>>, %arg10: memref<1x256xf32, #tpu.memory_space<vmem>>, %arg11: memref<32x128xf32, #tpu.memory_space<vmem>>, %arg12: memref<32x128xf32, #tpu.memory_space<vmem>>, %arg13: memref<32x32xf32, #tpu.memory_space<vmem>>, %arg14: memref<32x32xf32, #tpu.memory_space<vmem>>, %arg15: memref<1x32xf32, #tpu.memory_space<vmem>>, %arg16: memref<1x32xf32, #tpu.memory_space<vmem>>, %arg17: memref<1x32xf32, #tpu.memory_space<vmem>>, %arg18: memref<32x128xf32, #tpu.memory_space<vmem>>, %arg19: memref<1x128xf32, #tpu.memory_space<vmem>>, %arg20: memref<16x128xf32, #tpu.memory_space<vmem>>) attributes {dimension_semantics = [], scalar_prefetch = 0 : i64, scratch_operands = 0 : i64, tpu.core_type = #tpu.core_type<tc>} {
    %c0 = arith.constant 0 : index
    %c0_0 = arith.constant 0 : index
    %0 = vector.load %arg0[%c0, %c0_0] : memref<96x16xf32, #tpu.memory_space<vmem>>, vector<96x16xf32>
    %c0_1 = arith.constant 0 : index
    %c0_2 = arith.constant 0 : index
    %1 = vector.load %arg2[%c0_1, %c0_2] : memref<1x16xf32, #tpu.memory_space<vmem>>, vector<1x16xf32>
    %c0_3 = arith.constant 0 : index
    %c0_4 = arith.constant 0 : index
    %2 = vector.load %arg3[%c0_3, %c0_4] : memref<1x16xf32, #tpu.memory_space<vmem>>, vector<1x16xf32>
    %cst = arith.constant dense<0.000000e+00> : vector<96xf32>
    %3 = vector.multi_reduction <add>, %0, %cst [1] : vector<96x16xf32> to vector<96xf32>
    %4 = vector.shape_cast %3 : vector<96xf32> to vector<96x1xf32>
    %cst_5 = arith.constant 1.600000e+01 : f32
    %5 = vector.broadcast %cst_5 : f32 to vector<96x1xf32>
    %6 = arith.divf %4, %5 : vector<96x1xf32>
    %7 = vector.broadcast %6 : vector<96x1xf32> to vector<96x16xf32>
    %8 = arith.subf %0, %7 : vector<96x16xf32>
    %9 = arith.mulf %8, %8 : vector<96x16xf32>
    %cst_6 = arith.constant dense<0.000000e+00> : vector<96xf32>
    %10 = vector.multi_reduction <add>, %9, %cst_6 [1] : vector<96x16xf32> to vector<96xf32>
    %11 = vector.shape_cast %10 : vector<96xf32> to vector<96x1xf32>
    %cst_7 = arith.constant 1.600000e+01 : f32
    %12 = vector.broadcast %cst_7 : f32 to vector<96x1xf32>
    %13 = arith.divf %11, %12 : vector<96x1xf32>
    %14 = vector.broadcast %6 : vector<96x1xf32> to vector<96x16xf32>
    %15 = arith.subf %0, %14 : vector<96x16xf32>
    %cst_8 = arith.constant 9.99999974E-6 : f32
    %16 = vector.broadcast %cst_8 : f32 to vector<96x1xf32>
    %17 = arith.addf %13, %16 : vector<96x1xf32>
    %18 = math.rsqrt %17 : vector<96x1xf32>
    %19 = vector.broadcast %18 : vector<96x1xf32> to vector<96x16xf32>
    %20 = arith.mulf %15, %19 : vector<96x16xf32>
    %21 = vector.broadcast %1 : vector<1x16xf32> to vector<96x16xf32>
    %22 = arith.mulf %20, %21 : vector<96x16xf32>
    %23 = vector.broadcast %2 : vector<1x16xf32> to vector<96x16xf32>
    %24 = arith.addf %22, %23 : vector<96x16xf32>
    %c0_9 = arith.constant 0 : index
    %c0_10 = arith.constant 0 : index
    %25 = vector.load %arg4[%c0_9, %c0_10] : memref<16x128xf32, #tpu.memory_space<vmem>>, vector<16x128xf32>
    %cst_11 = arith.constant dense<0.000000e+00> : vector<96x128xf32>
    %26 = tpu.matmul %24, %25, %cst_11 {dimension_numbers = #tpu.dot_dimension_numbers<[1], [0], [0], [1], [0, 0, 1, 1], [], []>} : vector<96x16xf32>, vector<16x128xf32>, vector<96x128xf32> -> vector<96x128xf32>
    %c0_12 = arith.constant 0 : index
    %c0_13 = arith.constant 0 : index
    %27 = vector.load %arg5[%c0_12, %c0_13] : memref<1x128xf32, #tpu.memory_space<vmem>>, vector<1x128xf32>
    %28 = vector.broadcast %27 : vector<1x128xf32> to vector<96x128xf32>
    %29 = arith.addf %26, %28 : vector<96x128xf32>
    %30 = vector.extract_strided_slice %29 {offsets = [0, 0], sizes = [96, 64], strides = [1, 1]} : vector<96x128xf32> to vector<96x64xf32>
    %c0_14 = arith.constant 0 : index
    %c0_15 = arith.constant 0 : index
    %31 = vector.load %arg6[%c0_14, %c0_15] : memref<16x64xf32, #tpu.memory_space<vmem>>, vector<16x64xf32>
    %32 = vector.extract_strided_slice %30 {offsets = [0, 0], sizes = [16, 64], strides = [1, 1]} : vector<96x64xf32> to vector<16x64xf32>
    %33 = vector.extract_strided_slice %32 {offsets = [0, 0], sizes = [16, 16], strides = [1, 1]} : vector<16x64xf32> to vector<16x16xf32>
    %34 = arith.negf %33 : vector<16x16xf32>
    %35 = math.exp %34 : vector<16x16xf32>
    %cst_16 = arith.constant 1.000000e+00 : f32
    %36 = vector.broadcast %cst_16 : f32 to vector<16x16xf32>
    %37 = arith.addf %36, %35 : vector<16x16xf32>
    %38 = arith.divf %36, %37 : vector<16x16xf32>
    %39 = vector.extract_strided_slice %32 {offsets = [0, 32], sizes = [16, 16], strides = [1, 1]} : vector<16x64xf32> to vector<16x16xf32>
    %40 = math.tanh %39 : vector<16x16xf32>
    %41 = vector.extract_strided_slice %32 {offsets = [0, 48], sizes = [16, 16], strides = [1, 1]} : vector<16x64xf32> to vector<16x16xf32>
    %42 = arith.negf %41 : vector<16x16xf32>
    %43 = math.exp %42 : vector<16x16xf32>
    %cst_17 = arith.constant 1.000000e+00 : f32
    %44 = vector.broadcast %cst_17 : f32 to vector<16x16xf32>
    %45 = arith.addf %44, %43 : vector<16x16xf32>
    %46 = arith.divf %44, %45 : vector<16x16xf32>
    %47 = arith.mulf %38, %40 : vector<16x16xf32>
    %48 = math.tanh %47 : vector<16x16xf32>
    %49 = arith.mulf %46, %48 : vector<16x16xf32>
    %50 = vector.extract_strided_slice %30 {offsets = [16, 0], sizes = [16, 64], strides = [1, 1]} : vector<96x64xf32> to vector<16x64xf32>
    %cst_18 = arith.constant dense<0.000000e+00> : vector<16x64xf32>
    %51 = tpu.matmul %49, %31, %cst_18 {dimension_numbers = #tpu.dot_dimension_numbers<[1], [0], [0], [1], [0, 0, 1, 1], [], []>} : vector<16x16xf32>, vector<16x64xf32>, vector<16x64xf32> -> vector<16x64xf32>
    %52 = arith.addf %50, %51 : vector<16x64xf32>
    %53 = vector.extract_strided_slice %52 {offsets = [0, 0], sizes = [16, 16], strides = [1, 1]} : vector<16x64xf32> to vector<16x16xf32>
    %54 = arith.negf %53 : vector<16x16xf32>
    %55 = math.exp %54 : vector<16x16xf32>
    %cst_19 = arith.constant 1.000000e+00 : f32
    %56 = vector.broadcast %cst_19 : f32 to vector<16x16xf32>
    %57 = arith.addf %56, %55 : vector<16x16xf32>
    %58 = arith.divf %56, %57 : vector<16x16xf32>
    %59 = vector.extract_strided_slice %52 {offsets = [0, 16], sizes = [16, 16], strides = [1, 1]} : vector<16x64xf32> to vector<16x16xf32>
    %60 = arith.negf %59 : vector<16x16xf32>
    %61 = math.exp %60 : vector<16x16xf32>
    %cst_20 = arith.constant 1.000000e+00 : f32
    %62 = vector.broadcast %cst_20 : f32 to vector<16x16xf32>
    %63 = arith.addf %62, %61 : vector<16x16xf32>
    %64 = arith.divf %62, %63 : vector<16x16xf32>
    %65 = vector.extract_strided_slice %52 {offsets = [0, 32], sizes = [16, 16], strides = [1, 1]} : vector<16x64xf32> to vector<16x16xf32>
    %66 = math.tanh %65 : vector<16x16xf32>
    %67 = vector.extract_strided_slice %52 {offsets = [0, 48], sizes = [16, 16], strides = [1, 1]} : vector<16x64xf32> to vector<16x16xf32>
    %68 = arith.negf %67 : vector<16x16xf32>
    %69 = math.exp %68 : vector<16x16xf32>
    %cst_21 = arith.constant 1.000000e+00 : f32
    %70 = vector.broadcast %cst_21 : f32 to vector<16x16xf32>
    %71 = arith.addf %70, %69 : vector<16x16xf32>
    %72 = arith.divf %70, %71 : vector<16x16xf32>
    %73 = arith.mulf %64, %47 : vector<16x16xf32>
    %74 = arith.mulf %58, %66 : vector<16x16xf32>
    %75 = arith.addf %73, %74 : vector<16x16xf32>
    %76 = math.tanh %75 : vector<16x16xf32>
    %77 = arith.mulf %72, %76 : vector<16x16xf32>
    %78 = vector.extract_strided_slice %30 {offsets = [32, 0], sizes = [16, 64], strides = [1, 1]} : vector<96x64xf32> to vector<16x64xf32>
    %cst_22 = arith.constant dense<0.000000e+00> : vector<16x64xf32>
    %79 = tpu.matmul %77, %31, %cst_22 {dimension_numbers = #tpu.dot_dimension_numbers<[1], [0], [0], [1], [0, 0, 1, 1], [], []>} : vector<16x16xf32>, vector<16x64xf32>, vector<16x64xf32> -> vector<16x64xf32>
    %80 = arith.addf %78, %79 : vector<16x64xf32>
    %81 = vector.extract_strided_slice %80 {offsets = [0, 0], sizes = [16, 16], strides = [1, 1]} : vector<16x64xf32> to vector<16x16xf32>
    %82 = arith.negf %81 : vector<16x16xf32>
    %83 = math.exp %82 : vector<16x16xf32>
    %cst_23 = arith.constant 1.000000e+00 : f32
    %84 = vector.broadcast %cst_23 : f32 to vector<16x16xf32>
    %85 = arith.addf %84, %83 : vector<16x16xf32>
    %86 = arith.divf %84, %85 : vector<16x16xf32>
    %87 = vector.extract_strided_slice %80 {offsets = [0, 16], sizes = [16, 16], strides = [1, 1]} : vector<16x64xf32> to vector<16x16xf32>
    %88 = arith.negf %87 : vector<16x16xf32>
    %89 = math.exp %88 : vector<16x16xf32>
    %cst_24 = arith.constant 1.000000e+00 : f32
    %90 = vector.broadcast %cst_24 : f32 to vector<16x16xf32>
    %91 = arith.addf %90, %89 : vector<16x16xf32>
    %92 = arith.divf %90, %91 : vector<16x16xf32>
    %93 = vector.extract_strided_slice %80 {offsets = [0, 32], sizes = [16, 16], strides = [1, 1]} : vector<16x64xf32> to vector<16x16xf32>
    %94 = math.tanh %93 : vector<16x16xf32>
    %95 = vector.extract_strided_slice %80 {offsets = [0, 48], sizes = [16, 16], strides = [1, 1]} : vector<16x64xf32> to vector<16x16xf32>
    %96 = arith.negf %95 : vector<16x16xf32>
    %97 = math.exp %96 : vector<16x16xf32>
    %cst_25 = arith.constant 1.000000e+00 : f32
    %98 = vector.broadcast %cst_25 : f32 to vector<16x16xf32>
    %99 = arith.addf %98, %97 : vector<16x16xf32>
    %100 = arith.divf %98, %99 : vector<16x16xf32>
    %101 = arith.mulf %92, %75 : vector<16x16xf32>
    %102 = arith.mulf %86, %94 : vector<16x16xf32>
    %103 = arith.addf %101, %102 : vector<16x16xf32>
    %104 = math.tanh %103 : vector<16x16xf32>
    %105 = arith.mulf %100, %104 : vector<16x16xf32>
    %106 = vector.extract_strided_slice %30 {offsets = [48, 0], sizes = [16, 64], strides = [1, 1]} : vector<96x64xf32> to vector<16x64xf32>
    %cst_26 = arith.constant dense<0.000000e+00> : vector<16x64xf32>
    %107 = tpu.matmul %105, %31, %cst_26 {dimension_numbers = #tpu.dot_dimension_numbers<[1], [0], [0], [1], [0, 0, 1, 1], [], []>} : vector<16x16xf32>, vector<16x64xf32>, vector<16x64xf32> -> vector<16x64xf32>
    %108 = arith.addf %106, %107 : vector<16x64xf32>
    %109 = vector.extract_strided_slice %108 {offsets = [0, 0], sizes = [16, 16], strides = [1, 1]} : vector<16x64xf32> to vector<16x16xf32>
    %110 = arith.negf %109 : vector<16x16xf32>
    %111 = math.exp %110 : vector<16x16xf32>
    %cst_27 = arith.constant 1.000000e+00 : f32
    %112 = vector.broadcast %cst_27 : f32 to vector<16x16xf32>
    %113 = arith.addf %112, %111 : vector<16x16xf32>
    %114 = arith.divf %112, %113 : vector<16x16xf32>
    %115 = vector.extract_strided_slice %108 {offsets = [0, 16], sizes = [16, 16], strides = [1, 1]} : vector<16x64xf32> to vector<16x16xf32>
    %116 = arith.negf %115 : vector<16x16xf32>
    %117 = math.exp %116 : vector<16x16xf32>
    %cst_28 = arith.constant 1.000000e+00 : f32
    %118 = vector.broadcast %cst_28 : f32 to vector<16x16xf32>
    %119 = arith.addf %118, %117 : vector<16x16xf32>
    %120 = arith.divf %118, %119 : vector<16x16xf32>
    %121 = vector.extract_strided_slice %108 {offsets = [0, 32], sizes = [16, 16], strides = [1, 1]} : vector<16x64xf32> to vector<16x16xf32>
    %122 = math.tanh %121 : vector<16x16xf32>
    %123 = vector.extract_strided_slice %108 {offsets = [0, 48], sizes = [16, 16], strides = [1, 1]} : vector<16x64xf32> to vector<16x16xf32>
    %124 = arith.negf %123 : vector<16x16xf32>
    %125 = math.exp %124 : vector<16x16xf32>
    %cst_29 = arith.constant 1.000000e+00 : f32
    %126 = vector.broadcast %cst_29 : f32 to vector<16x16xf32>
    %127 = arith.addf %126, %125 : vector<16x16xf32>
    %128 = arith.divf %126, %127 : vector<16x16xf32>
    %129 = arith.mulf %120, %103 : vector<16x16xf32>
    %130 = arith.mulf %114, %122 : vector<16x16xf32>
    %131 = arith.addf %129, %130 : vector<16x16xf32>
    %132 = math.tanh %131 : vector<16x16xf32>
    %133 = arith.mulf %128, %132 : vector<16x16xf32>
    %134 = vector.extract_strided_slice %30 {offsets = [64, 0], sizes = [16, 64], strides = [1, 1]} : vector<96x64xf32> to vector<16x64xf32>
    %cst_30 = arith.constant dense<0.000000e+00> : vector<16x64xf32>
    %135 = tpu.matmul %133, %31, %cst_30 {dimension_numbers = #tpu.dot_dimension_numbers<[1], [0], [0], [1], [0, 0, 1, 1], [], []>} : vector<16x16xf32>, vector<16x64xf32>, vector<16x64xf32> -> vector<16x64xf32>
    %136 = arith.addf %134, %135 : vector<16x64xf32>
    %137 = vector.extract_strided_slice %136 {offsets = [0, 0], sizes = [16, 16], strides = [1, 1]} : vector<16x64xf32> to vector<16x16xf32>
    %138 = arith.negf %137 : vector<16x16xf32>
    %139 = math.exp %138 : vector<16x16xf32>
    %cst_31 = arith.constant 1.000000e+00 : f32
    %140 = vector.broadcast %cst_31 : f32 to vector<16x16xf32>
    %141 = arith.addf %140, %139 : vector<16x16xf32>
    %142 = arith.divf %140, %141 : vector<16x16xf32>
    %143 = vector.extract_strided_slice %136 {offsets = [0, 16], sizes = [16, 16], strides = [1, 1]} : vector<16x64xf32> to vector<16x16xf32>
    %144 = arith.negf %143 : vector<16x16xf32>
    %145 = math.exp %144 : vector<16x16xf32>
    %cst_32 = arith.constant 1.000000e+00 : f32
    %146 = vector.broadcast %cst_32 : f32 to vector<16x16xf32>
    %147 = arith.addf %146, %145 : vector<16x16xf32>
    %148 = arith.divf %146, %147 : vector<16x16xf32>
    %149 = vector.extract_strided_slice %136 {offsets = [0, 32], sizes = [16, 16], strides = [1, 1]} : vector<16x64xf32> to vector<16x16xf32>
    %150 = math.tanh %149 : vector<16x16xf32>
    %151 = vector.extract_strided_slice %136 {offsets = [0, 48], sizes = [16, 16], strides = [1, 1]} : vector<16x64xf32> to vector<16x16xf32>
    %152 = arith.negf %151 : vector<16x16xf32>
    %153 = math.exp %152 : vector<16x16xf32>
    %cst_33 = arith.constant 1.000000e+00 : f32
    %154 = vector.broadcast %cst_33 : f32 to vector<16x16xf32>
    %155 = arith.addf %154, %153 : vector<16x16xf32>
    %156 = arith.divf %154, %155 : vector<16x16xf32>
    %157 = arith.mulf %148, %131 : vector<16x16xf32>
    %158 = arith.mulf %142, %150 : vector<16x16xf32>
    %159 = arith.addf %157, %158 : vector<16x16xf32>
    %160 = math.tanh %159 : vector<16x16xf32>
    %161 = arith.mulf %156, %160 : vector<16x16xf32>
    %162 = vector.extract_strided_slice %30 {offsets = [80, 0], sizes = [16, 64], strides = [1, 1]} : vector<96x64xf32> to vector<16x64xf32>
    %cst_34 = arith.constant dense<0.000000e+00> : vector<16x64xf32>
    %163 = tpu.matmul %161, %31, %cst_34 {dimension_numbers = #tpu.dot_dimension_numbers<[1], [0], [0], [1], [0, 0, 1, 1], [], []>} : vector<16x16xf32>, vector<16x64xf32>, vector<16x64xf32> -> vector<16x64xf32>
    %164 = arith.addf %162, %163 : vector<16x64xf32>
    %165 = vector.extract_strided_slice %164 {offsets = [0, 0], sizes = [16, 16], strides = [1, 1]} : vector<16x64xf32> to vector<16x16xf32>
    %166 = arith.negf %165 : vector<16x16xf32>
    %167 = math.exp %166 : vector<16x16xf32>
    %cst_35 = arith.constant 1.000000e+00 : f32
    %168 = vector.broadcast %cst_35 : f32 to vector<16x16xf32>
    %169 = arith.addf %168, %167 : vector<16x16xf32>
    %170 = arith.divf %168, %169 : vector<16x16xf32>
    %171 = vector.extract_strided_slice %164 {offsets = [0, 16], sizes = [16, 16], strides = [1, 1]} : vector<16x64xf32> to vector<16x16xf32>
    %172 = arith.negf %171 : vector<16x16xf32>
    %173 = math.exp %172 : vector<16x16xf32>
    %cst_36 = arith.constant 1.000000e+00 : f32
    %174 = vector.broadcast %cst_36 : f32 to vector<16x16xf32>
    %175 = arith.addf %174, %173 : vector<16x16xf32>
    %176 = arith.divf %174, %175 : vector<16x16xf32>
    %177 = vector.extract_strided_slice %164 {offsets = [0, 32], sizes = [16, 16], strides = [1, 1]} : vector<16x64xf32> to vector<16x16xf32>
    %178 = math.tanh %177 : vector<16x16xf32>
    %179 = vector.extract_strided_slice %164 {offsets = [0, 48], sizes = [16, 16], strides = [1, 1]} : vector<16x64xf32> to vector<16x16xf32>
    %180 = arith.negf %179 : vector<16x16xf32>
    %181 = math.exp %180 : vector<16x16xf32>
    %cst_37 = arith.constant 1.000000e+00 : f32
    %182 = vector.broadcast %cst_37 : f32 to vector<16x16xf32>
    %183 = arith.addf %182, %181 : vector<16x16xf32>
    %184 = arith.divf %182, %183 : vector<16x16xf32>
    %185 = arith.mulf %176, %159 : vector<16x16xf32>
    %186 = arith.mulf %170, %178 : vector<16x16xf32>
    %187 = arith.addf %185, %186 : vector<16x16xf32>
    %188 = math.tanh %187 : vector<16x16xf32>
    %189 = arith.mulf %184, %188 : vector<16x16xf32>
    %190 = vector.extract_strided_slice %29 {offsets = [80, 64], sizes = [16, 64], strides = [1, 1]} : vector<96x128xf32> to vector<16x64xf32>
    %191 = vector.extract_strided_slice %190 {offsets = [0, 0], sizes = [16, 16], strides = [1, 1]} : vector<16x64xf32> to vector<16x16xf32>
    %192 = arith.negf %191 : vector<16x16xf32>
    %193 = math.exp %192 : vector<16x16xf32>
    %cst_38 = arith.constant 1.000000e+00 : f32
    %194 = vector.broadcast %cst_38 : f32 to vector<16x16xf32>
    %195 = arith.addf %194, %193 : vector<16x16xf32>
    %196 = arith.divf %194, %195 : vector<16x16xf32>
    %197 = vector.extract_strided_slice %190 {offsets = [0, 32], sizes = [16, 16], strides = [1, 1]} : vector<16x64xf32> to vector<16x16xf32>
    %198 = math.tanh %197 : vector<16x16xf32>
    %199 = vector.extract_strided_slice %190 {offsets = [0, 48], sizes = [16, 16], strides = [1, 1]} : vector<16x64xf32> to vector<16x16xf32>
    %200 = arith.negf %199 : vector<16x16xf32>
    %201 = math.exp %200 : vector<16x16xf32>
    %cst_39 = arith.constant 1.000000e+00 : f32
    %202 = vector.broadcast %cst_39 : f32 to vector<16x16xf32>
    %203 = arith.addf %202, %201 : vector<16x16xf32>
    %204 = arith.divf %202, %203 : vector<16x16xf32>
    %205 = arith.mulf %196, %198 : vector<16x16xf32>
    %206 = math.tanh %205 : vector<16x16xf32>
    %207 = arith.mulf %204, %206 : vector<16x16xf32>
    %c0_40 = arith.constant 0 : index
    %c0_41 = arith.constant 0 : index
    %208 = vector.load %arg1[%c0_40, %c0_41] : memref<16x32xf32, #tpu.memory_space<vmem>>, vector<16x32xf32>
    %c0_42 = arith.constant 0 : index
    %c0_43 = arith.constant 0 : index
    %209 = vector.load %arg7[%c0_42, %c0_43] : memref<32x256xf32, #tpu.memory_space<vmem>>, vector<32x256xf32>
    %cst_44 = arith.constant dense<0.000000e+00> : vector<16x256xf32>
    %210 = tpu.matmul %208, %209, %cst_44 {dimension_numbers = #tpu.dot_dimension_numbers<[1], [0], [0], [1], [0, 0, 1, 1], [], []>} : vector<16x32xf32>, vector<32x256xf32>, vector<16x256xf32> -> vector<16x256xf32>
    %c0_45 = arith.constant 0 : index
    %c0_46 = arith.constant 0 : index
    %211 = vector.load %arg8[%c0_45, %c0_46] : memref<16x256xf32, #tpu.memory_space<vmem>>, vector<16x256xf32>
    %cst_47 = arith.constant dense<0.000000e+00> : vector<16x256xf32>
    %212 = tpu.matmul %189, %211, %cst_47 {dimension_numbers = #tpu.dot_dimension_numbers<[1], [0], [0], [1], [0, 0, 1, 1], [], []>} : vector<16x16xf32>, vector<16x256xf32>, vector<16x256xf32> -> vector<16x256xf32>
    %213 = arith.addf %210, %212 : vector<16x256xf32>
    %c0_48 = arith.constant 0 : index
    %c0_49 = arith.constant 0 : index
    %214 = vector.load %arg9[%c0_48, %c0_49] : memref<16x256xf32, #tpu.memory_space<vmem>>, vector<16x256xf32>
    %cst_50 = arith.constant dense<0.000000e+00> : vector<16x256xf32>
    %215 = tpu.matmul %207, %214, %cst_50 {dimension_numbers = #tpu.dot_dimension_numbers<[1], [0], [0], [1], [0, 0, 1, 1], [], []>} : vector<16x16xf32>, vector<16x256xf32>, vector<16x256xf32> -> vector<16x256xf32>
    %216 = arith.addf %213, %215 : vector<16x256xf32>
    %c0_51 = arith.constant 0 : index
    %c0_52 = arith.constant 0 : index
    %217 = vector.load %arg10[%c0_51, %c0_52] : memref<1x256xf32, #tpu.memory_space<vmem>>, vector<1x256xf32>
    %218 = vector.broadcast %217 : vector<1x256xf32> to vector<16x256xf32>
    %219 = arith.addf %216, %218 : vector<16x256xf32>
    %220 = vector.extract_strided_slice %219 {offsets = [0, 0], sizes = [16, 128], strides = [1, 1]} : vector<16x256xf32> to vector<16x128xf32>
    %221 = vector.extract_strided_slice %219 {offsets = [0, 128], sizes = [16, 128], strides = [1, 1]} : vector<16x256xf32> to vector<16x128xf32>
    %c0_53 = arith.constant 0 : index
    %c0_54 = arith.constant 0 : index
    %222 = vector.load %arg11[%c0_53, %c0_54] : memref<32x128xf32, #tpu.memory_space<vmem>>, vector<32x128xf32>
    %223 = vector.extract_strided_slice %220 {offsets = [0, 0], sizes = [2, 128], strides = [1, 1]} : vector<16x128xf32> to vector<2x128xf32>
    %224 = vector.extract_strided_slice %223 {offsets = [0, 0], sizes = [2, 32], strides = [1, 1]} : vector<2x128xf32> to vector<2x32xf32>
    %225 = arith.negf %224 : vector<2x32xf32>
    %226 = math.exp %225 : vector<2x32xf32>
    %cst_55 = arith.constant 1.000000e+00 : f32
    %227 = vector.broadcast %cst_55 : f32 to vector<2x32xf32>
    %228 = arith.addf %227, %226 : vector<2x32xf32>
    %229 = arith.divf %227, %228 : vector<2x32xf32>
    %230 = vector.extract_strided_slice %223 {offsets = [0, 64], sizes = [2, 32], strides = [1, 1]} : vector<2x128xf32> to vector<2x32xf32>
    %231 = math.tanh %230 : vector<2x32xf32>
    %232 = vector.extract_strided_slice %223 {offsets = [0, 96], sizes = [2, 32], strides = [1, 1]} : vector<2x128xf32> to vector<2x32xf32>
    %233 = arith.negf %232 : vector<2x32xf32>
    %234 = math.exp %233 : vector<2x32xf32>
    %cst_56 = arith.constant 1.000000e+00 : f32
    %235 = vector.broadcast %cst_56 : f32 to vector<2x32xf32>
    %236 = arith.addf %235, %234 : vector<2x32xf32>
    %237 = arith.divf %235, %236 : vector<2x32xf32>
    %238 = arith.mulf %229, %231 : vector<2x32xf32>
    %239 = math.tanh %238 : vector<2x32xf32>
    %240 = arith.mulf %237, %239 : vector<2x32xf32>
    %241 = vector.extract_strided_slice %220 {offsets = [2, 0], sizes = [2, 128], strides = [1, 1]} : vector<16x128xf32> to vector<2x128xf32>
    %cst_57 = arith.constant dense<0.000000e+00> : vector<2x128xf32>
    %242 = tpu.matmul %240, %222, %cst_57 {dimension_numbers = #tpu.dot_dimension_numbers<[1], [0], [0], [1], [0, 0, 1, 1], [], []>} : vector<2x32xf32>, vector<32x128xf32>, vector<2x128xf32> -> vector<2x128xf32>
    %243 = arith.addf %241, %242 : vector<2x128xf32>
    %244 = vector.extract_strided_slice %243 {offsets = [0, 0], sizes = [2, 32], strides = [1, 1]} : vector<2x128xf32> to vector<2x32xf32>
    %245 = arith.negf %244 : vector<2x32xf32>
    %246 = math.exp %245 : vector<2x32xf32>
    %cst_58 = arith.constant 1.000000e+00 : f32
    %247 = vector.broadcast %cst_58 : f32 to vector<2x32xf32>
    %248 = arith.addf %247, %246 : vector<2x32xf32>
    %249 = arith.divf %247, %248 : vector<2x32xf32>
    %250 = vector.extract_strided_slice %243 {offsets = [0, 32], sizes = [2, 32], strides = [1, 1]} : vector<2x128xf32> to vector<2x32xf32>
    %251 = arith.negf %250 : vector<2x32xf32>
    %252 = math.exp %251 : vector<2x32xf32>
    %cst_59 = arith.constant 1.000000e+00 : f32
    %253 = vector.broadcast %cst_59 : f32 to vector<2x32xf32>
    %254 = arith.addf %253, %252 : vector<2x32xf32>
    %255 = arith.divf %253, %254 : vector<2x32xf32>
    %256 = vector.extract_strided_slice %243 {offsets = [0, 64], sizes = [2, 32], strides = [1, 1]} : vector<2x128xf32> to vector<2x32xf32>
    %257 = math.tanh %256 : vector<2x32xf32>
    %258 = vector.extract_strided_slice %243 {offsets = [0, 96], sizes = [2, 32], strides = [1, 1]} : vector<2x128xf32> to vector<2x32xf32>
    %259 = arith.negf %258 : vector<2x32xf32>
    %260 = math.exp %259 : vector<2x32xf32>
    %cst_60 = arith.constant 1.000000e+00 : f32
    %261 = vector.broadcast %cst_60 : f32 to vector<2x32xf32>
    %262 = arith.addf %261, %260 : vector<2x32xf32>
    %263 = arith.divf %261, %262 : vector<2x32xf32>
    %264 = arith.mulf %255, %238 : vector<2x32xf32>
    %265 = arith.mulf %249, %257 : vector<2x32xf32>
    %266 = arith.addf %264, %265 : vector<2x32xf32>
    %267 = math.tanh %266 : vector<2x32xf32>
    %268 = arith.mulf %263, %267 : vector<2x32xf32>
    %269 = vector.extract_strided_slice %220 {offsets = [4, 0], sizes = [2, 128], strides = [1, 1]} : vector<16x128xf32> to vector<2x128xf32>
    %cst_61 = arith.constant dense<0.000000e+00> : vector<2x128xf32>
    %270 = tpu.matmul %268, %222, %cst_61 {dimension_numbers = #tpu.dot_dimension_numbers<[1], [0], [0], [1], [0, 0, 1, 1], [], []>} : vector<2x32xf32>, vector<32x128xf32>, vector<2x128xf32> -> vector<2x128xf32>
    %271 = arith.addf %269, %270 : vector<2x128xf32>
    %272 = vector.extract_strided_slice %271 {offsets = [0, 0], sizes = [2, 32], strides = [1, 1]} : vector<2x128xf32> to vector<2x32xf32>
    %273 = arith.negf %272 : vector<2x32xf32>
    %274 = math.exp %273 : vector<2x32xf32>
    %cst_62 = arith.constant 1.000000e+00 : f32
    %275 = vector.broadcast %cst_62 : f32 to vector<2x32xf32>
    %276 = arith.addf %275, %274 : vector<2x32xf32>
    %277 = arith.divf %275, %276 : vector<2x32xf32>
    %278 = vector.extract_strided_slice %271 {offsets = [0, 32], sizes = [2, 32], strides = [1, 1]} : vector<2x128xf32> to vector<2x32xf32>
    %279 = arith.negf %278 : vector<2x32xf32>
    %280 = math.exp %279 : vector<2x32xf32>
    %cst_63 = arith.constant 1.000000e+00 : f32
    %281 = vector.broadcast %cst_63 : f32 to vector<2x32xf32>
    %282 = arith.addf %281, %280 : vector<2x32xf32>
    %283 = arith.divf %281, %282 : vector<2x32xf32>
    %284 = vector.extract_strided_slice %271 {offsets = [0, 64], sizes = [2, 32], strides = [1, 1]} : vector<2x128xf32> to vector<2x32xf32>
    %285 = math.tanh %284 : vector<2x32xf32>
    %286 = vector.extract_strided_slice %271 {offsets = [0, 96], sizes = [2, 32], strides = [1, 1]} : vector<2x128xf32> to vector<2x32xf32>
    %287 = arith.negf %286 : vector<2x32xf32>
    %288 = math.exp %287 : vector<2x32xf32>
    %cst_64 = arith.constant 1.000000e+00 : f32
    %289 = vector.broadcast %cst_64 : f32 to vector<2x32xf32>
    %290 = arith.addf %289, %288 : vector<2x32xf32>
    %291 = arith.divf %289, %290 : vector<2x32xf32>
    %292 = arith.mulf %283, %266 : vector<2x32xf32>
    %293 = arith.mulf %277, %285 : vector<2x32xf32>
    %294 = arith.addf %292, %293 : vector<2x32xf32>
    %295 = math.tanh %294 : vector<2x32xf32>
    %296 = arith.mulf %291, %295 : vector<2x32xf32>
    %297 = vector.extract_strided_slice %220 {offsets = [6, 0], sizes = [2, 128], strides = [1, 1]} : vector<16x128xf32> to vector<2x128xf32>
    %cst_65 = arith.constant dense<0.000000e+00> : vector<2x128xf32>
    %298 = tpu.matmul %296, %222, %cst_65 {dimension_numbers = #tpu.dot_dimension_numbers<[1], [0], [0], [1], [0, 0, 1, 1], [], []>} : vector<2x32xf32>, vector<32x128xf32>, vector<2x128xf32> -> vector<2x128xf32>
    %299 = arith.addf %297, %298 : vector<2x128xf32>
    %300 = vector.extract_strided_slice %299 {offsets = [0, 0], sizes = [2, 32], strides = [1, 1]} : vector<2x128xf32> to vector<2x32xf32>
    %301 = arith.negf %300 : vector<2x32xf32>
    %302 = math.exp %301 : vector<2x32xf32>
    %cst_66 = arith.constant 1.000000e+00 : f32
    %303 = vector.broadcast %cst_66 : f32 to vector<2x32xf32>
    %304 = arith.addf %303, %302 : vector<2x32xf32>
    %305 = arith.divf %303, %304 : vector<2x32xf32>
    %306 = vector.extract_strided_slice %299 {offsets = [0, 32], sizes = [2, 32], strides = [1, 1]} : vector<2x128xf32> to vector<2x32xf32>
    %307 = arith.negf %306 : vector<2x32xf32>
    %308 = math.exp %307 : vector<2x32xf32>
    %cst_67 = arith.constant 1.000000e+00 : f32
    %309 = vector.broadcast %cst_67 : f32 to vector<2x32xf32>
    %310 = arith.addf %309, %308 : vector<2x32xf32>
    %311 = arith.divf %309, %310 : vector<2x32xf32>
    %312 = vector.extract_strided_slice %299 {offsets = [0, 64], sizes = [2, 32], strides = [1, 1]} : vector<2x128xf32> to vector<2x32xf32>
    %313 = math.tanh %312 : vector<2x32xf32>
    %314 = vector.extract_strided_slice %299 {offsets = [0, 96], sizes = [2, 32], strides = [1, 1]} : vector<2x128xf32> to vector<2x32xf32>
    %315 = arith.negf %314 : vector<2x32xf32>
    %316 = math.exp %315 : vector<2x32xf32>
    %cst_68 = arith.constant 1.000000e+00 : f32
    %317 = vector.broadcast %cst_68 : f32 to vector<2x32xf32>
    %318 = arith.addf %317, %316 : vector<2x32xf32>
    %319 = arith.divf %317, %318 : vector<2x32xf32>
    %320 = arith.mulf %311, %294 : vector<2x32xf32>
    %321 = arith.mulf %305, %313 : vector<2x32xf32>
    %322 = arith.addf %320, %321 : vector<2x32xf32>
    %323 = math.tanh %322 : vector<2x32xf32>
    %324 = arith.mulf %319, %323 : vector<2x32xf32>
    %325 = vector.extract_strided_slice %220 {offsets = [8, 0], sizes = [2, 128], strides = [1, 1]} : vector<16x128xf32> to vector<2x128xf32>
    %cst_69 = arith.constant dense<0.000000e+00> : vector<2x128xf32>
    %326 = tpu.matmul %324, %222, %cst_69 {dimension_numbers = #tpu.dot_dimension_numbers<[1], [0], [0], [1], [0, 0, 1, 1], [], []>} : vector<2x32xf32>, vector<32x128xf32>, vector<2x128xf32> -> vector<2x128xf32>
    %327 = arith.addf %325, %326 : vector<2x128xf32>
    %328 = vector.extract_strided_slice %327 {offsets = [0, 0], sizes = [2, 32], strides = [1, 1]} : vector<2x128xf32> to vector<2x32xf32>
    %329 = arith.negf %328 : vector<2x32xf32>
    %330 = math.exp %329 : vector<2x32xf32>
    %cst_70 = arith.constant 1.000000e+00 : f32
    %331 = vector.broadcast %cst_70 : f32 to vector<2x32xf32>
    %332 = arith.addf %331, %330 : vector<2x32xf32>
    %333 = arith.divf %331, %332 : vector<2x32xf32>
    %334 = vector.extract_strided_slice %327 {offsets = [0, 32], sizes = [2, 32], strides = [1, 1]} : vector<2x128xf32> to vector<2x32xf32>
    %335 = arith.negf %334 : vector<2x32xf32>
    %336 = math.exp %335 : vector<2x32xf32>
    %cst_71 = arith.constant 1.000000e+00 : f32
    %337 = vector.broadcast %cst_71 : f32 to vector<2x32xf32>
    %338 = arith.addf %337, %336 : vector<2x32xf32>
    %339 = arith.divf %337, %338 : vector<2x32xf32>
    %340 = vector.extract_strided_slice %327 {offsets = [0, 64], sizes = [2, 32], strides = [1, 1]} : vector<2x128xf32> to vector<2x32xf32>
    %341 = math.tanh %340 : vector<2x32xf32>
    %342 = vector.extract_strided_slice %327 {offsets = [0, 96], sizes = [2, 32], strides = [1, 1]} : vector<2x128xf32> to vector<2x32xf32>
    %343 = arith.negf %342 : vector<2x32xf32>
    %344 = math.exp %343 : vector<2x32xf32>
    %cst_72 = arith.constant 1.000000e+00 : f32
    %345 = vector.broadcast %cst_72 : f32 to vector<2x32xf32>
    %346 = arith.addf %345, %344 : vector<2x32xf32>
    %347 = arith.divf %345, %346 : vector<2x32xf32>
    %348 = arith.mulf %339, %322 : vector<2x32xf32>
    %349 = arith.mulf %333, %341 : vector<2x32xf32>
    %350 = arith.addf %348, %349 : vector<2x32xf32>
    %351 = math.tanh %350 : vector<2x32xf32>
    %352 = arith.mulf %347, %351 : vector<2x32xf32>
    %353 = vector.extract_strided_slice %220 {offsets = [10, 0], sizes = [2, 128], strides = [1, 1]} : vector<16x128xf32> to vector<2x128xf32>
    %cst_73 = arith.constant dense<0.000000e+00> : vector<2x128xf32>
    %354 = tpu.matmul %352, %222, %cst_73 {dimension_numbers = #tpu.dot_dimension_numbers<[1], [0], [0], [1], [0, 0, 1, 1], [], []>} : vector<2x32xf32>, vector<32x128xf32>, vector<2x128xf32> -> vector<2x128xf32>
    %355 = arith.addf %353, %354 : vector<2x128xf32>
    %356 = vector.extract_strided_slice %355 {offsets = [0, 0], sizes = [2, 32], strides = [1, 1]} : vector<2x128xf32> to vector<2x32xf32>
    %357 = arith.negf %356 : vector<2x32xf32>
    %358 = math.exp %357 : vector<2x32xf32>
    %cst_74 = arith.constant 1.000000e+00 : f32
    %359 = vector.broadcast %cst_74 : f32 to vector<2x32xf32>
    %360 = arith.addf %359, %358 : vector<2x32xf32>
    %361 = arith.divf %359, %360 : vector<2x32xf32>
    %362 = vector.extract_strided_slice %355 {offsets = [0, 32], sizes = [2, 32], strides = [1, 1]} : vector<2x128xf32> to vector<2x32xf32>
    %363 = arith.negf %362 : vector<2x32xf32>
    %364 = math.exp %363 : vector<2x32xf32>
    %cst_75 = arith.constant 1.000000e+00 : f32
    %365 = vector.broadcast %cst_75 : f32 to vector<2x32xf32>
    %366 = arith.addf %365, %364 : vector<2x32xf32>
    %367 = arith.divf %365, %366 : vector<2x32xf32>
    %368 = vector.extract_strided_slice %355 {offsets = [0, 64], sizes = [2, 32], strides = [1, 1]} : vector<2x128xf32> to vector<2x32xf32>
    %369 = math.tanh %368 : vector<2x32xf32>
    %370 = vector.extract_strided_slice %355 {offsets = [0, 96], sizes = [2, 32], strides = [1, 1]} : vector<2x128xf32> to vector<2x32xf32>
    %371 = arith.negf %370 : vector<2x32xf32>
    %372 = math.exp %371 : vector<2x32xf32>
    %cst_76 = arith.constant 1.000000e+00 : f32
    %373 = vector.broadcast %cst_76 : f32 to vector<2x32xf32>
    %374 = arith.addf %373, %372 : vector<2x32xf32>
    %375 = arith.divf %373, %374 : vector<2x32xf32>
    %376 = arith.mulf %367, %350 : vector<2x32xf32>
    %377 = arith.mulf %361, %369 : vector<2x32xf32>
    %378 = arith.addf %376, %377 : vector<2x32xf32>
    %379 = math.tanh %378 : vector<2x32xf32>
    %380 = arith.mulf %375, %379 : vector<2x32xf32>
    %381 = vector.extract_strided_slice %220 {offsets = [12, 0], sizes = [2, 128], strides = [1, 1]} : vector<16x128xf32> to vector<2x128xf32>
    %cst_77 = arith.constant dense<0.000000e+00> : vector<2x128xf32>
    %382 = tpu.matmul %380, %222, %cst_77 {dimension_numbers = #tpu.dot_dimension_numbers<[1], [0], [0], [1], [0, 0, 1, 1], [], []>} : vector<2x32xf32>, vector<32x128xf32>, vector<2x128xf32> -> vector<2x128xf32>
    %383 = arith.addf %381, %382 : vector<2x128xf32>
    %384 = vector.extract_strided_slice %383 {offsets = [0, 0], sizes = [2, 32], strides = [1, 1]} : vector<2x128xf32> to vector<2x32xf32>
    %385 = arith.negf %384 : vector<2x32xf32>
    %386 = math.exp %385 : vector<2x32xf32>
    %cst_78 = arith.constant 1.000000e+00 : f32
    %387 = vector.broadcast %cst_78 : f32 to vector<2x32xf32>
    %388 = arith.addf %387, %386 : vector<2x32xf32>
    %389 = arith.divf %387, %388 : vector<2x32xf32>
    %390 = vector.extract_strided_slice %383 {offsets = [0, 32], sizes = [2, 32], strides = [1, 1]} : vector<2x128xf32> to vector<2x32xf32>
    %391 = arith.negf %390 : vector<2x32xf32>
    %392 = math.exp %391 : vector<2x32xf32>
    %cst_79 = arith.constant 1.000000e+00 : f32
    %393 = vector.broadcast %cst_79 : f32 to vector<2x32xf32>
    %394 = arith.addf %393, %392 : vector<2x32xf32>
    %395 = arith.divf %393, %394 : vector<2x32xf32>
    %396 = vector.extract_strided_slice %383 {offsets = [0, 64], sizes = [2, 32], strides = [1, 1]} : vector<2x128xf32> to vector<2x32xf32>
    %397 = math.tanh %396 : vector<2x32xf32>
    %398 = vector.extract_strided_slice %383 {offsets = [0, 96], sizes = [2, 32], strides = [1, 1]} : vector<2x128xf32> to vector<2x32xf32>
    %399 = arith.negf %398 : vector<2x32xf32>
    %400 = math.exp %399 : vector<2x32xf32>
    %cst_80 = arith.constant 1.000000e+00 : f32
    %401 = vector.broadcast %cst_80 : f32 to vector<2x32xf32>
    %402 = arith.addf %401, %400 : vector<2x32xf32>
    %403 = arith.divf %401, %402 : vector<2x32xf32>
    %404 = arith.mulf %395, %378 : vector<2x32xf32>
    %405 = arith.mulf %389, %397 : vector<2x32xf32>
    %406 = arith.addf %404, %405 : vector<2x32xf32>
    %407 = math.tanh %406 : vector<2x32xf32>
    %408 = arith.mulf %403, %407 : vector<2x32xf32>
    %409 = vector.extract_strided_slice %220 {offsets = [14, 0], sizes = [2, 128], strides = [1, 1]} : vector<16x128xf32> to vector<2x128xf32>
    %cst_81 = arith.constant dense<0.000000e+00> : vector<2x128xf32>
    %410 = tpu.matmul %408, %222, %cst_81 {dimension_numbers = #tpu.dot_dimension_numbers<[1], [0], [0], [1], [0, 0, 1, 1], [], []>} : vector<2x32xf32>, vector<32x128xf32>, vector<2x128xf32> -> vector<2x128xf32>
    %411 = arith.addf %409, %410 : vector<2x128xf32>
    %412 = vector.extract_strided_slice %411 {offsets = [0, 0], sizes = [2, 32], strides = [1, 1]} : vector<2x128xf32> to vector<2x32xf32>
    %413 = arith.negf %412 : vector<2x32xf32>
    %414 = math.exp %413 : vector<2x32xf32>
    %cst_82 = arith.constant 1.000000e+00 : f32
    %415 = vector.broadcast %cst_82 : f32 to vector<2x32xf32>
    %416 = arith.addf %415, %414 : vector<2x32xf32>
    %417 = arith.divf %415, %416 : vector<2x32xf32>
    %418 = vector.extract_strided_slice %411 {offsets = [0, 32], sizes = [2, 32], strides = [1, 1]} : vector<2x128xf32> to vector<2x32xf32>
    %419 = arith.negf %418 : vector<2x32xf32>
    %420 = math.exp %419 : vector<2x32xf32>
    %cst_83 = arith.constant 1.000000e+00 : f32
    %421 = vector.broadcast %cst_83 : f32 to vector<2x32xf32>
    %422 = arith.addf %421, %420 : vector<2x32xf32>
    %423 = arith.divf %421, %422 : vector<2x32xf32>
    %424 = vector.extract_strided_slice %411 {offsets = [0, 64], sizes = [2, 32], strides = [1, 1]} : vector<2x128xf32> to vector<2x32xf32>
    %425 = math.tanh %424 : vector<2x32xf32>
    %426 = vector.extract_strided_slice %411 {offsets = [0, 96], sizes = [2, 32], strides = [1, 1]} : vector<2x128xf32> to vector<2x32xf32>
    %427 = arith.negf %426 : vector<2x32xf32>
    %428 = math.exp %427 : vector<2x32xf32>
    %cst_84 = arith.constant 1.000000e+00 : f32
    %429 = vector.broadcast %cst_84 : f32 to vector<2x32xf32>
    %430 = arith.addf %429, %428 : vector<2x32xf32>
    %431 = arith.divf %429, %430 : vector<2x32xf32>
    %432 = arith.mulf %423, %406 : vector<2x32xf32>
    %433 = arith.mulf %417, %425 : vector<2x32xf32>
    %434 = arith.addf %432, %433 : vector<2x32xf32>
    %435 = math.tanh %434 : vector<2x32xf32>
    %436 = arith.mulf %431, %435 : vector<2x32xf32>
    %c0_85 = arith.constant 0 : index
    %c0_86 = arith.constant 0 : index
    %437 = vector.load %arg12[%c0_85, %c0_86] : memref<32x128xf32, #tpu.memory_space<vmem>>, vector<32x128xf32>
    %438 = vector.extract_strided_slice %221 {offsets = [14, 0], sizes = [2, 128], strides = [1, 1]} : vector<16x128xf32> to vector<2x128xf32>
    %439 = vector.extract_strided_slice %438 {offsets = [0, 0], sizes = [2, 32], strides = [1, 1]} : vector<2x128xf32> to vector<2x32xf32>
    %440 = arith.negf %439 : vector<2x32xf32>
    %441 = math.exp %440 : vector<2x32xf32>
    %cst_87 = arith.constant 1.000000e+00 : f32
    %442 = vector.broadcast %cst_87 : f32 to vector<2x32xf32>
    %443 = arith.addf %442, %441 : vector<2x32xf32>
    %444 = arith.divf %442, %443 : vector<2x32xf32>
    %445 = vector.extract_strided_slice %438 {offsets = [0, 64], sizes = [2, 32], strides = [1, 1]} : vector<2x128xf32> to vector<2x32xf32>
    %446 = math.tanh %445 : vector<2x32xf32>
    %447 = vector.extract_strided_slice %438 {offsets = [0, 96], sizes = [2, 32], strides = [1, 1]} : vector<2x128xf32> to vector<2x32xf32>
    %448 = arith.negf %447 : vector<2x32xf32>
    %449 = math.exp %448 : vector<2x32xf32>
    %cst_88 = arith.constant 1.000000e+00 : f32
    %450 = vector.broadcast %cst_88 : f32 to vector<2x32xf32>
    %451 = arith.addf %450, %449 : vector<2x32xf32>
    %452 = arith.divf %450, %451 : vector<2x32xf32>
    %453 = arith.mulf %444, %446 : vector<2x32xf32>
    %454 = math.tanh %453 : vector<2x32xf32>
    %455 = arith.mulf %452, %454 : vector<2x32xf32>
    %456 = vector.extract_strided_slice %221 {offsets = [12, 0], sizes = [2, 128], strides = [1, 1]} : vector<16x128xf32> to vector<2x128xf32>
    %cst_89 = arith.constant dense<0.000000e+00> : vector<2x128xf32>
    %457 = tpu.matmul %455, %437, %cst_89 {dimension_numbers = #tpu.dot_dimension_numbers<[1], [0], [0], [1], [0, 0, 1, 1], [], []>} : vector<2x32xf32>, vector<32x128xf32>, vector<2x128xf32> -> vector<2x128xf32>
    %458 = arith.addf %456, %457 : vector<2x128xf32>
    %459 = vector.extract_strided_slice %458 {offsets = [0, 0], sizes = [2, 32], strides = [1, 1]} : vector<2x128xf32> to vector<2x32xf32>
    %460 = arith.negf %459 : vector<2x32xf32>
    %461 = math.exp %460 : vector<2x32xf32>
    %cst_90 = arith.constant 1.000000e+00 : f32
    %462 = vector.broadcast %cst_90 : f32 to vector<2x32xf32>
    %463 = arith.addf %462, %461 : vector<2x32xf32>
    %464 = arith.divf %462, %463 : vector<2x32xf32>
    %465 = vector.extract_strided_slice %458 {offsets = [0, 32], sizes = [2, 32], strides = [1, 1]} : vector<2x128xf32> to vector<2x32xf32>
    %466 = arith.negf %465 : vector<2x32xf32>
    %467 = math.exp %466 : vector<2x32xf32>
    %cst_91 = arith.constant 1.000000e+00 : f32
    %468 = vector.broadcast %cst_91 : f32 to vector<2x32xf32>
    %469 = arith.addf %468, %467 : vector<2x32xf32>
    %470 = arith.divf %468, %469 : vector<2x32xf32>
    %471 = vector.extract_strided_slice %458 {offsets = [0, 64], sizes = [2, 32], strides = [1, 1]} : vector<2x128xf32> to vector<2x32xf32>
    %472 = math.tanh %471 : vector<2x32xf32>
    %473 = vector.extract_strided_slice %458 {offsets = [0, 96], sizes = [2, 32], strides = [1, 1]} : vector<2x128xf32> to vector<2x32xf32>
    %474 = arith.negf %473 : vector<2x32xf32>
    %475 = math.exp %474 : vector<2x32xf32>
    %cst_92 = arith.constant 1.000000e+00 : f32
    %476 = vector.broadcast %cst_92 : f32 to vector<2x32xf32>
    %477 = arith.addf %476, %475 : vector<2x32xf32>
    %478 = arith.divf %476, %477 : vector<2x32xf32>
    %479 = arith.mulf %470, %453 : vector<2x32xf32>
    %480 = arith.mulf %464, %472 : vector<2x32xf32>
    %481 = arith.addf %479, %480 : vector<2x32xf32>
    %482 = math.tanh %481 : vector<2x32xf32>
    %483 = arith.mulf %478, %482 : vector<2x32xf32>
    %484 = vector.extract_strided_slice %221 {offsets = [10, 0], sizes = [2, 128], strides = [1, 1]} : vector<16x128xf32> to vector<2x128xf32>
    %cst_93 = arith.constant dense<0.000000e+00> : vector<2x128xf32>
    %485 = tpu.matmul %483, %437, %cst_93 {dimension_numbers = #tpu.dot_dimension_numbers<[1], [0], [0], [1], [0, 0, 1, 1], [], []>} : vector<2x32xf32>, vector<32x128xf32>, vector<2x128xf32> -> vector<2x128xf32>
    %486 = arith.addf %484, %485 : vector<2x128xf32>
    %487 = vector.extract_strided_slice %486 {offsets = [0, 0], sizes = [2, 32], strides = [1, 1]} : vector<2x128xf32> to vector<2x32xf32>
    %488 = arith.negf %487 : vector<2x32xf32>
    %489 = math.exp %488 : vector<2x32xf32>
    %cst_94 = arith.constant 1.000000e+00 : f32
    %490 = vector.broadcast %cst_94 : f32 to vector<2x32xf32>
    %491 = arith.addf %490, %489 : vector<2x32xf32>
    %492 = arith.divf %490, %491 : vector<2x32xf32>
    %493 = vector.extract_strided_slice %486 {offsets = [0, 32], sizes = [2, 32], strides = [1, 1]} : vector<2x128xf32> to vector<2x32xf32>
    %494 = arith.negf %493 : vector<2x32xf32>
    %495 = math.exp %494 : vector<2x32xf32>
    %cst_95 = arith.constant 1.000000e+00 : f32
    %496 = vector.broadcast %cst_95 : f32 to vector<2x32xf32>
    %497 = arith.addf %496, %495 : vector<2x32xf32>
    %498 = arith.divf %496, %497 : vector<2x32xf32>
    %499 = vector.extract_strided_slice %486 {offsets = [0, 64], sizes = [2, 32], strides = [1, 1]} : vector<2x128xf32> to vector<2x32xf32>
    %500 = math.tanh %499 : vector<2x32xf32>
    %501 = vector.extract_strided_slice %486 {offsets = [0, 96], sizes = [2, 32], strides = [1, 1]} : vector<2x128xf32> to vector<2x32xf32>
    %502 = arith.negf %501 : vector<2x32xf32>
    %503 = math.exp %502 : vector<2x32xf32>
    %cst_96 = arith.constant 1.000000e+00 : f32
    %504 = vector.broadcast %cst_96 : f32 to vector<2x32xf32>
    %505 = arith.addf %504, %503 : vector<2x32xf32>
    %506 = arith.divf %504, %505 : vector<2x32xf32>
    %507 = arith.mulf %498, %481 : vector<2x32xf32>
    %508 = arith.mulf %492, %500 : vector<2x32xf32>
    %509 = arith.addf %507, %508 : vector<2x32xf32>
    %510 = math.tanh %509 : vector<2x32xf32>
    %511 = arith.mulf %506, %510 : vector<2x32xf32>
    %512 = vector.extract_strided_slice %221 {offsets = [8, 0], sizes = [2, 128], strides = [1, 1]} : vector<16x128xf32> to vector<2x128xf32>
    %cst_97 = arith.constant dense<0.000000e+00> : vector<2x128xf32>
    %513 = tpu.matmul %511, %437, %cst_97 {dimension_numbers = #tpu.dot_dimension_numbers<[1], [0], [0], [1], [0, 0, 1, 1], [], []>} : vector<2x32xf32>, vector<32x128xf32>, vector<2x128xf32> -> vector<2x128xf32>
    %514 = arith.addf %512, %513 : vector<2x128xf32>
    %515 = vector.extract_strided_slice %514 {offsets = [0, 0], sizes = [2, 32], strides = [1, 1]} : vector<2x128xf32> to vector<2x32xf32>
    %516 = arith.negf %515 : vector<2x32xf32>
    %517 = math.exp %516 : vector<2x32xf32>
    %cst_98 = arith.constant 1.000000e+00 : f32
    %518 = vector.broadcast %cst_98 : f32 to vector<2x32xf32>
    %519 = arith.addf %518, %517 : vector<2x32xf32>
    %520 = arith.divf %518, %519 : vector<2x32xf32>
    %521 = vector.extract_strided_slice %514 {offsets = [0, 32], sizes = [2, 32], strides = [1, 1]} : vector<2x128xf32> to vector<2x32xf32>
    %522 = arith.negf %521 : vector<2x32xf32>
    %523 = math.exp %522 : vector<2x32xf32>
    %cst_99 = arith.constant 1.000000e+00 : f32
    %524 = vector.broadcast %cst_99 : f32 to vector<2x32xf32>
    %525 = arith.addf %524, %523 : vector<2x32xf32>
    %526 = arith.divf %524, %525 : vector<2x32xf32>
    %527 = vector.extract_strided_slice %514 {offsets = [0, 64], sizes = [2, 32], strides = [1, 1]} : vector<2x128xf32> to vector<2x32xf32>
    %528 = math.tanh %527 : vector<2x32xf32>
    %529 = vector.extract_strided_slice %514 {offsets = [0, 96], sizes = [2, 32], strides = [1, 1]} : vector<2x128xf32> to vector<2x32xf32>
    %530 = arith.negf %529 : vector<2x32xf32>
    %531 = math.exp %530 : vector<2x32xf32>
    %cst_100 = arith.constant 1.000000e+00 : f32
    %532 = vector.broadcast %cst_100 : f32 to vector<2x32xf32>
    %533 = arith.addf %532, %531 : vector<2x32xf32>
    %534 = arith.divf %532, %533 : vector<2x32xf32>
    %535 = arith.mulf %526, %509 : vector<2x32xf32>
    %536 = arith.mulf %520, %528 : vector<2x32xf32>
    %537 = arith.addf %535, %536 : vector<2x32xf32>
    %538 = math.tanh %537 : vector<2x32xf32>
    %539 = arith.mulf %534, %538 : vector<2x32xf32>
    %540 = vector.extract_strided_slice %221 {offsets = [6, 0], sizes = [2, 128], strides = [1, 1]} : vector<16x128xf32> to vector<2x128xf32>
    %cst_101 = arith.constant dense<0.000000e+00> : vector<2x128xf32>
    %541 = tpu.matmul %539, %437, %cst_101 {dimension_numbers = #tpu.dot_dimension_numbers<[1], [0], [0], [1], [0, 0, 1, 1], [], []>} : vector<2x32xf32>, vector<32x128xf32>, vector<2x128xf32> -> vector<2x128xf32>
    %542 = arith.addf %540, %541 : vector<2x128xf32>
    %543 = vector.extract_strided_slice %542 {offsets = [0, 0], sizes = [2, 32], strides = [1, 1]} : vector<2x128xf32> to vector<2x32xf32>
    %544 = arith.negf %543 : vector<2x32xf32>
    %545 = math.exp %544 : vector<2x32xf32>
    %cst_102 = arith.constant 1.000000e+00 : f32
    %546 = vector.broadcast %cst_102 : f32 to vector<2x32xf32>
    %547 = arith.addf %546, %545 : vector<2x32xf32>
    %548 = arith.divf %546, %547 : vector<2x32xf32>
    %549 = vector.extract_strided_slice %542 {offsets = [0, 32], sizes = [2, 32], strides = [1, 1]} : vector<2x128xf32> to vector<2x32xf32>
    %550 = arith.negf %549 : vector<2x32xf32>
    %551 = math.exp %550 : vector<2x32xf32>
    %cst_103 = arith.constant 1.000000e+00 : f32
    %552 = vector.broadcast %cst_103 : f32 to vector<2x32xf32>
    %553 = arith.addf %552, %551 : vector<2x32xf32>
    %554 = arith.divf %552, %553 : vector<2x32xf32>
    %555 = vector.extract_strided_slice %542 {offsets = [0, 64], sizes = [2, 32], strides = [1, 1]} : vector<2x128xf32> to vector<2x32xf32>
    %556 = math.tanh %555 : vector<2x32xf32>
    %557 = vector.extract_strided_slice %542 {offsets = [0, 96], sizes = [2, 32], strides = [1, 1]} : vector<2x128xf32> to vector<2x32xf32>
    %558 = arith.negf %557 : vector<2x32xf32>
    %559 = math.exp %558 : vector<2x32xf32>
    %cst_104 = arith.constant 1.000000e+00 : f32
    %560 = vector.broadcast %cst_104 : f32 to vector<2x32xf32>
    %561 = arith.addf %560, %559 : vector<2x32xf32>
    %562 = arith.divf %560, %561 : vector<2x32xf32>
    %563 = arith.mulf %554, %537 : vector<2x32xf32>
    %564 = arith.mulf %548, %556 : vector<2x32xf32>
    %565 = arith.addf %563, %564 : vector<2x32xf32>
    %566 = math.tanh %565 : vector<2x32xf32>
    %567 = arith.mulf %562, %566 : vector<2x32xf32>
    %568 = vector.extract_strided_slice %221 {offsets = [4, 0], sizes = [2, 128], strides = [1, 1]} : vector<16x128xf32> to vector<2x128xf32>
    %cst_105 = arith.constant dense<0.000000e+00> : vector<2x128xf32>
    %569 = tpu.matmul %567, %437, %cst_105 {dimension_numbers = #tpu.dot_dimension_numbers<[1], [0], [0], [1], [0, 0, 1, 1], [], []>} : vector<2x32xf32>, vector<32x128xf32>, vector<2x128xf32> -> vector<2x128xf32>
    %570 = arith.addf %568, %569 : vector<2x128xf32>
    %571 = vector.extract_strided_slice %570 {offsets = [0, 0], sizes = [2, 32], strides = [1, 1]} : vector<2x128xf32> to vector<2x32xf32>
    %572 = arith.negf %571 : vector<2x32xf32>
    %573 = math.exp %572 : vector<2x32xf32>
    %cst_106 = arith.constant 1.000000e+00 : f32
    %574 = vector.broadcast %cst_106 : f32 to vector<2x32xf32>
    %575 = arith.addf %574, %573 : vector<2x32xf32>
    %576 = arith.divf %574, %575 : vector<2x32xf32>
    %577 = vector.extract_strided_slice %570 {offsets = [0, 32], sizes = [2, 32], strides = [1, 1]} : vector<2x128xf32> to vector<2x32xf32>
    %578 = arith.negf %577 : vector<2x32xf32>
    %579 = math.exp %578 : vector<2x32xf32>
    %cst_107 = arith.constant 1.000000e+00 : f32
    %580 = vector.broadcast %cst_107 : f32 to vector<2x32xf32>
    %581 = arith.addf %580, %579 : vector<2x32xf32>
    %582 = arith.divf %580, %581 : vector<2x32xf32>
    %583 = vector.extract_strided_slice %570 {offsets = [0, 64], sizes = [2, 32], strides = [1, 1]} : vector<2x128xf32> to vector<2x32xf32>
    %584 = math.tanh %583 : vector<2x32xf32>
    %585 = vector.extract_strided_slice %570 {offsets = [0, 96], sizes = [2, 32], strides = [1, 1]} : vector<2x128xf32> to vector<2x32xf32>
    %586 = arith.negf %585 : vector<2x32xf32>
    %587 = math.exp %586 : vector<2x32xf32>
    %cst_108 = arith.constant 1.000000e+00 : f32
    %588 = vector.broadcast %cst_108 : f32 to vector<2x32xf32>
    %589 = arith.addf %588, %587 : vector<2x32xf32>
    %590 = arith.divf %588, %589 : vector<2x32xf32>
    %591 = arith.mulf %582, %565 : vector<2x32xf32>
    %592 = arith.mulf %576, %584 : vector<2x32xf32>
    %593 = arith.addf %591, %592 : vector<2x32xf32>
    %594 = math.tanh %593 : vector<2x32xf32>
    %595 = arith.mulf %590, %594 : vector<2x32xf32>
    %596 = vector.extract_strided_slice %221 {offsets = [2, 0], sizes = [2, 128], strides = [1, 1]} : vector<16x128xf32> to vector<2x128xf32>
    %cst_109 = arith.constant dense<0.000000e+00> : vector<2x128xf32>
    %597 = tpu.matmul %595, %437, %cst_109 {dimension_numbers = #tpu.dot_dimension_numbers<[1], [0], [0], [1], [0, 0, 1, 1], [], []>} : vector<2x32xf32>, vector<32x128xf32>, vector<2x128xf32> -> vector<2x128xf32>
    %598 = arith.addf %596, %597 : vector<2x128xf32>
    %599 = vector.extract_strided_slice %598 {offsets = [0, 0], sizes = [2, 32], strides = [1, 1]} : vector<2x128xf32> to vector<2x32xf32>
    %600 = arith.negf %599 : vector<2x32xf32>
    %601 = math.exp %600 : vector<2x32xf32>
    %cst_110 = arith.constant 1.000000e+00 : f32
    %602 = vector.broadcast %cst_110 : f32 to vector<2x32xf32>
    %603 = arith.addf %602, %601 : vector<2x32xf32>
    %604 = arith.divf %602, %603 : vector<2x32xf32>
    %605 = vector.extract_strided_slice %598 {offsets = [0, 32], sizes = [2, 32], strides = [1, 1]} : vector<2x128xf32> to vector<2x32xf32>
    %606 = arith.negf %605 : vector<2x32xf32>
    %607 = math.exp %606 : vector<2x32xf32>
    %cst_111 = arith.constant 1.000000e+00 : f32
    %608 = vector.broadcast %cst_111 : f32 to vector<2x32xf32>
    %609 = arith.addf %608, %607 : vector<2x32xf32>
    %610 = arith.divf %608, %609 : vector<2x32xf32>
    %611 = vector.extract_strided_slice %598 {offsets = [0, 64], sizes = [2, 32], strides = [1, 1]} : vector<2x128xf32> to vector<2x32xf32>
    %612 = math.tanh %611 : vector<2x32xf32>
    %613 = vector.extract_strided_slice %598 {offsets = [0, 96], sizes = [2, 32], strides = [1, 1]} : vector<2x128xf32> to vector<2x32xf32>
    %614 = arith.negf %613 : vector<2x32xf32>
    %615 = math.exp %614 : vector<2x32xf32>
    %cst_112 = arith.constant 1.000000e+00 : f32
    %616 = vector.broadcast %cst_112 : f32 to vector<2x32xf32>
    %617 = arith.addf %616, %615 : vector<2x32xf32>
    %618 = arith.divf %616, %617 : vector<2x32xf32>
    %619 = arith.mulf %610, %593 : vector<2x32xf32>
    %620 = arith.mulf %604, %612 : vector<2x32xf32>
    %621 = arith.addf %619, %620 : vector<2x32xf32>
    %622 = math.tanh %621 : vector<2x32xf32>
    %623 = arith.mulf %618, %622 : vector<2x32xf32>
    %624 = vector.extract_strided_slice %221 {offsets = [0, 0], sizes = [2, 128], strides = [1, 1]} : vector<16x128xf32> to vector<2x128xf32>
    %cst_113 = arith.constant dense<0.000000e+00> : vector<2x128xf32>
    %625 = tpu.matmul %623, %437, %cst_113 {dimension_numbers = #tpu.dot_dimension_numbers<[1], [0], [0], [1], [0, 0, 1, 1], [], []>} : vector<2x32xf32>, vector<32x128xf32>, vector<2x128xf32> -> vector<2x128xf32>
    %626 = arith.addf %624, %625 : vector<2x128xf32>
    %627 = vector.extract_strided_slice %626 {offsets = [0, 0], sizes = [2, 32], strides = [1, 1]} : vector<2x128xf32> to vector<2x32xf32>
    %628 = arith.negf %627 : vector<2x32xf32>
    %629 = math.exp %628 : vector<2x32xf32>
    %cst_114 = arith.constant 1.000000e+00 : f32
    %630 = vector.broadcast %cst_114 : f32 to vector<2x32xf32>
    %631 = arith.addf %630, %629 : vector<2x32xf32>
    %632 = arith.divf %630, %631 : vector<2x32xf32>
    %633 = vector.extract_strided_slice %626 {offsets = [0, 32], sizes = [2, 32], strides = [1, 1]} : vector<2x128xf32> to vector<2x32xf32>
    %634 = arith.negf %633 : vector<2x32xf32>
    %635 = math.exp %634 : vector<2x32xf32>
    %cst_115 = arith.constant 1.000000e+00 : f32
    %636 = vector.broadcast %cst_115 : f32 to vector<2x32xf32>
    %637 = arith.addf %636, %635 : vector<2x32xf32>
    %638 = arith.divf %636, %637 : vector<2x32xf32>
    %639 = vector.extract_strided_slice %626 {offsets = [0, 64], sizes = [2, 32], strides = [1, 1]} : vector<2x128xf32> to vector<2x32xf32>
    %640 = math.tanh %639 : vector<2x32xf32>
    %641 = vector.extract_strided_slice %626 {offsets = [0, 96], sizes = [2, 32], strides = [1, 1]} : vector<2x128xf32> to vector<2x32xf32>
    %642 = arith.negf %641 : vector<2x32xf32>
    %643 = math.exp %642 : vector<2x32xf32>
    %cst_116 = arith.constant 1.000000e+00 : f32
    %644 = vector.broadcast %cst_116 : f32 to vector<2x32xf32>
    %645 = arith.addf %644, %643 : vector<2x32xf32>
    %646 = arith.divf %644, %645 : vector<2x32xf32>
    %647 = arith.mulf %638, %621 : vector<2x32xf32>
    %648 = arith.mulf %632, %640 : vector<2x32xf32>
    %649 = arith.addf %647, %648 : vector<2x32xf32>
    %650 = math.tanh %649 : vector<2x32xf32>
    %651 = arith.mulf %646, %650 : vector<2x32xf32>
    %652 = tpu.concatenate %240, %268, %296, %324, %352, %380, %408, %436 in 0 : vector<2x32xf32>, vector<2x32xf32>, vector<2x32xf32>, vector<2x32xf32>, vector<2x32xf32>, vector<2x32xf32>, vector<2x32xf32>, vector<2x32xf32> -> vector<16x32xf32>
    %653 = tpu.concatenate %651, %623, %595, %567, %539, %511, %483, %455 in 0 : vector<2x32xf32>, vector<2x32xf32>, vector<2x32xf32>, vector<2x32xf32>, vector<2x32xf32>, vector<2x32xf32>, vector<2x32xf32>, vector<2x32xf32> -> vector<16x32xf32>
    %c0_117 = arith.constant 0 : index
    %c0_118 = arith.constant 0 : index
    %654 = vector.load %arg13[%c0_117, %c0_118] : memref<32x32xf32, #tpu.memory_space<vmem>>, vector<32x32xf32>
    %cst_119 = arith.constant dense<0.000000e+00> : vector<16x32xf32>
    %655 = tpu.matmul %652, %654, %cst_119 {dimension_numbers = #tpu.dot_dimension_numbers<[1], [0], [0], [1], [0, 0, 1, 1], [], []>} : vector<16x32xf32>, vector<32x32xf32>, vector<16x32xf32> -> vector<16x32xf32>
    %c0_120 = arith.constant 0 : index
    %c0_121 = arith.constant 0 : index
    %656 = vector.load %arg14[%c0_120, %c0_121] : memref<32x32xf32, #tpu.memory_space<vmem>>, vector<32x32xf32>
    %cst_122 = arith.constant dense<0.000000e+00> : vector<16x32xf32>
    %657 = tpu.matmul %653, %656, %cst_122 {dimension_numbers = #tpu.dot_dimension_numbers<[1], [0], [0], [1], [0, 0, 1, 1], [], []>} : vector<16x32xf32>, vector<32x32xf32>, vector<16x32xf32> -> vector<16x32xf32>
    %658 = arith.addf %655, %657 : vector<16x32xf32>
    %c0_123 = arith.constant 0 : index
    %c0_124 = arith.constant 0 : index
    %659 = vector.load %arg15[%c0_123, %c0_124] : memref<1x32xf32, #tpu.memory_space<vmem>>, vector<1x32xf32>
    %660 = vector.broadcast %659 : vector<1x32xf32> to vector<16x32xf32>
    %661 = arith.addf %658, %660 : vector<16x32xf32>
    %c0_125 = arith.constant 0 : index
    %c0_126 = arith.constant 0 : index
    %662 = vector.load %arg16[%c0_125, %c0_126] : memref<1x32xf32, #tpu.memory_space<vmem>>, vector<1x32xf32>
    %c0_127 = arith.constant 0 : index
    %c0_128 = arith.constant 0 : index
    %663 = vector.load %arg17[%c0_127, %c0_128] : memref<1x32xf32, #tpu.memory_space<vmem>>, vector<1x32xf32>
    %cst_129 = arith.constant dense<0.000000e+00> : vector<16xf32>
    %664 = vector.multi_reduction <add>, %661, %cst_129 [1] : vector<16x32xf32> to vector<16xf32>
    %665 = vector.shape_cast %664 : vector<16xf32> to vector<16x1xf32>
    %cst_130 = arith.constant 3.200000e+01 : f32
    %666 = vector.broadcast %cst_130 : f32 to vector<16x1xf32>
    %667 = arith.divf %665, %666 : vector<16x1xf32>
    %668 = vector.broadcast %667 : vector<16x1xf32> to vector<16x32xf32>
    %669 = arith.subf %661, %668 : vector<16x32xf32>
    %670 = arith.mulf %669, %669 : vector<16x32xf32>
    %cst_131 = arith.constant dense<0.000000e+00> : vector<16xf32>
    %671 = vector.multi_reduction <add>, %670, %cst_131 [1] : vector<16x32xf32> to vector<16xf32>
    %672 = vector.shape_cast %671 : vector<16xf32> to vector<16x1xf32>
    %cst_132 = arith.constant 3.200000e+01 : f32
    %673 = vector.broadcast %cst_132 : f32 to vector<16x1xf32>
    %674 = arith.divf %672, %673 : vector<16x1xf32>
    %675 = vector.broadcast %667 : vector<16x1xf32> to vector<16x32xf32>
    %676 = arith.subf %661, %675 : vector<16x32xf32>
    %cst_133 = arith.constant 9.99999974E-6 : f32
    %677 = vector.broadcast %cst_133 : f32 to vector<16x1xf32>
    %678 = arith.addf %674, %677 : vector<16x1xf32>
    %679 = math.rsqrt %678 : vector<16x1xf32>
    %680 = vector.broadcast %679 : vector<16x1xf32> to vector<16x32xf32>
    %681 = arith.mulf %676, %680 : vector<16x32xf32>
    %682 = vector.broadcast %662 : vector<1x32xf32> to vector<16x32xf32>
    %683 = arith.mulf %681, %682 : vector<16x32xf32>
    %684 = vector.broadcast %663 : vector<1x32xf32> to vector<16x32xf32>
    %685 = arith.addf %683, %684 : vector<16x32xf32>
    %cst_134 = arith.constant 0.000000e+00 : f32
    %686 = vector.broadcast %cst_134 : f32 to vector<16x32xf32>
    %687 = arith.maximumf %685, %686 : vector<16x32xf32>
    %c0_135 = arith.constant 0 : index
    %c0_136 = arith.constant 0 : index
    %688 = vector.load %arg18[%c0_135, %c0_136] : memref<32x128xf32, #tpu.memory_space<vmem>>, vector<32x128xf32>
    %cst_137 = arith.constant dense<0.000000e+00> : vector<16x128xf32>
    %689 = tpu.matmul %687, %688, %cst_137 {dimension_numbers = #tpu.dot_dimension_numbers<[1], [0], [0], [1], [0, 0, 1, 1], [], []>} : vector<16x32xf32>, vector<32x128xf32>, vector<16x128xf32> -> vector<16x128xf32>
    %c0_138 = arith.constant 0 : index
    %c0_139 = arith.constant 0 : index
    %690 = vector.load %arg19[%c0_138, %c0_139] : memref<1x128xf32, #tpu.memory_space<vmem>>, vector<1x128xf32>
    %691 = vector.broadcast %690 : vector<1x128xf32> to vector<16x128xf32>
    %692 = arith.addf %689, %691 : vector<16x128xf32>
    %c0_140 = arith.constant 0 : index
    %c0_141 = arith.constant 0 : index
    %693 = vector.load %arg20[%c0_140, %c0_141] : memref<16x128xf32, #tpu.memory_space<vmem>>, vector<16x128xf32>
    tpu.vector_store %arg20[%c0_140, %c0_141], %692 {strides = array<i32>} : memref<16x128xf32, #tpu.memory_space<vmem>>, vector<16x128xf32>,
    return
  }
}

</mosaic_0001>

<bundles_post_ra>
// kernel: nernet_forward.1
= control target key start
LH: loop header
LB: loop body
LE: loop exit
PB: predicated region body
PF: predicated region fallthrough
CT: control target
= control target key end

     0   :  { %vm79_vm0 = vcmask 130048   ;;  %s4281_s24 = smov 96   ;;  %s4282_s27 = smov 48   ;;  %vm1301_vm1 = vcmask 261120   ;;  %vm4289_vm2 = vmmov 0   ;;  %vm3030_vm3 = vcmask 1041408   ;;  %s5136_s0 = inlined_call_operand.vmem [shape: f32[96,16], index: 0, kind: input, shape index: {}]   ;;  %s5137_s4 = inlined_call_operand.vmem [shape: f32[16,128], index: 4, kind: input, shape index: {}]   ;;  %s5138_s2 = inlined_call_operand.vmem [shape: f32[1,16], index: 2, kind: input, shape index: {}]   ;;  %s5139_s3 = inlined_call_operand.vmem [shape: f32[1,16], index: 3, kind: input, shape index: {}]   ;;  %s5140_s5 = inlined_call_operand.vmem [shape: f32[1,128], index: 5, kind: input, shape index: {}]   ;;  %s5141_s6 = inlined_call_operand.vmem [shape: f32[16,64], index: 6, kind: input, shape index: {}]   ;;  %s5142_s8 = inlined_call_operand.vmem [shape: f32[16,256], index: 8, kind: input, shape index: {}]   ;;  %s5143_s7 = inlined_call_operand.vmem [shape: f32[32,256], index: 7, kind: input, shape index: {}]   ;;  %s5144_s9 = inlined_call_operand.vmem [shape: f32[16,256], index: 9, kind: input, shape index: {}]   ;;  %s5145_s1 = inlined_call_operand.vmem [shape: f32[16,32], index: 1, kind: input, shape index: {}]   ;;  %s5146_s10 = inlined_call_operand.vmem [shape: f32[1,256], index: 10, kind: input, shape index: {}]   ;;  %s5147_s11 = inlined_call_operand.vmem [shape: f32[32,128], index: 11, kind: input, shape index: {}]   ;;  %s5148_s12 = inlined_call_operand.vmem [shape: f32[32,128], index: 12, kind: input, shape index: {}]   ;;  %s5149_s14 = inlined_call_operand.vmem [shape: f32[32,32], index: 14, kind: input, shape index: {}]   ;;  %s5150_s13 = inlined_call_operand.vmem [shape: f32[32,32], index: 13, kind: input, shape index: {}]   ;;  %s5151_s15 = inlined_call_operand.vmem [shape: f32[1,32], index: 15, kind: input, shape index: {}]   ;;  %s5152_s18 = inlined_call_operand.vmem [shape: f32[32,128], index: 18, kind: input, shape index: {}]   ;;  %s5153_s16 = inlined_call_operand.vmem [shape: f32[1,32], index: 16, kind: input, shape index: {}]   ;;  %s5154_s17 = inlined_call_operand.vmem [shape: f32[1,32], index: 17, kind: input, shape index: {}]   ;;  %s5155_s19 = inlined_call_operand.vmem [shape: f32[1,128], index: 19, kind: input, shape index: {}]   ;;  %s5156_s20 = inlined_call_operand.vmem [shape: f32[16,128], index: 20, kind: output, shape index: {}]  }
   0x1   :  { %5159 = sst [smem:[#allocation2_spill]] %s5136_s0  ;;  %s4285_s21 = smov 32   ;;  %vm3032_vm4 = vcmask 1043456   ;;  %vm3034_vm5 = vcmask 1045504  }
   0x2   :  { %5160 = sst [smem:[#allocation3_spill]] %s5137_s4  ;;  %s5164_s23 = sld [smem:[#allocation2_spill]] }
   0x3   :  { %5161 = sst [smem:[#allocation4_spill]] %s5138_s2  ;;  %s5165_s26 = sld [smem:[#allocation3_spill]] }
   0x4   :  { %5162 = sst [smem:[#allocation5_spill]] %s5139_s3 }
   0x5   :  { %5163 = sst [smem:[#allocation6_spill]] %s5140_s5  ;;  %s5166_s5 = sld [smem:[#allocation4_spill]] }
   0x6   :  { %s5167_s0 = sld [smem:[#allocation5_spill]]  ;;  %s5168_s22 = sld [smem:[#allocation6_spill]] }
   0x8   :  { %v65_v0 = vld [vmem:[%s5164_s23] sm:$0xff]  ;;  %v66_v1 = vld [vmem:[%s5164_s23 + $0x8] sm:$0xff]  ;;  %v4414_v17 = vld [vmem:[%s5164_s23 + $0x10] sm:$0xff] }
   0x9   :  { %v80_v2 = vsel %vm79_vm0, %v65_v0, 0.0  ;;  %v83_v3 = vsel %vm79_vm0, %v66_v1, 0.0  ;;  %v273_v14 = vld [vmem:[%s5165_s26] sm:$0xff]  ;;  %v274_v15 = vld [vmem:[%s5165_s26 + $0x8] sm:$0xff]  ;;  %v68_v19 = vld [vmem:[%s5164_s23 + $0x18] sm:$0xff]  ;;  %v86_v20 = vsel %vm79_vm0, %v4414_v17, 0.0 }
   0xa   :  { %81 = vadd.xlane.f32.xlu0 %v80_v2  ;;  %v3828_v16 = vpack.c.bf16 %v274_v15, %v273_v14  ;;  %v4419_v18 = vld [vmem:[%s5164_s23 + $0x20] sm:$0xff]  ;;  %v4431_v22 = vld [vmem:[%s5164_s23 + $0x28] sm:$0xff]  ;;  %v89_v23 = vsel %vm79_vm0, %v68_v19, 0.0  ;;  %v4439_v25 = vld [vmem:[%s5164_s23 + $0x30] sm:$0xff] }
   0xb   :  { %v92_v21 = vsel %vm79_vm0, %v4419_v18, 0.0  ;;  %v95_v24 = vsel %vm79_vm0, %v4431_v22, 0.0  ;;  %v4444_v26 = vld [vmem:[%s5164_s23 + $0x38] sm:$0xff]  ;;  %v98_v27 = vsel %vm79_vm0, %v4439_v25, 0.0  ;;  %v4453_v36 = vld [vmem:[%s5166_s5] ss:$0 sm:$0xff] }
   0xc   :  { %3829 = vmatprep.subr.bf16.mxu0 %v3828_v16  ;;  %3976 = vmatprep.subr.bf16.mxu1 %v3828_v16  ;;  %v101_v28 = vsel %vm79_vm0, %v4444_v26, 0.0  ;;  %v4458_v38 = vld [vmem:[%s5167_s0] ss:$0 sm:$0xff]  ;;  %v74_v2 = vld [vmem:[%s5164_s23 + $0x48] sm:$0xff]  ;;  %s4284_s0 = smov 16  }
   0xd   :  { %3831 = vmatpush3.bf16.msra.mxu0 %v3828_v16  ;;  %3977 = vmatpush3.bf16.msra.mxu1 %v3828_v16  ;;  %v4469_v45 = vld [vmem:[%s5168_s22] ss:$0 sm:$0xff] }
   0xe   :  { %84 = vadd.xlane.f32.xlu0 %v83_v3  ;;  %v73_v60 = vld [vmem:[%s5164_s23 + $0x40] sm:$0xff] }
   0xf   :  { %v104_v62 = vsel %vm79_vm0, %v73_v60, 0.0 }
  0x12   :  { %93 = vadd.xlane.f32.xlu0 %v92_v21 }
  0x16   :  { %96 = vadd.xlane.f32.xlu0 %v95_v24 }
  0x1a   :  { %99 = vadd.xlane.f32.xlu0 %v98_v27 }
  0x97   :  { %v82_v4 = vpop.xlane.xlu0 %81 }
  0x98   :  { %v117_v5 = vmul.f32 0.0625, %v82_v4 }
  0x9a   :  { %v129_v6 = vsub.f32 %v65_v0, %v117_v5 }
  0x9b   :  { %v85_v7 = vpop.xlane.xlu0 %84 }
  0x9c   :  { %v118_v8 = vmul.f32 0.0625, %v85_v7  ;;  %v141_v9 = vmul.f32 %v129_v6, %v129_v6 }
  0x9e   :  { %v130_v10 = vsub.f32 %v66_v1, %v118_v8  ;;  %v153_v11 = vsel %vm79_vm0, %v141_v9, 0.0 }
  0x9f   :  { %154 = vadd.xlane.f32.xlu1 %v153_v11  ;;  %v94_v53 = vpop.xlane.xlu0 %93 }
  0xa0   :  { %v142_v12 = vmul.f32 %v130_v10, %v130_v10  ;;  %v121_v59 = vmul.f32 0.0625, %v94_v53 }
  0xa2   :  { %v156_v13 = vsel %vm79_vm0, %v142_v12, 0.0  ;;  %v4485_v1 = vsub.f32 %v4419_v18, %v121_v59 }
  0xa3   :  { %157 = vadd.xlane.f32.xlu1 %v156_v13  ;;  %v97_v55 = vpop.xlane.xlu0 %96 }
  0xa4   :  { %v122_v63 = vmul.f32 0.0625, %v97_v55 }
  0xa6   :  { %v4493_v5 = vsub.f32 %v4431_v22, %v122_v63 }
  0xa7   :  { %87 = vadd.xlane.f32.xlu1 %v86_v20  ;;  %v100_v61 = vpop.xlane.xlu0 %99 }
  0xa8   :  { %v123_v4 = vmul.f32 0.0625, %v100_v61  ;;  %v146_v13 = vmul.f32 %v4493_v5, %v4493_v5 }
  0xaa   :  { %v4498_v8 = vsub.f32 %v4439_v25, %v123_v4  ;;  %v168_v15 = vsel %vm79_vm0, %v146_v13, 0.0 }
  0xab   :  { %90 = vadd.xlane.f32.xlu1 %v89_v23 }
  0xac   :  { %v147_v14 = vmul.f32 %v4498_v8, %v4498_v8 }
  0xae   :  { %v171_v16 = vsel %vm79_vm0, %v147_v14, 0.0 }
  0xaf   :  { %102 = vadd.xlane.f32.xlu1 %v101_v28 }
 0x12c   :  { %v155_v29 = vpop.xlane.xlu1 %154 }
 0x12d   :  { %v189_v30 = vmul.f32 0.0625, %v155_v29 }
 0x12f   :  { %v201_v31 = vadd.f32 1e-05, %v189_v30 }
 0x130   :  { %v158_v32 = vpop.xlane.xlu1 %157 }
 0x131   :  { %4013 = vrsqrt.f32 %v201_v31  ;;  %v190_v33 = vmul.f32 0.0625, %v158_v32 }
 0x133   :  { %v202_v34 = vadd.f32 1e-05, %v190_v33 }
 0x134   :  { %v88_v52 = vpop.xlane.xlu1 %87 }
 0x135   :  { %4015 = vrsqrt.f32 %v202_v34  ;;  %v119_v57 = vmul.f32 0.0625, %v88_v52 }
 0x137   :  { %v4482_v0 = vsub.f32 %v4414_v17, %v119_v57 }
 0x138   :  { %v91_v54 = vpop.xlane.xlu1 %90 }
 0x139   :  { %v120_v56 = vmul.f32 0.0625, %v91_v54  ;;  %v143_v9 = vmul.f32 %v4482_v0, %v4482_v0 }
 0x13b   :  { %v4014_v35 = vpop.eup %4013  ;;  %v4475_v58 = vsub.f32 %v68_v19, %v120_v56  ;;  %v159_v11 = vsel %vm79_vm0, %v143_v9, 0.0 }
 0x13c   :  { %v225_v37 = vmul.f32 %v4014_v35, %v129_v6  ;;  %v107_v6 = vsel %vm79_vm0, %v74_v2, 0.0  ;;  %v103_v23 = vpop.xlane.xlu1 %102 }
 0x13d   :  { %v144_v3 = vmul.f32 %v4475_v58, %v4475_v58  ;;  %v124_v33 = vmul.f32 0.0625, %v103_v23 }
 0x13e   :  { %v243_v39 = vmul.f32 %v4453_v36, %v225_v37 }
 0x13f   :  { %v4016_v40 = vpop.eup %4015  ;;  %v162_v7 = vsel %vm79_vm0, %v144_v3, 0.0  ;;  %v4527_v34 = vsub.f32 %v4444_v26, %v124_v33 }
 0x140   :  { %v261_v41 = vadd.f32 %v4458_v38, %v243_v39  ;;  %v226_v42 = vmul.f32 %v4016_v40, %v130_v10  ;;  %v145_v10 = vmul.f32 %v4485_v1, %v4485_v1 }
 0x141   :  { %v148_v35 = vmul.f32 %v4527_v34, %v4527_v34 }
 0x142   :  { %3588 = vmatprep.mubr.msk.f32.mxu0 %vm79_vm0, %v261_v41  ;;  %v244_v43 = vmul.f32 %v4453_v36, %v226_v42  ;;  %v165_v12 = vsel %vm79_vm0, %v145_v10, 0.0 }
 0x143   :  { %v174_v37 = vsel %vm79_vm0, %v148_v35, 0.0 }
 0x144   :  { %v262_v44 = vadd.f32 %v4458_v38, %v244_v43 }
 0x146   :  { %3589 = vmatmul.mubr.msk.f32.vlgmr.msra.gmra.mrb[0].mxu0 %vm79_vm0, %v262_v44 }
 0x219   :  { %v3590_v46 = vpop.f32.mrb[0].mxu0 }
 0x21a   :  { %v390_v47 = vadd.f32 %v3590_v46, %v4469_v45  ;;  %v384_v48 = vpop.f32.mrb[1].mxu0 }
 0x21b   :  { %v385_v49 = vadd.f32 %v4469_v45, %v384_v48 }
 0x21c   :  { %4017 = vtanh.f32 %v390_v47  ;;  %v3393_v17 = vmul.f32 -1.442695, %v390_v47 }
 0x21d   :  { %4019 = vtanh.f32 %v385_v49  ;;  %v3392_v18 = vmul.f32 -1.442695, %v385_v49 }
 0x21e   :  { %4021 = vpow2.f32 %v3393_v17 }
 0x21f   :  { %4023 = vpow2.f32 %v3392_v18 }
 0x226   :  { %v4018_v50 = vpop.eup %4017 }
 0x227   :  { %v4020_v51 = vpop.eup %4019  ;;  %463 = vrot.lane.b32.xlu1 %v4018_v50, %s4281_s24 }
 0x228   :  { %461 = vrot.lane.b32.xlu0 %v4020_v51, %s4281_s24  ;;  %v4022_v19 = vpop.eup %4021 }
 0x229   :  { %v4024_v20 = vpop.eup %4023  ;;  %v452_v21 = vadd.f32 1.0, %v4022_v19 }
 0x22a   :  { %v451_v22 = vadd.f32 1.0, %v4024_v20  ;;  %v443_v20 = vld [vmem:[%s5141_s6] sm:$0xff] }
 0x22b   :  { %4025 = vrcp.f32 %v452_v21 }
 0x22c   :  { %4027 = vrcp.f32 %v451_v22 }
 0x235   :  { %v4512_v24 = vpop.eup %4025 }
 0x236   :  { %v4514_v27 = vpop.eup %4027 }
 0x247   :  { %105 = vadd.xlane.f32.xlu0 %v104_v62 }
 0x24b   :  { %108 = vadd.xlane.f32.xlu1 %v107_v6  ;;  %163 = vadd.xlane.f32.xlu0 %v162_v7 }
 0x24f   :  { %160 = vadd.xlane.f32.xlu1 %v159_v11  ;;  %166 = vadd.xlane.f32.xlu0 %v165_v12 }
 0x253   :  { %169 = vadd.xlane.f32.xlu1 %v168_v15  ;;  %172 = vadd.xlane.f32.xlu0 %v171_v16 }
 0x299   :  { %v464_v25 = vpop.permute.xlu1 %463 }
 0x29a   :  { %v4517_v28 = vmul.f32 %v4512_v24, %v464_v25  ;;  %v462_v29 = vpop.permute.xlu0 %461 }
 0x29b   :  { %v4520_v30 = vmul.f32 %v4514_v27, %v462_v29 }
 0x29c   :  { %4029 = vtanh.f32 %v4517_v28 }
 0x29d   :  { %4031 = vtanh.f32 %v4520_v30 }
 0x2a6   :  { %v4030_v31 = vpop.eup %4029 }
 0x2a7   :  { %v4032_v32 = vpop.eup %4031  ;;  %475 = vrot.lane.b32.xlu1 %v4030_v31, %s4282_s27 }
 0x2a8   :  { %473 = vrot.lane.b32.xlu0 %v4032_v32, %s4282_s27 }
 0x2cb   :  { %175 = vadd.xlane.f32.xlu1 %v174_v37 }
 0x2d4   :  { %v106_v39 = vpop.xlane.xlu0 %105 }
 0x2d5   :  { %v125_v40 = vmul.f32 0.0625, %v106_v39 }
 0x2d7   :  { %v4532_v41 = vsub.f32 %v73_v60, %v125_v40 }
 0x2d8   :  { %v109_v42 = vpop.xlane.xlu1 %108  ;;  %v164_v43 = vpop.xlane.xlu0 %163 }
 0x2d9   :  { %v126_v44 = vmul.f32 0.0625, %v109_v42  ;;  %v192_v46 = vmul.f32 0.0625, %v164_v43  ;;  %v149_v47 = vmul.f32 %v4532_v41, %v4532_v41 }
 0x2db   :  { %v4536_v48 = vsub.f32 %v74_v2, %v126_v44  ;;  %v204_v26 = vadd.f32 1e-05, %v192_v46  ;;  %v177_v49 = vsel %vm79_vm0, %v149_v47, 0.0 }
 0x2dc   :  { %v161_v50 = vpop.xlane.xlu1 %160  ;;  %178 = vadd.xlane.f32.xlu0 %v177_v49  ;;  %v167_v51 = vpop.xlane.xlu0 %166 }
 0x2dd   :  { %4033 = vrsqrt.f32 %v204_v26  ;;  %v191_v52 = vmul.f32 0.0625, %v161_v50  ;;  %v193_v53 = vmul.f32 0.0625, %v167_v51  ;;  %v150_v54 = vmul.f32 %v4536_v48, %v4536_v48 }
 0x2df   :  { %v203_v55 = vadd.f32 1e-05, %v191_v52  ;;  %v205_v56 = vadd.f32 1e-05, %v193_v53  ;;  %v180_v57 = vsel %vm79_vm0, %v150_v54, 0.0 }
 0x2e0   :  { %181 = vadd.xlane.f32.xlu1 %v180_v57  ;;  %v170_v59 = vpop.xlane.xlu1 %169  ;;  %v173_v60 = vpop.xlane.xlu0 %172 }
 0x2e1   :  { %4035 = vrsqrt.f32 %v203_v55  ;;  %v194_v61 = vmul.f32 0.0625, %v170_v59  ;;  %v195_v62 = vmul.f32 0.0625, %v173_v60 }
 0x2e2   :  { %4037 = vrsqrt.f32 %v205_v56 }
 0x2e3   :  { %v206_v63 = vadd.f32 1e-05, %v194_v61  ;;  %v207_v2 = vadd.f32 1e-05, %v195_v62 }
 0x2e5   :  { %4039 = vrsqrt.f32 %v206_v63 }
 0x2e6   :  { %4041 = vrsqrt.f32 %v207_v2 }
 0x2e7   :  { %v4034_v3 = vpop.eup %4033 }
 0x2e8   :  { %v228_v4 = vmul.f32 %v4034_v3, %v4475_v58 }
 0x2ea   :  { %v246_v10 = vmul.f32 %v4453_v36, %v228_v4 }
 0x2eb   :  { %v4036_v6 = vpop.eup %4035 }
 0x2ec   :  { %v4038_v7 = vpop.eup %4037  ;;  %v227_v9 = vmul.f32 %v4036_v6, %v4482_v0  ;;  %v264_v58 = vadd.f32 %v4458_v38, %v246_v10 }
 0x2ed   :  { %v229_v11 = vmul.f32 %v4038_v7, %v4485_v1 }
 0x2ee   :  { %v245_v12 = vmul.f32 %v4453_v36, %v227_v9 }
 0x2ef   :  { %v4040_v13 = vpop.eup %4039  ;;  %v247_v14 = vmul.f32 %v4453_v36, %v229_v11 }
 0x2f0   :  { %v4042_v15 = vpop.eup %4041  ;;  %v263_v16 = vadd.f32 %v4458_v38, %v245_v12  ;;  %v230_v17 = vmul.f32 %v4040_v13, %v4493_v5  ;;  %v444_v5 = vld [vmem:[%s5141_s6 + $0x8] sm:$0xff]  ;;  %s4283_s6 = smov 80  }
 0x2f1   :  { %v231_v18 = vmul.f32 %v4042_v15, %v4498_v8  ;;  %v265_v0 = vadd.f32 %v4458_v38, %v247_v14  ;;  %v4565_v21 = vpack.c.bf16 %v444_v5, %v443_v20 }
 0x2f2   :  { %3591 = vmatprep.mubr.msk.f32.mxu0 %vm79_vm0, %v263_v16  ;;  %v248_v1 = vmul.f32 %v4453_v36, %v230_v17 }
 0x2f3   :  { %3592 = vmatmul.mubr.msk.f32.gmra.mrb[2].mxu0 %vm79_vm0, %v264_v58  ;;  %v249_v19 = vmul.f32 %v4453_v36, %v231_v18  ;;  %3833 = vmatprep.subr.bf16.mxu0 %v4565_v21 }
 0x2f4   :  { %3594 = vmatprep.mubr.msk.f32.mxu0 %vm79_vm0, %v265_v0  ;;  %v266_v8 = vadd.f32 %v4458_v38, %v248_v1  ;;  %3849 = vmatprep.subr.bf16.mxu1 %v4565_v21 }
 0x2f5   :  { %v267_v22 = vadd.f32 %v4458_v38, %v249_v19  ;;  %3835 = vmatpush3.bf16.msra.mxu0 %v4565_v21 }
 0x2f6   :  { %3837 = vmatprep.subr.bf16.mxu0 %v4565_v21 }
 0x2f7   :  { %3595 = vmatmul.mubr.msk.f32.gmra.mrb[4].mxu0 %vm79_vm0, %v266_v8 }
 0x2f8   :  { %3597 = vmatprep.mubr.msk.f32.mxu0 %vm79_vm0, %v267_v22 }
 0x319   :  { %v476_v23 = vpop.permute.xlu1 %475 }
 0x31a   :  { %v480_v25 = vmul.f32 %v4512_v24, %v476_v23  ;;  %v474_v29 = vpop.permute.xlu0 %473 }
 0x31b   :  { %v479_v31 = vmul.f32 %v4514_v27, %v474_v29 }
 0x31c   :  { %485 = vrot.lane.b32.xlu1 %v480_v25, %s4283_s6 }
 0x31d   :  { %483 = vrot.lane.b32.xlu0 %v479_v31, %s4283_s6 }
 0x321   :  { %584 = vrot.lane.b32.xlu0 %v4520_v30, %s4284_s0 }
 0x358   :  { %v176_v32 = vpop.xlane.xlu1 %175 }
 0x359   :  { %v196_v33 = vmul.f32 0.0625, %v176_v32 }
 0x35b   :  { %v208_v35 = vadd.f32 1e-05, %v196_v33 }
 0x35d   :  { %4043 = vrsqrt.f32 %v208_v35 }
 0x367   :  { %v4044_v37 = vpop.eup %4043 }
 0x368   :  { %v232_v39 = vmul.f32 %v4044_v37, %v4527_v34 }
 0x369   :  { %v179_v24 = vpop.xlane.xlu0 %178 }
 0x36a   :  { %v197_v40 = vmul.f32 0.0625, %v179_v24  ;;  %v250_v27 = vmul.f32 %v4453_v36, %v232_v39 }
 0x36c   :  { %v209_v42 = vadd.f32 1e-05, %v197_v40  ;;  %v268_v43 = vadd.f32 %v4458_v38, %v250_v27 }
 0x36d   :  { %v182_v44 = vpop.xlane.xlu1 %181 }
 0x36e   :  { %4045 = vrsqrt.f32 %v209_v42  ;;  %v198_v46 = vmul.f32 0.0625, %v182_v44  ;;  %3598 = vmatmul.mubr.msk.f32.gmra.mrb[6].mxu0 %vm79_vm0, %v268_v43 }
 0x370   :  { %v210_v30 = vadd.f32 1e-05, %v198_v46 }
 0x372   :  { %4047 = vrsqrt.f32 %v210_v30 }
 0x378   :  { %v4046_v47 = vpop.eup %4045 }
 0x379   :  { %v233_v26 = vmul.f32 %v4046_v47, %v4532_v41 }
 0x37b   :  { %v251_v49 = vmul.f32 %v4453_v36, %v233_v26 }
 0x37c   :  { %v4048_v34 = vpop.eup %4047 }
 0x37d   :  { %v269_v50 = vadd.f32 %v4458_v38, %v251_v49  ;;  %v234_v51 = vmul.f32 %v4048_v34, %v4536_v48 }
 0x37f   :  { %3600 = vmatprep.mubr.msk.f32.mxu0 %vm79_vm0, %v269_v50  ;;  %v252_v52 = vmul.f32 %v4453_v36, %v234_v51 }
 0x381   :  { %v270_v53 = vadd.f32 %v4458_v38, %v252_v52 }
 0x383   :  { %3601 = vmatmul.mubr.msk.f32.gmra.mrb[8].mxu0 %vm79_vm0, %v270_v53 }
 0x38e   :  { %v486_v55 = vpop.permute.xlu1 %485 }
 0x38f   :  { %v484_v54 = vpop.permute.xlu0 %483 }
 0x390   :  { %3610 = vmatprep.mubr.msk.f32.mxu0 %vm79_vm0, %v484_v54 }
 0x391   :  { %3611 = vmatmul.mubr.msk.f32.vlgmr.msra.gmra.mrb[2].mxu0 %vm79_vm0, %v486_v55 }
 0x392   :  { %3839 = vmatpush3.bf16.msra.mxu0 %v4565_v21 }
 0x393   :  { %3841 = vmatprep.subr.bf16.mxu0 %v4565_v21 }
 0x464   :  { %v3612_v41 = vpop.f32.mrb[2].mxu0 }
 0x465   :  { %v557_v48 = vpop.f32.mrb[3].mxu0  ;;  %v3978_v57 = vadd.f32 %v3612_v41, %v4469_v45 }
 0x466   :  { %v3979_v56 = vadd.f32 %v4469_v45, %v557_v48 }
 0x467   :  { %v3397_v62 = vmul.f32 -1.442695, %v3978_v57 }
 0x468   :  { %4049 = vtanh.f32 %v3979_v56  ;;  %v3396_v61 = vmul.f32 -1.442695, %v3979_v56 }
 0x469   :  { %4051 = vtanh.f32 %v3978_v57 }
 0x46a   :  { %4053 = vpow2.f32 %v3396_v61 }
 0x46b   :  { %4055 = vpow2.f32 %v3397_v62 }
 0x472   :  { %v4050_v59 = vpop.eup %4049 }
 0x473   :  { %594 = vrot.lane.b32.xlu1 %v4050_v59, %s4281_s24  ;;  %v4052_v60 = vpop.eup %4051 }
 0x474   :  { %v4054_v63 = vpop.eup %4053 }
 0x475   :  { %v574_v2 = vadd.f32 1.0, %v4054_v63  ;;  %v4056_v3 = vpop.eup %4055 }
 0x476   :  { %v575_v4 = vadd.f32 1.0, %v4056_v3 }
 0x477   :  { %596 = vrot.lane.b32.xlu1 %v4052_v60, %s4281_s24  ;;  %4057 = vrcp.f32 %v574_v2 }
 0x478   :  { %4059 = vrcp.f32 %v575_v4 }
 0x47b   :  { %586 = vrot.lane.b32.xlu1 %v4517_v28, %s4284_s0  ;;  %v585_v28 = vpop.permute.xlu0 %584 }
 0x481   :  { %v4058_v6 = vpop.eup %4057 }
 0x482   :  { %v4060_v10 = vpop.eup %4059  ;;  %v590_v13 = vmul.f32 %v4058_v6, %v585_v28 }
 0x4e5   :  { %v595_v7 = vpop.permute.xlu1 %594 }
 0x4e6   :  { %v600_v9 = vmul.f32 %v4058_v6, %v595_v7 }
 0x4e8   :  { %604 = vrot.lane.b32.xlu0 %v600_v9, %s4284_s0 }
 0x4e9   :  { %v597_v11 = vpop.permute.xlu1 %596 }
 0x4ea   :  { %v601_v12 = vmul.f32 %v4060_v10, %v597_v11 }
 0x4ec   :  { %606 = vrot.lane.b32.xlu1 %v601_v12, %s4284_s0 }
 0x4ed   :  { %v587_v14 = vpop.permute.xlu1 %586 }
 0x4ee   :  { %v591_v17 = vmul.f32 %v4060_v10, %v587_v14 }
 0x55a   :  { %v605_v15 = vpop.permute.xlu0 %604 }
 0x55b   :  { %v610_v16 = vadd.f32 %v605_v15, %v590_v13 }
 0x55d   :  { %4061 = vtanh.f32 %v610_v16 }
 0x55e   :  { %v607_v58 = vpop.permute.xlu1 %606 }
 0x55f   :  { %v611_v18 = vadd.f32 %v607_v58, %v591_v17 }
 0x561   :  { %4063 = vtanh.f32 %v611_v18 }
 0x567   :  { %v4062_v0 = vpop.eup %4061 }
 0x568   :  { %616 = vrot.lane.b32.xlu0 %v4062_v0, %s4285_s21 }
 0x56b   :  { %v4064_v1 = vpop.eup %4063 }
 0x56c   :  { %618 = vrot.lane.b32.xlu1 %v4064_v1, %s4285_s21 }
 0x5da   :  { %v617_v19 = vpop.permute.xlu0 %616 }
 0x5db   :  { %v622_v20 = vmul.f32 %v4058_v6, %v617_v19 }
 0x5dd   :  { %626 = vrot.lane.b32.xlu0 %v622_v20, %s4283_s6 }
 0x5de   :  { %v619_v5 = vpop.permute.xlu1 %618 }
 0x5df   :  { %v623_v8 = vmul.f32 %v4060_v10, %v619_v5 }
 0x5e1   :  { %628 = vrot.lane.b32.xlu1 %v623_v8, %s4283_s6 }
 0x64f   :  { %v627_v22 = vpop.permute.xlu0 %626 }
 0x650   :  { %3617 = vmatprep.mubr.msk.f32.mxu0 %vm79_vm0, %v627_v22 }
 0x653   :  { %v629_v23 = vpop.permute.xlu1 %628 }
 0x654   :  { %3618 = vmatmul.mubr.msk.f32.vlgmr.msra.gmra.mrb[4].mxu0 %vm79_vm0, %v629_v23 }
 0x655   :  { %3843 = vmatpush3.bf16.msra.mxu0 %v4565_v21 }
 0x656   :  { %3845 = vmatprep.subr.bf16.mxu0 %v4565_v21 }
 0x727   :  { %v3619_v25 = vpop.f32.mrb[4].mxu0 }
 0x728   :  { %v3980_v29 = vadd.f32 %v3619_v25, %v4469_v45  ;;  %v700_v31 = vpop.f32.mrb[5].mxu0 }
 0x729   :  { %v3981_v32 = vadd.f32 %v4469_v45, %v700_v31 }
 0x72a   :  { %4065 = vtanh.f32 %v3980_v29  ;;  %v3401_v37 = vmul.f32 -1.442695, %v3980_v29 }
 0x72b   :  { %4067 = vtanh.f32 %v3981_v32  ;;  %v3400_v39 = vmul.f32 -1.442695, %v3981_v32 }
 0x72c   :  { %4069 = vpow2.f32 %v3401_v37 }
 0x72d   :  { %4071 = vpow2.f32 %v3400_v39 }
 0x734   :  { %v4066_v33 = vpop.eup %4065 }
 0x735   :  { %v4068_v35 = vpop.eup %4067  ;;  %731 = vrot.lane.b32.xlu1 %v4066_v33, %s4281_s24 }
 0x736   :  { %729 = vrot.lane.b32.xlu0 %v4068_v35, %s4281_s24  ;;  %v4070_v24 = vpop.eup %4069 }
 0x737   :  { %v4072_v40 = vpop.eup %4071  ;;  %v718_v27 = vadd.f32 1.0, %v4070_v24 }
 0x738   :  { %v717_v42 = vadd.f32 1.0, %v4072_v40 }
 0x739   :  { %4073 = vrcp.f32 %v718_v27 }
 0x73a   :  { %4075 = vrcp.f32 %v717_v42 }
 0x743   :  { %v4074_v43 = vpop.eup %4073 }
 0x744   :  { %v4076_v46 = vpop.eup %4075  ;;  %v726_v49 = vmul.f32 %v4074_v43, %v611_v18 }
 0x745   :  { %v725_v50 = vmul.f32 %v4076_v46, %v610_v16 }
 0x7a7   :  { %v732_v44 = vpop.permute.xlu1 %731 }
 0x7a8   :  { %v736_v30 = vmul.f32 %v4074_v43, %v732_v44  ;;  %v730_v47 = vpop.permute.xlu0 %729 }
 0x7a9   :  { %v735_v26 = vmul.f32 %v4076_v46, %v730_v47 }
 0x7aa   :  { %741 = vrot.lane.b32.xlu1 %v736_v30, %s4284_s0 }
 0x7ab   :  { %739 = vrot.lane.b32.xlu0 %v735_v26, %s4284_s0 }
 0x81c   :  { %v742_v34 = vpop.permute.xlu1 %741 }
 0x81d   :  { %v746_v51 = vadd.f32 %v742_v34, %v726_v49  ;;  %v740_v52 = vpop.permute.xlu0 %739 }
 0x81e   :  { %v745_v53 = vadd.f32 %v740_v52, %v725_v50  ;;  %v75_v52 = vld [vmem:[%s5164_s23 + $0x50] sm:$0xff] }
 0x81f   :  { %4077 = vtanh.f32 %v746_v51 }
 0x820   :  { %4079 = vtanh.f32 %v745_v53 }
 0x829   :  { %v4078_v54 = vpop.eup %4077 }
 0x82a   :  { %v4080_v55 = vpop.eup %4079  ;;  %753 = vrot.lane.b32.xlu1 %v4078_v54, %s4285_s21  ;;  %v76_v54 = vld [vmem:[%s5164_s23 + $0x58] sm:$0xff] }
 0x82b   :  { %751 = vrot.lane.b32.xlu0 %v4080_v55, %s4285_s21  ;;  %v113_v55 = vsel %vm79_vm0, %v76_v54, 0.0 }
 0x89c   :  { %v754_v41 = vpop.permute.xlu1 %753 }
 0x89d   :  { %v758_v48 = vmul.f32 %v4074_v43, %v754_v41  ;;  %v752_v56 = vpop.permute.xlu0 %751 }
 0x89e   :  { %v757_v57 = vmul.f32 %v4076_v46, %v752_v56 }
 0x89f   :  { %763 = vrot.lane.b32.xlu1 %v758_v48, %s4283_s6 }
 0x8a0   :  { %761 = vrot.lane.b32.xlu0 %v757_v57, %s4283_s6 }
 0x911   :  { %v764_v60 = vpop.permute.xlu1 %763 }
 0x912   :  { %v762_v59 = vpop.permute.xlu0 %761 }
 0x913   :  { %3624 = vmatprep.mubr.msk.f32.mxu0 %vm79_vm0, %v762_v59 }
 0x914   :  { %3625 = vmatmul.mubr.msk.f32.vlgmr.msra.gmra.mrb[6].mxu0 %vm79_vm0, %v764_v60 }
 0x915   :  { %3847 = vmatpush3.bf16.msra.mxu0 %v4565_v21 }
 0x9e7   :  { %v3626_v61 = vpop.f32.mrb[6].mxu0 }
 0x9e8   :  { %v3982_v62 = vadd.f32 %v3626_v61, %v4469_v45  ;;  %v835_v63 = vpop.f32.mrb[7].mxu0 }
 0x9e9   :  { %v3983_v2 = vadd.f32 %v4469_v45, %v835_v63 }
 0x9ea   :  { %4081 = vtanh.f32 %v3982_v62  ;;  %v3405_v6 = vmul.f32 -1.442695, %v3982_v62 }
 0x9eb   :  { %4083 = vtanh.f32 %v3983_v2  ;;  %v3404_v7 = vmul.f32 -1.442695, %v3983_v2 }
 0x9ec   :  { %4085 = vpow2.f32 %v3405_v6 }
 0x9ed   :  { %4087 = vpow2.f32 %v3404_v7 }
 0x9f4   :  { %v4082_v3 = vpop.eup %4081 }
 0x9f5   :  { %v4084_v4 = vpop.eup %4083  ;;  %866 = vrot.lane.b32.xlu1 %v4082_v3, %s4281_s24 }
 0x9f6   :  { %864 = vrot.lane.b32.xlu0 %v4084_v4, %s4281_s24  ;;  %v4086_v9 = vpop.eup %4085 }
 0x9f7   :  { %v4088_v10 = vpop.eup %4087  ;;  %v853_v11 = vadd.f32 1.0, %v4086_v9 }
 0x9f8   :  { %v852_v12 = vadd.f32 1.0, %v4088_v10 }
 0x9f9   :  { %4089 = vrcp.f32 %v853_v11 }
 0x9fa   :  { %4091 = vrcp.f32 %v852_v12 }
 0xa03   :  { %v4090_v28 = vpop.eup %4089 }
 0xa04   :  { %v4092_v14 = vpop.eup %4091  ;;  %v861_v58 = vmul.f32 %v4090_v28, %v746_v51 }
 0xa05   :  { %v860_v0 = vmul.f32 %v4092_v14, %v745_v53  ;;  %v110_v53 = vsel %vm79_vm0, %v75_v52, 0.0 }
 0xa67   :  { %v867_v13 = vpop.permute.xlu1 %866 }
 0xa68   :  { %v871_v15 = vmul.f32 %v4090_v28, %v867_v13  ;;  %v865_v16 = vpop.permute.xlu0 %864 }
 0xa69   :  { %v870_v17 = vmul.f32 %v4092_v14, %v865_v16 }
 0xa6a   :  { %876 = vrot.lane.b32.xlu1 %v871_v15, %s4284_s0 }
 0xa6b   :  { %874 = vrot.lane.b32.xlu0 %v870_v17, %s4284_s0 }
 0xadc   :  { %v877_v18 = vpop.permute.xlu1 %876 }
 0xadd   :  { %v881_v1 = vadd.f32 %v877_v18, %v861_v58  ;;  %v875_v19 = vpop.permute.xlu0 %874 }
 0xade   :  { %v880_v20 = vadd.f32 %v875_v19, %v860_v0 }
 0xadf   :  { %4093 = vtanh.f32 %v881_v1 }
 0xae0   :  { %4095 = vtanh.f32 %v880_v20 }
 0xae9   :  { %v4094_v5 = vpop.eup %4093 }
 0xaea   :  { %v4096_v8 = vpop.eup %4095  ;;  %888 = vrot.lane.b32.xlu1 %v4094_v5, %s4285_s21 }
 0xaeb   :  { %886 = vrot.lane.b32.xlu0 %v4096_v8, %s4285_s21 }
 0xb5c   :  { %v889_v22 = vpop.permute.xlu1 %888 }
 0xb5d   :  { %v893_v23 = vmul.f32 %v4090_v28, %v889_v22  ;;  %v887_v25 = vpop.permute.xlu0 %886 }
 0xb5e   :  { %v892_v29 = vmul.f32 %v4092_v14, %v887_v25 }
 0xb5f   :  { %898 = vrot.lane.b32.xlu1 %v893_v23, %s4283_s6 }
 0xb60   :  { %896 = vrot.lane.b32.xlu0 %v892_v29, %s4283_s6 }
 0xbd1   :  { %v899_v32 = vpop.permute.xlu1 %898 }
 0xbd2   :  { %v897_v31 = vpop.permute.xlu0 %896 }
 0xbd3   :  { %3631 = vmatprep.mubr.msk.f32.mxu0 %vm79_vm0, %v897_v31 }
 0xbd4   :  { %3632 = vmatmul.mubr.msk.f32.vlgmr.msra.gmra.mrb[8].mxu0 %vm79_vm0, %v899_v32 }
 0xca7   :  { %v3633_v33 = vpop.f32.mrb[8].mxu0 }
 0xca8   :  { %v3984_v35 = vadd.f32 %v3633_v33, %v4469_v45  ;;  %v970_v37 = vpop.f32.mrb[9].mxu0 }
 0xca9   :  { %v3985_v39 = vadd.f32 %v4469_v45, %v970_v37 }
 0xcaa   :  { %4097 = vtanh.f32 %v3984_v35  ;;  %v3409_v27 = vmul.f32 -1.442695, %v3984_v35 }
 0xcab   :  { %4099 = vtanh.f32 %v3985_v39  ;;  %v3408_v42 = vmul.f32 -1.442695, %v3985_v39 }
 0xcac   :  { %4101 = vpow2.f32 %v3409_v27 }
 0xcad   :  { %4103 = vpow2.f32 %v3408_v42 }
 0xcb4   :  { %v4098_v24 = vpop.eup %4097 }
 0xcb5   :  { %v4100_v40 = vpop.eup %4099  ;;  %1001 = vrot.lane.b32.xlu1 %v4098_v24, %s4281_s24 }
 0xcb6   :  { %999 = vrot.lane.b32.xlu0 %v4100_v40, %s4281_s24  ;;  %v4102_v43 = vpop.eup %4101 }
 0xcb7   :  { %v4104_v44 = vpop.eup %4103  ;;  %v988_v46 = vadd.f32 1.0, %v4102_v43 }
 0xcb8   :  { %v987_v30 = vadd.f32 1.0, %v4104_v44 }
 0xcb9   :  { %4105 = vrcp.f32 %v988_v46 }
 0xcba   :  { %4107 = vrcp.f32 %v987_v30 }
 0xcc3   :  { %v4106_v47 = vpop.eup %4105 }
 0xcc4   :  { %v4108_v49 = vpop.eup %4107  ;;  %v996_v41 = vmul.f32 %v4106_v47, %v881_v1 }
 0xcc5   :  { %v995_v56 = vmul.f32 %v4108_v49, %v880_v20 }
 0xd27   :  { %v1002_v26 = vpop.permute.xlu1 %1001 }
 0xd28   :  { %v1006_v34 = vmul.f32 %v4106_v47, %v1002_v26  ;;  %v1000_v50 = vpop.permute.xlu0 %999 }
 0xd29   :  { %v1005_v51 = vmul.f32 %v4108_v49, %v1000_v50 }
 0xd2a   :  { %1011 = vrot.lane.b32.xlu1 %v1006_v34, %s4284_s0 }
 0xd2b   :  { %1009 = vrot.lane.b32.xlu0 %v1005_v51, %s4284_s0 }
 0xd4a   :  { %111 = vadd.xlane.f32.xlu0 %v110_v53 }
 0xd4e   :  { %114 = vadd.xlane.f32.xlu1 %v113_v55 }
 0xd9c   :  { %v1012_v48 = vpop.permute.xlu1 %1011 }
 0xd9d   :  { %v4651_v57 = vadd.f32 %v1012_v48, %v996_v41  ;;  %v1010_v59 = vpop.permute.xlu0 %1009 }
 0xd9e   :  { %v4653_v60 = vadd.f32 %v1010_v59, %v995_v56 }
 0xd9f   :  { %4109 = vtanh.f32 %v4651_v57 }
 0xda0   :  { %4111 = vtanh.f32 %v4653_v60 }
 0xda9   :  { %v4110_v61 = vpop.eup %4109 }
 0xdaa   :  { %v4112_v62 = vpop.eup %4111  ;;  %1023 = vrot.lane.b32.xlu1 %v4110_v61, %s4285_s21 }
 0xdab   :  { %1021 = vrot.lane.b32.xlu0 %v4112_v62, %s4285_s21 }
 0xdd7   :  { %v112_v63 = vpop.xlane.xlu0 %111 }
 0xdd8   :  { %v127_v2 = vmul.f32 0.0625, %v112_v63 }
 0xdda   :  { %v139_v3 = vsub.f32 %v75_v52, %v127_v2 }
 0xddb   :  { %v115_v4 = vpop.xlane.xlu1 %114 }
 0xddc   :  { %v128_v6 = vmul.f32 0.0625, %v115_v4  ;;  %v151_v7 = vmul.f32 %v139_v3, %v139_v3 }
 0xdde   :  { %v140_v9 = vsub.f32 %v76_v54, %v128_v6  ;;  %v183_v10 = vsel %vm79_vm0, %v151_v7, 0.0  ;;  %v1211_v6 = vld [vmem:[%s5142_s8 + $0x8] sm:$0xff] }
 0xddf   :  { %184 = vadd.xlane.f32.xlu0 %v183_v10 }
 0xde0   :  { %v152_v11 = vmul.f32 %v140_v9, %v140_v9 }
 0xde2   :  { %v186_v12 = vsel %vm79_vm0, %v152_v11, 0.0 }
 0xde3   :  { %187 = vadd.xlane.f32.xlu1 %v186_v12 }
 0xe1c   :  { %v1024_v28 = vpop.permute.xlu1 %1023 }
 0xe1d   :  { %v1028_v13 = vmul.f32 %v4106_v47, %v1024_v28  ;;  %v1022_v14 = vpop.permute.xlu0 %1021  ;;  %v4286_v28 = vmov 0.0  }
 0xe1e   :  { %v1027_v15 = vmul.f32 %v4108_v49, %v1022_v14  ;;  %v1205_v14 = vld [vmem:[%s5143_s7 + $0x18] sm:$0xff]  ;;  %3671 = vmatprep.mubr.msk.f32.mxu0 %vm4289_vm2, %v4286_v28 }
 0xe1f   :  { %1033 = vrot.lane.b32.xlu1 %v1028_v13, %s4283_s6  ;;  %v1203_v13 = vld [vmem:[%s5143_s7 + $0x8] sm:$0xff] }
 0xe20   :  { %1031 = vrot.lane.b32.xlu0 %v1027_v15, %s4283_s6  ;;  %v3856_v15 = vpack.c.bf16 %v1205_v14, %v1203_v13 }
 0xe6c   :  { %v185_v16 = vpop.xlane.xlu0 %184 }
 0xe6d   :  { %v199_v17 = vmul.f32 0.0625, %v185_v16 }
 0xe6f   :  { %v211_v58 = vadd.f32 1e-05, %v199_v17 }
 0xe70   :  { %v188_v18 = vpop.xlane.xlu1 %187 }
 0xe71   :  { %4113 = vrsqrt.f32 %v211_v58  ;;  %v200_v0 = vmul.f32 0.0625, %v188_v18 }
 0xe73   :  { %v212_v1 = vadd.f32 1e-05, %v200_v0 }
 0xe75   :  { %4115 = vrsqrt.f32 %v212_v1 }
 0xe7b   :  { %v4114_v19 = vpop.eup %4113 }
 0xe7c   :  { %v235_v20 = vmul.f32 %v4114_v19, %v139_v3 }
 0xe7e   :  { %v253_v5 = vmul.f32 %v4453_v36, %v235_v20 }
 0xe7f   :  { %v4116_v8 = vpop.eup %4115 }
 0xe80   :  { %v271_v22 = vadd.f32 %v4458_v38, %v253_v5  ;;  %v236_v23 = vmul.f32 %v4116_v8, %v140_v9  ;;  %v1212_v9 = vld [vmem:[%s5142_s8 + $0x10] sm:$0xff] }
 0xe82   :  { %3603 = vmatprep.mubr.msk.f32.mxu1 %vm79_vm0, %v271_v22  ;;  %v254_v25 = vmul.f32 %v4453_v36, %v236_v23  ;;  %v1202_v23 = vld [vmem:[%s5143_s7] sm:$0xff] }
 0xe84   :  { %v272_v29 = vadd.f32 %v4458_v38, %v254_v25  ;;  %v1204_v25 = vld [vmem:[%s5143_s7 + $0x10] sm:$0xff] }
 0xe86   :  { %3604 = vmatmul.mubr.msk.f32.vlgmr.msra.gmra.mrb[0].mxu1 %vm79_vm0, %v272_v29  ;;  %v1207_v29 = vld [vmem:[%s5143_s7 + $0x28] sm:$0xff] }
 0xe87   :  { %3851 = vmatpush3.bf16.msra.mxu1 %v4565_v21 }
 0xe91   :  { %v1034_v32 = vpop.permute.xlu1 %1033 }
 0xe92   :  { %v1032_v31 = vpop.permute.xlu0 %1031 }
 0xe93   :  { %3638 = vmatprep.mubr.msk.f32.mxu1 %vm79_vm0, %v1032_v31  ;;  %v1209_v31 = vld [vmem:[%s5143_s7 + $0x38] sm:$0xff] }
 0xe94   :  { %3639 = vmatmul.mubr.msk.f32.vlgmr.msra.gmra.mrb[2].mxu1 %vm79_vm0, %v1034_v32  ;;  %v3858_v32 = vpack.c.bf16 %v1204_v25, %v1202_v23 }
 0xe95   :  { %1288 = vmatprep.mubr.f32.mxu1 %v4286_v28 }
 0xf59   :  { %v3605_v33 = vpop.f32.mrb[0].mxu1 }
 0xf5a   :  { %v434_v35 = vpop.f32.mrb[1].mxu1  ;;  %v4673_v37 = vadd.f32 %v3605_v33, %v4469_v45 }
 0xf5b   :  { %v435_v39 = vadd.f32 %v4469_v45, %v434_v35 }
 0xf5c   :  { %v3415_v20 = vmul.f32 -1.442695, %v4673_v37 }
 0xf5d   :  { %v3414_v53 = vmul.f32 -1.442695, %v435_v39 }
 0xf67   :  { %v3640_v36 = vpop.f32.mrb[2].mxu1 }
 0xf68   :  { %v1115_v38 = vadd.f32 %v3640_v36, %v4673_v37  ;;  %v1105_v24 = vpop.f32.mrb[3].mxu1  ;;  %v1208_v36 = vld [vmem:[%s5143_s7 + $0x30] sm:$0xff] }
 0xf69   :  { %v1114_v40 = vadd.f32 %v1105_v24, %v435_v39 }
 0xf6a   :  { %4117 = vtanh.f32 %v1115_v38  ;;  %v3413_v42 = vmul.f32 -1.442695, %v1115_v38 }
 0xf6b   :  { %4119 = vtanh.f32 %v1114_v40  ;;  %v3412_v43 = vmul.f32 -1.442695, %v1114_v40  ;;  %v1386_v40 = vld [vmem:[%s5144_s9 + $0x8] sm:$0xff] }
 0xf6c   :  { %4121 = vpow2.f32 %v3413_v42 }
 0xf6d   :  { %4123 = vpow2.f32 %v3412_v43  ;;  %v1385_v43 = vld [vmem:[%s5144_s9] sm:$0xff] }
 0xf74   :  { %v4118_v21 = vpop.eup %4117 }
 0xf75   :  { %1136 = vrot.lane.b32.xlu1 %v4118_v21, %s4281_s24  ;;  %v4120_v27 = vpop.eup %4119  ;;  %v1388_v21 = vld [vmem:[%s5144_s9 + $0x18] sm:$0xff] }
 0xf76   :  { %1134 = vrot.lane.b32.xlu0 %v4120_v27, %s4281_s24  ;;  %v4122_v44 = vpop.eup %4121  ;;  %v3864_v42 = vpack.c.bf16 %v1388_v21, %v1386_v40 }
 0xf77   :  { %v1123_v46 = vadd.f32 1.0, %v4122_v44  ;;  %v4124_v45 = vpop.eup %4123  ;;  %v1387_v44 = vld [vmem:[%s5144_s9 + $0x10] sm:$0xff] }
 0xf78   :  { %v1122_v30 = vadd.f32 1.0, %v4124_v45  ;;  %v3866_v45 = vpack.c.bf16 %v1387_v44, %v1385_v43 }
 0xf79   :  { %4125 = vrcp.f32 %v1123_v46  ;;  %v1200_v46 = vld [vmem:[%s5145_s1] sm:$0xff] }
 0xf7a   :  { %4127 = vrcp.f32 %v1122_v30  ;;  %v1201_v30 = vld [vmem:[%s5145_s1 + $0x8] sm:$0xff]  ;;  %s4287_s1 = smov 64  }
 0xf7b   :  { %4129 = vtanh.f32 %v435_v39  ;;  %v1206_v39 = vld [vmem:[%s5143_s7 + $0x20] sm:$0xff] }
 0xf7c   :  { %4131 = vpow2.f32 %v3414_v53  ;;  %v3862_v27 = vpack.c.bf16 %v1208_v36, %v1206_v39 }
 0xf83   :  { %v4126_v47 = vpop.eup %4125 }
 0xf84   :  { %v4128_v34 = vpop.eup %4127  ;;  %v1131_v41 = vmul.f32 %v4126_v47, %v4651_v57  ;;  %v1213_v57 = vld [vmem:[%s5142_s8 + $0x18] sm:$0xff] }
 0xf85   :  { %v4130_v52 = vpop.eup %4129  ;;  %v1130_v59 = vmul.f32 %v4128_v34, %v4653_v60  ;;  %v1210_v60 = vld [vmem:[%s5142_s8] sm:$0xff]  ;;  %v3852_v7 = vpack.c.bf16 %v1213_v57, %v1211_v6 }
 0xf86   :  { %v4132_v54 = vpop.eup %4131  ;;  %v3854_v10 = vpack.c.bf16 %v1212_v9, %v1210_v60  ;;  %v4288_v60 = vmov 0.0|0.0   ;;  %v1497_v9 = vld [vmem:[%s5147_s11 + $0x8] sm:$0xff] }
 0xf87   :  { %v1170_v55 = vadd.f32 1.0, %v4132_v54  ;;  %3853 = vmatprep.subr.bf16.mxu1 %v3852_v7  ;;  %v1496_v7 = vld [vmem:[%s5147_s11] sm:$0xff]  ;;  %3880 = vmatprep.subr.bf16.mxu0 %v4288_v60 }
 0xf88   :  { %3855 = vmatpush1.bf16.msra.mxu1 %v3854_v10  ;;  %v1498_v10 = vld [vmem:[%s5147_s11 + $0x10] sm:$0xff] }
 0xf89   :  { %4133 = vrcp.f32 %v1170_v55  ;;  %3857 = vmatprep.subr.bf16.mxu1 %v3856_v15 }
 0xf93   :  { %v4134_v63 = vpop.eup %4133 }
 0xfe7   :  { %v1137_v26 = vpop.permute.xlu1 %1136 }
 0xfe8   :  { %v1141_v49 = vmul.f32 %v4126_v47, %v1137_v26  ;;  %v1135_v50 = vpop.permute.xlu0 %1134 }
 0xfe9   :  { %v1140_v51 = vmul.f32 %v4128_v34, %v1135_v50  ;;  %v1480_v50 = vld [vmem:[%s5146_s10] sm:$0x3] }
 0xfea   :  { %1146 = vrot.lane.b32.xlu1 %v1141_v49, %s4284_s0  ;;  %v1482_v49 = vlaneseq }
 0xfeb   :  { %1144 = vrot.lane.b32.xlu0 %v1140_v51, %s4284_s0 }
 0xfef   :  { %1180 = vrot.lane.b32.xlu0 %v4130_v52, %s4281_s24 }
0x105c   :  { %v1147_v48 = vpop.permute.xlu1 %1146 }
0x105d   :  { %v1151_v56 = vadd.f32 %v1147_v48, %v1131_v41  ;;  %v1145_v61 = vpop.permute.xlu0 %1144 }
0x105e   :  { %v1150_v62 = vadd.f32 %v1145_v61, %v1130_v59 }
0x105f   :  { %4135 = vtanh.f32 %v1151_v56 }
0x1060   :  { %4137 = vtanh.f32 %v1150_v62 }
0x1061   :  { %v1181_v2 = vpop.permute.xlu0 %1180 }
0x1062   :  { %v1186_v3 = vmul.f32 %v4134_v63, %v1181_v2 }
0x1064   :  { %4139 = vtanh.f32 %v1186_v3 }
0x1065   :  { %4141 = vtanh.f32 %v4673_v37  ;;  %v3860_v37 = vpack.c.bf16 %v1209_v31, %v1207_v29 }
0x1066   :  { %4143 = vpow2.f32 %v3415_v20 }
0x1069   :  { %v4136_v4 = vpop.eup %4135 }
0x106a   :  { %1158 = vrot.lane.b32.xlu0 %v4136_v4, %s4285_s21  ;;  %v4138_v11 = vpop.eup %4137 }
0x106b   :  { %1156 = vrot.lane.b32.xlu1 %v4138_v11, %s4285_s21  ;;  %v4787_v11 = vpack.c.bf16 %v1497_v9, %v1496_v7 }
0x106d   :  { %3882 = vmatpush3.bf16.msra.mxu0 %v4787_v11 }
0x106e   :  { %v4140_v12 = vpop.eup %4139  ;;  %3883 = vmatprep.subr.bf16.mxu0 %v4288_v60 }
0x106f   :  { %1192 = vrot.lane.b32.xlu1 %v4140_v12, %s4282_s27  ;;  %v4142_v18 = vpop.eup %4141  ;;  %v1499_v12 = vld [vmem:[%s5147_s11 + $0x18] sm:$0xff] }
0x1070   :  { %v4144_v5 = vpop.eup %4143  ;;  %v4793_v13 = vpack.c.bf16 %v1499_v12, %v1498_v10 }
0x1071   :  { %v1171_v8 = vadd.f32 1.0, %v4144_v5 }
0x1072   :  { %3885 = vmatpush3.bf16.msra.mxu0 %v4793_v13 }
0x1073   :  { %4145 = vrcp.f32 %v1171_v8  ;;  %3892 = vmatprep.subr.bf16.mxu0 %v4288_v60 }
0x107d   :  { %v4146_v33 = vpop.eup %4145 }
0x10dc   :  { %v1159_v16 = vpop.permute.xlu0 %1158 }
0x10dd   :  { %v1163_v17 = vmul.f32 %v4126_v47, %v1159_v16  ;;  %v1157_v58 = vpop.permute.xlu1 %1156 }
0x10de   :  { %v1162_v0 = vmul.f32 %v4128_v34, %v1157_v58  ;;  %v1483_v34 = vshrl.u32 %v1482_v49, 7 }
0x10df   :  { %1218 = vrot.lane.b32.xlu1 %v1163_v17, %s4283_s6 }
0x10e0   :  { %1216 = vrot.lane.b32.xlu0 %v1162_v0, %s4283_s6  ;;  %v1488_v51 = vsub.s32 1, %v1483_v34  ;;  %v1484_v55 = vsub.s32 0, %v1483_v34 }
0x10e1   :  { %v1193_v1 = vpop.permute.xlu1 %1192 }
0x10e2   :  { %v1198_v19 = vmul.f32 %v4134_v63, %v1193_v1  ;;  %v4762_v52 = vrot.slane %v1480_v50, %v1488_v51  ;;  %v4765_v41 = vrot.slane %v1480_v50, %v1484_v55 }
0x10e3   :  { %1182 = vrot.lane.b32.xlu1 %v4142_v18, %s4281_s24 }
0x10e4   :  { %1391 = vrot.lane.b32.xlu0 %v1198_v19, %s4284_s0 }
0x1151   :  { %v1219_v22 = vpop.permute.xlu1 %1218 }
0x1152   :  { %v1217_v38 = vpop.permute.xlu0 %1216 }
0x1153   :  { %3416 = vmatmul.mubr.msk.f32.vlgmr.msra.gmra.mrb[4].mxu1 %vm79_vm0, %v1217_v38 }
0x1154   :  { %3859 = vmatpush1.bf16.msra.mxu1 %v3858_v32  ;;  %1294 = vmatprep.mubr.f32.mxu1 %v4286_v28 }
0x1155   :  { %v1183_v35 = vpop.permute.xlu1 %1182  ;;  %3861 = vmatprep.subr.bf16.mxu1 %v3860_v37 }
0x1156   :  { %v1187_v24 = vmul.f32 %v4146_v33, %v1183_v35  ;;  %v1392_v26 = vpop.permute.xlu0 %1391 }
0x1157   :  { %3417 = vmatmul.mubr.msk.f32.gmra.mrb[6].mxu1 %vm79_vm0, %v1219_v22 }
0x1158   :  { %4147 = vtanh.f32 %v1187_v24  ;;  %3863 = vmatpush1.bf16.msra.mxu1 %v3862_v27  ;;  %1372 = vmatprep.mubr.f32.mxu1 %v4286_v28 }
0x1159   :  { %3865 = vmatprep.subr.bf16.mxu1 %v3864_v42 }
0x115b   :  { %3418 = vmatmul.mubr.msk.f32.vlgmr.msra.gmra.mrb[4].mxu1 %vm1301_vm1, %v1200_v46 }
0x115c   :  { %3867 = vmatpush1.bf16.msra.mxu1 %v3866_v45  ;;  %1378 = vmatprep.mubr.f32.mxu1 %v4286_v28 }
0x115d   :  { %3868 = vmatprep.subr.bf16.mxu1 %v4288_v60 }
0x115f   :  { %3419 = vmatmul.mubr.msk.f32.gmra.mrb[6].mxu1 %vm1301_vm1, %v1201_v30 }
0x1160   :  { %1463 = vmatprep.mubr.f32.mxu1 %v4286_v28 }
0x1162   :  { %v4148_v47 = vpop.eup %4147 }
0x1163   :  { %1194 = vrot.lane.b32.xlu1 %v4148_v47, %s4282_s27  ;;  %3420 = vmatmul.mubr.msk.f32.vlgmr.msra.gmra.mrb[4].mxu1 %vm79_vm0, %v1392_v26 }
0x1164   :  { %1469 = vmatprep.mubr.f32.mxu1 %v4286_v28  ;;  %3870 = vmatpush3.bf16.msra.mxu1 %v4787_v11 }
0x1165   :  { %3871 = vmatprep.subr.bf16.mxu1 %v4288_v60 }
0x1168   :  { %3873 = vmatpush3.bf16.msra.mxu1 %v4793_v13 }
0x1169   :  { %3874 = vmatprep.subr.bf16.mxu1 %v4288_v60 }
0x11d5   :  { %v1195_v53 = vpop.permute.xlu1 %1194 }
0x11d6   :  { %v1199_v54 = vmul.f32 %v4146_v33, %v1195_v53 }
0x11d8   :  { %1393 = vrot.lane.b32.xlu1 %v1199_v54, %s4284_s0 }
0x1236   :  { %v1465_v48 = vpop.f32.mrb[4].mxu1 }
0x1237   :  { %v4768_v56 = vadd.f32 %v4765_v41, %v1465_v48  ;;  %v4770_v59 = vpop.f32.mrb[5].mxu1 }
0x1239   :  { %4149 = vtanh.f32 %v4768_v56  ;;  %v3422_v63 = vmul.f32 -1.442695, %v4768_v56 }
0x123b   :  { %4151 = vpow2.f32 %v3422_v63 }
0x1243   :  { %v4150_v61 = vpop.eup %4149 }
0x1244   :  { %1508 = vrot.lane.b32.xlu0 %v4150_v61, %s4287_s1 }
0x1245   :  { %v4152_v2 = vpop.eup %4151 }
0x1246   :  { %v1503_v3 = vadd.f32 1.0, %v4152_v2 }
0x1248   :  { %4153 = vrcp.f32 %v1503_v3 }
0x124a   :  { %v1394_v62 = vpop.permute.xlu1 %1393 }
0x124b   :  { %3421 = vmatmul.mubr.msk.f32.gmra.mrb[6].mxu1 %vm79_vm0, %v1394_v62 }
0x124c   :  { %3649 = vmatprep.mubr.msk.f32.mxu1 %vm4289_vm2, %v4286_v28 }
0x1252   :  { %v4154_v4 = vpop.eup %4153 }
0x12b6   :  { %v1509_v6 = vpop.permute.xlu0 %1508 }
0x12b7   :  { %v1511_v57 = vmul.f32 %v4154_v4, %v1509_v6 }
0x12b9   :  { %4155 = vtanh.f32 %v1511_v57  ;;  %v1605_v18 = vrot.slane %v1511_v57, 6 }
0x12c3   :  { %v4156_v14 = vpop.eup %4155 }
0x12c4   :  { %1514 = vrot.lane.b32.xlu0 %v4156_v14, %s4281_s24 }
0x131e   :  { %v4803_v15 = vpop.f32.mrb[6].mxu1 }
0x131f   :  { %v4805_v16 = vpop.f32.mrb[7].mxu1 }
0x1336   :  { %v1515_v17 = vpop.permute.xlu0 %1514 }
0x1337   :  { %v4811_v58 = vmul.f32 %v4154_v4, %v1515_v17 }
0x1339   :  { %1519 = vrot.lane.b32.xlu0 %v4811_v58, %s4285_s21 }
0x133d   :  { %1606 = vrot.lane.b32.xlu0 %v1605_v18, %s4285_s21 }
0x13ab   :  { %v1520_v0 = vpop.permute.xlu0 %1519 }
0x13ac   :  { %3650 = vmatmul.mubr.msk.f32.vlgmr.msra.gmra.mrb[8].mxu1 %vm1301_vm1, %v1520_v0 }
0x13ad   :  { %3876 = vmatpush3.bf16.msra.mxu1 %v4787_v11  ;;  %3660 = vmatprep.mubr.msk.f32.mxu1 %vm4289_vm2, %v4286_v28 }
0x13ae   :  { %3877 = vmatprep.subr.bf16.mxu1 %v4288_v60 }
0x13af   :  { %v1607_v33 = vpop.permute.xlu0 %1606 }
0x13b1   :  { %3879 = vmatpush3.bf16.msra.mxu1 %v4793_v13 }
0x13b2   :  { %3886 = vmatprep.subr.bf16.mxu1 %v4288_v60 }
0x147f   :  { %v1589_v1 = vpop.f32.mrb[8].mxu1 }
0x1480   :  { %v1594_v19 = vrot.slane %v1589_v1, 6  ;;  %v3651_v20 = vpop.f32.mrb[9].mxu1 }
0x1482   :  { %v1596_v5 = vadd.f32 %v1594_v19, %v4768_v56 }
0x1484   :  { %4157 = vtanh.f32 %v1596_v5  ;;  %v3424_v22 = vmul.f32 -1.442695, %v1596_v5 }
0x1486   :  { %4159 = vpow2.f32 %v3424_v22 }
0x148e   :  { %v4158_v8 = vpop.eup %4157 }
0x148f   :  { %1611 = vrot.lane.b32.xlu1 %v4158_v8, %s4287_s1 }
0x1490   :  { %v4160_v23 = vpop.eup %4159 }
0x1491   :  { %v1600_v25 = vadd.f32 1.0, %v4160_v23 }
0x1493   :  { %4161 = vrcp.f32 %v1600_v25 }
0x149d   :  { %v4162_v29 = vpop.eup %4161 }
0x149e   :  { %v1609_v35 = vmul.f32 %v4162_v29, %v1607_v33 }
0x1501   :  { %v1612_v31 = vpop.permute.xlu1 %1611 }
0x1502   :  { %v1614_v32 = vmul.f32 %v4162_v29, %v1612_v31 }
0x1504   :  { %1616 = vrot.lane.b32.xlu1 %v1614_v32, %s4285_s21 }
0x1576   :  { %v1617_v37 = vpop.permute.xlu1 %1616 }
0x1577   :  { %v1619_v39 = vadd.f32 %v1617_v37, %v1609_v35 }
0x1579   :  { %4163 = vtanh.f32 %v1619_v39  ;;  %v1714_v50 = vrot.slane %v1619_v39, 6 }
0x1583   :  { %v4164_v36 = vpop.eup %4163 }
0x1584   :  { %1622 = vrot.lane.b32.xlu0 %v4164_v36, %s4287_s1 }
0x15f6   :  { %v1623_v38 = vpop.permute.xlu0 %1622 }
0x15f7   :  { %v1625_v24 = vmul.f32 %v4162_v29, %v1623_v38  ;;  %v4867_v29 = vadd.f32 %v4765_v41, %v4803_v15 }
0x15f9   :  { %v1627_v40 = vrot.slane %v1625_v24, 2  ;;  %v3031_v62 = vsel %vm3030_vm3, %v4811_v58, %v1625_v24 }
0x15fb   :  { %1628 = vrot.lane.b32.xlu1 %v1627_v40, %s4285_s21 }
0x166d   :  { %v1629_v21 = vpop.permute.xlu1 %1628 }
0x166e   :  { %3661 = vmatmul.mubr.msk.f32.vlgmr.msra.gmra.mrb[10].mxu1 %vm1301_vm1, %v1629_v21 }
0x166f   :  { %3888 = vmatpush3.bf16.msra.mxu1 %v4787_v11  ;;  %3682 = vmatprep.mubr.msk.f32.mxu1 %vm4289_vm2, %v4286_v28 }
0x1670   :  { %3889 = vmatprep.subr.bf16.mxu1 %v4288_v60 }
0x1673   :  { %3891 = vmatpush3.bf16.msra.mxu1 %v4793_v13 }
0x1674   :  { %3898 = vmatprep.subr.bf16.mxu1 %v4288_v60 }
0x1741   :  { %v1698_v27 = vpop.f32.mrb[10].mxu1 }
0x1742   :  { %v1703_v42 = vrot.slane %v1698_v27, 4  ;;  %v3662_v43 = vpop.f32.mrb[11].mxu1 }
0x1744   :  { %v1705_v44 = vadd.f32 %v1703_v42, %v4768_v56 }
0x1746   :  { %4165 = vtanh.f32 %v1705_v44  ;;  %v3426_v45 = vmul.f32 -1.442695, %v1705_v44 }
0x1748   :  { %4167 = vpow2.f32 %v3426_v45 }
0x1750   :  { %v4166_v46 = vpop.eup %4165 }
0x1751   :  { %1718 = vrot.lane.b32.xlu0 %v4166_v46, %s4287_s1 }
0x1752   :  { %v4168_v30 = vpop.eup %4167 }
0x1753   :  { %v1709_v47 = vadd.f32 1.0, %v4168_v30 }
0x1755   :  { %4169 = vrcp.f32 %v1709_v47 }
0x175f   :  { %v4170_v26 = vpop.eup %4169 }
0x1760   :  { %v1716_v51 = vmul.f32 %v4170_v26, %v1714_v50 }
0x17c3   :  { %v1719_v49 = vpop.permute.xlu0 %1718 }
0x17c4   :  { %v1721_v34 = vmul.f32 %v4170_v26, %v1719_v49  ;;  %v4887_v49 = vadd.f32 %v4762_v52, %v4805_v16 }
0x17c6   :  { %1723 = vrot.lane.b32.xlu1 %v1721_v34, %s4285_s21  ;;  %v3437_v50 = vmul.f32 -1.442695, %v4887_v49 }
0x1838   :  { %v1724_v53 = vpop.permute.xlu1 %1723 }
0x1839   :  { %v1726_v54 = vadd.f32 %v1724_v53, %v1716_v51 }
0x183b   :  { %4171 = vtanh.f32 %v1726_v54  ;;  %v1821_v0 = vrot.slane %v1726_v54, 6 }
0x1845   :  { %v4172_v55 = vpop.eup %4171 }
0x1846   :  { %1729 = vrot.lane.b32.xlu0 %v4172_v55, %s4287_s1 }
0x18b8   :  { %v1730_v48 = vpop.permute.xlu0 %1729 }
0x18b9   :  { %v1732_v61 = vmul.f32 %v4170_v26, %v1730_v48 }
0x18bb   :  { %v1734_v63 = vrot.slane %v1732_v61, 4  ;;  %v3033_v2 = vsel %vm3032_vm4, %v3031_v62, %v1732_v61 }
0x18bd   :  { %1735 = vrot.lane.b32.xlu1 %v1734_v63, %s4285_s21 }
0x192f   :  { %v1736_v3 = vpop.permute.xlu1 %1735 }
0x1930   :  { %3672 = vmatmul.mubr.msk.f32.vlgmr.msra.gmra.mrb[10].mxu0 %vm1301_vm1, %v1736_v3 }
0x1931   :  { %3894 = vmatpush3.bf16.msra.mxu0 %v4787_v11  ;;  %3693 = vmatprep.mubr.msk.f32.mxu0 %vm4289_vm2, %v4286_v28 }
0x1932   :  { %3895 = vmatprep.subr.bf16.mxu0 %v4288_v60 }
0x1935   :  { %3897 = vmatpush3.bf16.msra.mxu0 %v4793_v13 }
0x1936   :  { %3904 = vmatprep.subr.bf16.mxu0 %v4288_v60 }
0x1a03   :  { %v1805_v4 = vpop.f32.mrb[10].mxu0 }
0x1a04   :  { %v1810_v6 = vrot.slane %v1805_v4, 2  ;;  %v3673_v57 = vpop.f32.mrb[11].mxu0 }
0x1a06   :  { %v1812_v7 = vadd.f32 %v1810_v6, %v4768_v56 }
0x1a08   :  { %4173 = vtanh.f32 %v1812_v7  ;;  %v3428_v10 = vmul.f32 -1.442695, %v1812_v7 }
0x1a0a   :  { %4175 = vpow2.f32 %v3428_v10 }
0x1a12   :  { %v4174_v9 = vpop.eup %4173 }
0x1a13   :  { %1825 = vrot.lane.b32.xlu0 %v4174_v9, %s4287_s1 }
0x1a14   :  { %v4176_v12 = vpop.eup %4175 }
0x1a15   :  { %v1816_v14 = vadd.f32 1.0, %v4176_v12 }
0x1a17   :  { %4177 = vrcp.f32 %v1816_v14 }
0x1a21   :  { %v4178_v17 = vpop.eup %4177 }
0x1a22   :  { %v1823_v1 = vmul.f32 %v4178_v17, %v1821_v0  ;;  %v2264_v0 = vld [vmem:[%s5148_s12] sm:$0xff] }
0x1a85   :  { %v1826_v58 = vpop.permute.xlu0 %1825 }
0x1a86   :  { %v1828_v18 = vmul.f32 %v4178_v17, %v1826_v58 }
0x1a88   :  { %1830 = vrot.lane.b32.xlu1 %v1828_v18, %s4285_s21 }
0x1afa   :  { %v1831_v19 = vpop.permute.xlu1 %1830 }
0x1afb   :  { %v1833_v20 = vadd.f32 %v1831_v19, %v1823_v1  ;;  %v2265_v1 = vld [vmem:[%s5148_s12 + $0x8] sm:$0xff] }
0x1afc   :  { %v4913_v19 = vpack.c.bf16 %v2265_v1, %v2264_v0 }
0x1afd   :  { %4179 = vtanh.f32 %v1833_v20  ;;  %v1925_v41 = vrot.slane %v1833_v20, 6  ;;  %v2266_v20 = vld [vmem:[%s5148_s12 + $0x10] sm:$0xff] }
0x1b07   :  { %v4180_v56 = vpop.eup %4179 }
0x1b08   :  { %1836 = vrot.lane.b32.xlu0 %v4180_v56, %s4287_s1  ;;  %v2267_v56 = vld [vmem:[%s5148_s12 + $0x18] sm:$0xff] }
0x1b7a   :  { %v1837_v5 = vpop.permute.xlu0 %1836 }
0x1b7b   :  { %v1839_v8 = vmul.f32 %v4178_v17, %v1837_v5 }
0x1b7d   :  { %v1841_v22 = vrot.slane %v1839_v8, 6  ;;  %v4855_v23 = vsel %vm3034_vm5, %v3033_v2, %v1839_v8  ;;  %v4923_v8 = vpack.c.bf16 %v2267_v56, %v2266_v20 }
0x1b7f   :  { %1842 = vrot.lane.b32.xlu1 %v1841_v22, %s4285_s21 }
0x1bf1   :  { %v1843_v25 = vpop.permute.xlu1 %1842 }
0x1bf2   :  { %3683 = vmatmul.mubr.msk.f32.vlgmr.msra.gmra.mrb[12].mxu1 %vm1301_vm1, %v1843_v25 }
0x1bf3   :  { %3900 = vmatpush3.bf16.msra.mxu1 %v4787_v11  ;;  %3704 = vmatprep.mubr.msk.f32.mxu1 %vm4289_vm2, %v4286_v28 }
0x1bf4   :  { %3901 = vmatprep.subr.bf16.mxu1 %v4288_v60 }
0x1bf7   :  { %3903 = vmatpush3.bf16.msra.mxu1 %v4793_v13 }
0x1bf8   :  { %3910 = vmatprep.subr.bf16.mxu1 %v4288_v60 }
0x1cc5   :  { %v1912_v31 = vpop.f32.mrb[12].mxu1 }
0x1cc6   :  { %v1916_v32 = vadd.f32 %v1912_v31, %v4867_v29  ;;  %v3684_v33 = vpop.f32.mrb[13].mxu1 }
0x1cc8   :  { %4181 = vtanh.f32 %v1916_v32  ;;  %v3430_v37 = vmul.f32 -1.442695, %v1916_v32 }
0x1cca   :  { %4183 = vpow2.f32 %v3430_v37 }
0x1cd2   :  { %v4182_v35 = vpop.eup %4181 }
0x1cd3   :  { %1929 = vrot.lane.b32.xlu0 %v4182_v35, %s4287_s1 }
0x1cd4   :  { %v4184_v39 = vpop.eup %4183 }
0x1cd5   :  { %v1920_v36 = vadd.f32 1.0, %v4184_v39 }
0x1cd7   :  { %4185 = vrcp.f32 %v1920_v36 }
0x1ce1   :  { %v4186_v38 = vpop.eup %4185 }
0x1ce2   :  { %v1927_v15 = vmul.f32 %v4186_v38, %v1925_v41 }
0x1d45   :  { %v1930_v24 = vpop.permute.xlu0 %1929 }
0x1d46   :  { %v1932_v40 = vmul.f32 %v4186_v38, %v1930_v24 }
0x1d48   :  { %1934 = vrot.lane.b32.xlu1 %v1932_v40, %s4285_s21 }
0x1dba   :  { %v1935_v21 = vpop.permute.xlu1 %1934 }
0x1dbb   :  { %v1937_v27 = vadd.f32 %v1935_v21, %v1927_v15 }
0x1dbd   :  { %4187 = vtanh.f32 %v1937_v27  ;;  %v2031_v4 = vrot.slane %v1937_v27, 6 }
0x1dc7   :  { %v4188_v42 = vpop.eup %4187 }
0x1dc8   :  { %1940 = vrot.lane.b32.xlu0 %v4188_v42, %s4287_s1 }
0x1e3a   :  { %v1941_v43 = vpop.permute.xlu0 %1940 }
0x1e3b   :  { %v4873_v44 = vmul.f32 %v4186_v38, %v1941_v43 }
0x1e3d   :  { %1945 = vrot.lane.b32.xlu1 %v4873_v44, %s4285_s21 }
0x1eaf   :  { %v1946_v46 = vpop.permute.xlu1 %1945 }
0x1eb0   :  { %3694 = vmatmul.mubr.msk.f32.vlgmr.msra.gmra.mrb[12].mxu0 %vm1301_vm1, %v1946_v46 }
0x1eb1   :  { %3906 = vmatpush3.bf16.msra.mxu0 %v4787_v11  ;;  %3715 = vmatprep.mubr.msk.f32.mxu0 %vm4289_vm2, %v4286_v28 }
0x1eb2   :  { %3907 = vmatprep.subr.bf16.mxu0 %v4288_v60 }
0x1eb5   :  { %3909 = vmatpush3.bf16.msra.mxu0 %v4793_v13 }
0x1eb6   :  { %3916 = vmatprep.subr.bf16.mxu0 %v4288_v60 }
0x1f83   :  { %v2015_v45 = vpop.f32.mrb[12].mxu0 }
0x1f84   :  { %v2020_v30 = vrot.slane %v2015_v45, 6  ;;  %v3695_v47 = vpop.f32.mrb[13].mxu0 }
0x1f86   :  { %v2022_v26 = vadd.f32 %v2020_v30, %v4867_v29 }
0x1f88   :  { %4189 = vtanh.f32 %v2022_v26  ;;  %v3432_v13 = vmul.f32 -1.442695, %v2022_v26 }
0x1f89   :  { %4191 = vtanh.f32 %v4887_v49 }
0x1f8a   :  { %4193 = vpow2.f32 %v3432_v13 }
0x1f8b   :  { %4195 = vpow2.f32 %v3437_v50 }
0x1f92   :  { %v4190_v11 = vpop.eup %4189 }
0x1f93   :  { %2035 = vrot.lane.b32.xlu0 %v4190_v11, %s4287_s1  ;;  %v4192_v34 = vpop.eup %4191 }
0x1f94   :  { %v4194_v51 = vpop.eup %4193 }
0x1f95   :  { %v2026_v53 = vadd.f32 1.0, %v4194_v51  ;;  %v4196_v54 = vpop.eup %4195 }
0x1f96   :  { %v2271_v16 = vadd.f32 1.0, %v4196_v54 }
0x1f97   :  { %2276 = vrot.lane.b32.xlu0 %v4192_v34, %s4287_s1  ;;  %4197 = vrcp.f32 %v2026_v53 }
0x1f98   :  { %4199 = vrcp.f32 %v2271_v16 }
0x1fa1   :  { %v4198_v55 = vpop.eup %4197 }
0x1fa2   :  { %v4200_v62 = vpop.eup %4199  ;;  %v2033_v6 = vmul.f32 %v4198_v55, %v2031_v4 }
0x2005   :  { %v2036_v48 = vpop.permute.xlu0 %2035 }
0x2006   :  { %v2038_v61 = vmul.f32 %v4198_v55, %v2036_v48 }
0x2008   :  { %2040 = vrot.lane.b32.xlu1 %v2038_v61, %s4285_s21 }
0x2009   :  { %v2277_v63 = vpop.permute.xlu0 %2276 }
0x200a   :  { %v2279_v2 = vmul.f32 %v4200_v62, %v2277_v63 }
0x200c   :  { %4201 = vtanh.f32 %v2279_v2  ;;  %v2374_v40 = vrot.slane %v2279_v2, 2 }
0x2016   :  { %v4202_v3 = vpop.eup %4201 }
0x2017   :  { %2282 = vrot.lane.b32.xlu0 %v4202_v3, %s4281_s24 }
0x207a   :  { %v2041_v57 = vpop.permute.xlu1 %2040 }
0x207b   :  { %v4895_v7 = vadd.f32 %v2041_v57, %v2033_v6 }
0x207d   :  { %4203 = vtanh.f32 %v4895_v7  ;;  %v2138_v34 = vrot.slane %v4895_v7, 6 }
0x2087   :  { %v4204_v9 = vpop.eup %4203 }
0x2088   :  { %2046 = vrot.lane.b32.xlu1 %v4204_v9, %s4287_s1 }
0x2089   :  { %v2283_v10 = vpop.permute.xlu0 %2282 }
0x208a   :  { %v4899_v12 = vmul.f32 %v4200_v62, %v2283_v10 }
0x208c   :  { %v2287_v14 = vrot.slane %v4899_v12, 6 }
0x208e   :  { %2288 = vrot.lane.b32.xlu0 %v2287_v14, %s4285_s21 }
0x20fa   :  { %v2047_v17 = vpop.permute.xlu1 %2046 }
0x20fb   :  { %v4903_v58 = vmul.f32 %v4198_v55, %v2047_v17 }
0x20fd   :  { %v2051_v18 = vrot.slane %v4903_v58, 2  ;;  %v3036_v2 = vsel %vm3030_vm3, %v4873_v44, %v4903_v58 }
0x20ff   :  { %2052 = vrot.lane.b32.xlu1 %v2051_v18, %s4285_s21 }
0x2100   :  { %v2289_v22 = vpop.permute.xlu0 %2288 }
0x2171   :  { %v2053_v5 = vpop.permute.xlu1 %2052 }
0x2172   :  { %3705 = vmatmul.mubr.msk.f32.vlgmr.msra.gmra.mrb[14].mxu1 %vm1301_vm1, %v2053_v5 }
0x2173   :  { %3912 = vmatpush3.bf16.msra.mxu1 %v4913_v19  ;;  %3726 = vmatprep.mubr.msk.f32.mxu1 %vm4289_vm2, %v4286_v28 }
0x2174   :  { %3913 = vmatprep.subr.bf16.mxu1 %v4288_v60 }
0x2177   :  { %3915 = vmatpush3.bf16.msra.mxu1 %v4923_v8 }
0x2178   :  { %3922 = vmatprep.subr.bf16.mxu1 %v4288_v60 }
0x217a   :  { %3727 = vmatmul.mubr.msk.f32.vlgmr.msra.gmra.mrb[16].mxu1 %vm1301_vm1, %v2289_v22 }
0x217b   :  { %3924 = vmatpush3.bf16.msra.mxu1 %v4913_v19  ;;  %3748 = vmatprep.mubr.msk.f32.mxu1 %vm4289_vm2, %v4286_v28 }
0x217c   :  { %3925 = vmatprep.subr.bf16.mxu1 %v4288_v60 }
0x217f   :  { %3927 = vmatpush3.bf16.msra.mxu1 %v4923_v8 }
0x2180   :  { %3934 = vmatprep.subr.bf16.mxu1 %v4288_v60 }
0x2245   :  { %v2122_v25 = vpop.f32.mrb[14].mxu1 }
0x2246   :  { %v2127_v31 = vrot.slane %v2122_v25, 4  ;;  %v3706_v32 = vpop.f32.mrb[15].mxu1 }
0x2248   :  { %v2129_v33 = vadd.f32 %v2127_v31, %v4867_v29 }
0x224a   :  { %4205 = vtanh.f32 %v2129_v33  ;;  %v3434_v41 = vmul.f32 -1.442695, %v2129_v33 }
0x224d   :  { %v2358_v35 = vpop.f32.mrb[16].mxu1 }
0x224e   :  { %v2363_v37 = vrot.slane %v2358_v35, 4  ;;  %v3728_v39 = vpop.f32.mrb[17].mxu1 }
0x2250   :  { %v2365_v36 = vadd.f32 %v2363_v37, %v4887_v49 }
0x2252   :  { %4207 = vtanh.f32 %v2365_v36  ;;  %v3439_v15 = vmul.f32 -1.442695, %v2365_v36 }
0x2253   :  { %4209 = vpow2.f32 %v3434_v41 }
0x2254   :  { %v4206_v38 = vpop.eup %4205  ;;  %4211 = vpow2.f32 %v3439_v15 }
0x2255   :  { %2142 = vrot.lane.b32.xlu1 %v4206_v38, %s4287_s1 }
0x225c   :  { %v4208_v24 = vpop.eup %4207 }
0x225d   :  { %2380 = vrot.lane.b32.xlu0 %v4208_v24, %s4287_s1  ;;  %v4210_v21 = vpop.eup %4209 }
0x225e   :  { %v2133_v27 = vadd.f32 1.0, %v4210_v21  ;;  %v4212_v42 = vpop.eup %4211 }
0x225f   :  { %v2369_v43 = vadd.f32 1.0, %v4212_v42 }
0x2260   :  { %4213 = vrcp.f32 %v2133_v27 }
0x2261   :  { %2375 = vrot.lane.b32.xlu0 %v2374_v40, %s4285_s21  ;;  %4215 = vrcp.f32 %v2369_v43 }
0x226a   :  { %v4214_v46 = vpop.eup %4213 }
0x226b   :  { %v4216_v47 = vpop.eup %4215  ;;  %v2140_v13 = vmul.f32 %v4214_v46, %v2138_v34 }
0x22c7   :  { %v2143_v45 = vpop.permute.xlu1 %2142 }
0x22c8   :  { %v2145_v30 = vmul.f32 %v4214_v46, %v2143_v45 }
0x22ca   :  { %2147 = vrot.lane.b32.xlu1 %v2145_v30, %s4285_s21 }
0x22cf   :  { %v2381_v26 = vpop.permute.xlu0 %2380 }
0x22d0   :  { %v2383_v11 = vmul.f32 %v4216_v47, %v2381_v26 }
0x22d2   :  { %2385 = vrot.lane.b32.xlu1 %v2383_v11, %s4285_s21 }
0x22d3   :  { %v2376_v53 = vpop.permute.xlu0 %2375 }
0x22d4   :  { %v2378_v54 = vmul.f32 %v4216_v47, %v2376_v53 }
0x233c   :  { %v2148_v50 = vpop.permute.xlu1 %2147 }
0x233d   :  { %v4945_v51 = vadd.f32 %v2148_v50, %v2140_v13 }
0x233f   :  { %4217 = vtanh.f32 %v4945_v51 }
0x2344   :  { %v2386_v16 = vpop.permute.xlu1 %2385 }
0x2345   :  { %v2388_v55 = vadd.f32 %v2386_v16, %v2378_v54 }
0x2347   :  { %4219 = vtanh.f32 %v2388_v55  ;;  %v2483_v32 = vrot.slane %v2388_v55, 2  ;;  %v5008_v55 = vadd.f32 %v4762_v52, %v4770_v59 }
0x2349   :  { %v4218_v48 = vpop.eup %4217 }
0x234a   :  { %2153 = vrot.lane.b32.xlu0 %v4218_v48, %s4287_s1 }
0x2351   :  { %v4220_v61 = vpop.eup %4219 }
0x2352   :  { %2391 = vrot.lane.b32.xlu1 %v4220_v61, %s4287_s1 }
0x23bc   :  { %v2154_v62 = vpop.permute.xlu0 %2153 }
0x23bd   :  { %v2156_v63 = vmul.f32 %v4214_v46, %v2154_v62 }
0x23bf   :  { %v2158_v3 = vrot.slane %v2156_v63, 4  ;;  %v4954_v4 = vsel %vm3032_vm4, %v3036_v2, %v2156_v63 }
0x23c1   :  { %2159 = vrot.lane.b32.xlu0 %v2158_v3, %s4285_s21 }
0x23c4   :  { %v2392_v6 = vpop.permute.xlu1 %2391 }
0x23c5   :  { %v4957_v57 = vmul.f32 %v4216_v47, %v2392_v6 }
0x23c7   :  { %v2396_v7 = vrot.slane %v4957_v57, 4 }
0x23c9   :  { %2397 = vrot.lane.b32.xlu1 %v2396_v7, %s4285_s21 }
0x2433   :  { %v2160_v9 = vpop.permute.xlu0 %2159 }
0x2434   :  { %3716 = vmatmul.mubr.msk.f32.vlgmr.msra.gmra.mrb[14].mxu0 %vm1301_vm1, %v2160_v9 }
0x2435   :  { %3918 = vmatpush3.bf16.msra.mxu0 %v4913_v19  ;;  %3737 = vmatprep.mubr.msk.f32.mxu0 %vm4289_vm2, %v4286_v28 }
0x2436   :  { %3919 = vmatprep.subr.bf16.mxu0 %v4288_v60 }
0x2439   :  { %3921 = vmatpush3.bf16.msra.mxu0 %v4923_v8 }
0x243a   :  { %3928 = vmatprep.subr.bf16.mxu0 %v4288_v60 }
0x243b   :  { %v2398_v44 = vpop.permute.xlu1 %2397 }
0x243c   :  { %3738 = vmatmul.mubr.msk.f32.vlgmr.msra.gmra.mrb[16].mxu0 %vm1301_vm1, %v2398_v44 }
0x243d   :  { %3930 = vmatpush3.bf16.msra.mxu0 %v4913_v19  ;;  %3759 = vmatprep.mubr.msk.f32.mxu0 %vm4289_vm2, %v4286_v28 }
0x243e   :  { %3931 = vmatprep.subr.bf16.mxu0 %v4288_v60 }
0x2441   :  { %3933 = vmatpush3.bf16.msra.mxu0 %v4923_v8 }
0x2442   :  { %3940 = vmatprep.subr.bf16.mxu0 %v4288_v60 }
0x2507   :  { %v4975_v10 = vpop.f32.mrb[14].mxu0 }
0x2508   :  { %v3717_v14 = vpop.f32.mrb[15].mxu0 }
0x250f   :  { %v2467_v17 = vpop.f32.mrb[16].mxu0 }
0x2510   :  { %v2472_v58 = vrot.slane %v2467_v17, 6  ;;  %v3739_v18 = vpop.f32.mrb[17].mxu0 }
0x2512   :  { %v2474_v0 = vadd.f32 %v2472_v58, %v4887_v49 }
0x2514   :  { %4221 = vtanh.f32 %v2474_v0  ;;  %v3441_v20 = vmul.f32 -1.442695, %v2474_v0 }
0x2516   :  { %4223 = vpow2.f32 %v3441_v20 }
0x251e   :  { %v4222_v1 = vpop.eup %4221 }
0x251f   :  { %2487 = vrot.lane.b32.xlu0 %v4222_v1, %s4287_s1 }
0x2520   :  { %v4224_v56 = vpop.eup %4223 }
0x2521   :  { %v2478_v5 = vadd.f32 1.0, %v4224_v56 }
0x2523   :  { %4225 = vrcp.f32 %v2478_v5 }
0x252d   :  { %v4226_v22 = vpop.eup %4225 }
0x252e   :  { %v2485_v33 = vmul.f32 %v4226_v22, %v2483_v32 }
0x2591   :  { %v2488_v25 = vpop.permute.xlu0 %2487 }
0x2592   :  { %v2490_v31 = vmul.f32 %v4226_v22, %v2488_v25 }
0x2594   :  { %2492 = vrot.lane.b32.xlu1 %v2490_v31, %s4285_s21 }
0x2606   :  { %v2493_v35 = vpop.permute.xlu1 %2492 }
0x2607   :  { %v2495_v37 = vadd.f32 %v2493_v35, %v2485_v33 }
0x2609   :  { %4227 = vtanh.f32 %v2495_v37  ;;  %v2587_v26 = vrot.slane %v2495_v37, 2 }
0x2613   :  { %v4228_v39 = vpop.eup %4227 }
0x2614   :  { %2498 = vrot.lane.b32.xlu0 %v4228_v39, %s4287_s1 }
0x2686   :  { %v2499_v36 = vpop.permute.xlu0 %2498 }
0x2687   :  { %v4981_v38 = vmul.f32 %v4226_v22, %v2499_v36 }
0x2689   :  { %v2503_v24 = vrot.slane %v4981_v38, 2 }
0x268b   :  { %2504 = vrot.lane.b32.xlu1 %v2503_v24, %s4285_s21 }
0x26fd   :  { %v2505_v40 = vpop.permute.xlu1 %2504 }
0x26fe   :  { %3749 = vmatmul.mubr.msk.f32.vlgmr.msra.gmra.mrb[18].mxu1 %vm1301_vm1, %v2505_v40 }
0x26ff   :  { %3936 = vmatpush3.bf16.msra.mxu1 %v4913_v19  ;;  %3770 = vmatprep.mubr.msk.f32.mxu1 %vm4289_vm2, %v4286_v28 }
0x2700   :  { %3937 = vmatprep.subr.bf16.mxu1 %v4288_v60 }
0x2703   :  { %3939 = vmatpush3.bf16.msra.mxu1 %v4923_v8 }
0x2704   :  { %3946 = vmatprep.subr.bf16.mxu1 %v4288_v60 }
0x27d1   :  { %v2574_v41 = vpop.f32.mrb[18].mxu1 }
0x27d2   :  { %v2578_v15 = vadd.f32 %v2574_v41, %v4887_v49  ;;  %v3750_v21 = vpop.f32.mrb[19].mxu1 }
0x27d4   :  { %4229 = vtanh.f32 %v2578_v15  ;;  %v3443_v42 = vmul.f32 -1.442695, %v2578_v15 }
0x27d6   :  { %4231 = vpow2.f32 %v3443_v42 }
0x27de   :  { %v4230_v27 = vpop.eup %4229 }
0x27df   :  { %2591 = vrot.lane.b32.xlu0 %v4230_v27, %s4287_s1 }
0x27e0   :  { %v4232_v43 = vpop.eup %4231 }
0x27e1   :  { %v2582_v46 = vadd.f32 1.0, %v4232_v43 }
0x27e3   :  { %4233 = vrcp.f32 %v2582_v46 }
0x27ed   :  { %v4234_v45 = vpop.eup %4233 }
0x27ee   :  { %v2589_v11 = vmul.f32 %v4234_v45, %v2587_v26 }
0x2851   :  { %v2592_v30 = vpop.permute.xlu0 %2591 }
0x2852   :  { %v2594_v47 = vmul.f32 %v4234_v45, %v2592_v30 }
0x2854   :  { %2596 = vrot.lane.b32.xlu1 %v2594_v47, %s4285_s21 }
0x28c6   :  { %v2597_v34 = vpop.permute.xlu1 %2596 }
0x28c7   :  { %v2599_v13 = vadd.f32 %v2597_v34, %v2589_v11 }
0x28c9   :  { %4235 = vtanh.f32 %v2599_v13  ;;  %v2693_v52 = vrot.slane %v2599_v13, 2 }
0x28d3   :  { %v4236_v49 = vpop.eup %4235 }
0x28d4   :  { %2602 = vrot.lane.b32.xlu0 %v4236_v49, %s4287_s1 }
0x2946   :  { %v2603_v50 = vpop.permute.xlu0 %2602 }
0x2947   :  { %v4996_v53 = vmul.f32 %v4234_v45, %v2603_v50 }
0x2949   :  { %2607 = vrot.lane.b32.xlu1 %v4996_v53, %s4285_s21 }
0x29bb   :  { %v2608_v54 = vpop.permute.xlu1 %2607 }
0x29bc   :  { %3760 = vmatmul.mubr.msk.f32.vlgmr.msra.gmra.mrb[18].mxu0 %vm1301_vm1, %v2608_v54 }
0x29bd   :  { %3942 = vmatpush3.bf16.msra.mxu0 %v4913_v19  ;;  %3781 = vmatprep.mubr.msk.f32.mxu0 %vm4289_vm2, %v4286_v28 }
0x29be   :  { %3943 = vmatprep.subr.bf16.mxu0 %v4288_v60 }
0x29c1   :  { %3945 = vmatpush3.bf16.msra.mxu0 %v4923_v8 }
0x2a8f   :  { %v2677_v16 = vpop.f32.mrb[18].mxu0 }
0x2a90   :  { %v2682_v48 = vrot.slane %v2677_v16, 2  ;;  %v3761_v61 = vpop.f32.mrb[19].mxu0 }
0x2a91   :  { %v2234_v61 = vrot.slane %v4975_v10, 2 }
0x2a92   :  { %v2684_v62 = vadd.f32 %v2682_v48, %v5008_v55 }
0x2a94   :  { %4237 = vtanh.f32 %v2684_v62  ;;  %v3445_v2 = vmul.f32 -1.442695, %v2684_v62  ;;  %v2236_v62 = vadd.f32 %v2234_v61, %v4867_v29 }
0x2a96   :  { %4239 = vpow2.f32 %v3445_v2 }
0x2a9e   :  { %v4238_v63 = vpop.eup %4237 }
0x2a9f   :  { %2697 = vrot.lane.b32.xlu0 %v4238_v63, %s4287_s1 }
0x2aa0   :  { %v4240_v3 = vpop.eup %4239 }
0x2aa1   :  { %v2688_v6 = vadd.f32 1.0, %v4240_v3 }
0x2aa3   :  { %4241 = vrcp.f32 %v2688_v6 }
0x2aad   :  { %v4242_v7 = vpop.eup %4241 }
0x2aae   :  { %v2695_v59 = vmul.f32 %v4242_v7, %v2693_v52 }
0x2b11   :  { %v2698_v9 = vpop.permute.xlu0 %2697 }
0x2b12   :  { %v2700_v44 = vmul.f32 %v4242_v7, %v2698_v9 }
0x2b14   :  { %2702 = vrot.lane.b32.xlu1 %v2700_v44, %s4285_s21 }
0x2b86   :  { %v2703_v14 = vpop.permute.xlu1 %2702 }
0x2b87   :  { %v2705_v17 = vadd.f32 %v2703_v14, %v2695_v59  ;;  %v2245_v14 = vrot.slane %v4945_v51, 6 }
0x2b89   :  { %4243 = vtanh.f32 %v2705_v17 }
0x2b93   :  { %v4244_v58 = vpop.eup %4243 }
0x2b94   :  { %2708 = vrot.lane.b32.xlu0 %v4244_v58, %s4287_s1 }
0x2c06   :  { %v2709_v18 = vpop.permute.xlu0 %2708 }
0x2c07   :  { %v5014_v0 = vmul.f32 %v4242_v7, %v2709_v18  ;;  %v3436_v7 = vmul.f32 -1.442695, %v2236_v62 }
0x2c09   :  { %v2713_v1 = vrot.slane %v5014_v0, 6 }
0x2c0b   :  { %2714 = vrot.lane.b32.xlu1 %v2713_v1, %s4285_s21  ;;  %v3042_v1 = vsel %vm3030_vm3, %v4996_v53, %v4981_v38 }
0x2c7d   :  { %v2715_v20 = vpop.permute.xlu1 %2714 }
0x2c7e   :  { %3771 = vmatmul.mubr.msk.f32.vlgmr.msra.gmra.mrb[20].mxu1 %vm1301_vm1, %v2715_v20 }
0x2c7f   :  { %3948 = vmatpush3.bf16.msra.mxu1 %v4913_v19  ;;  %3792 = vmatprep.mubr.msk.f32.mxu1 %vm4289_vm2, %v4286_v28 }
0x2c80   :  { %3949 = vmatprep.subr.bf16.mxu1 %v4288_v60  ;;  %v2800_v60 = vrot.slane %v2705_v17, 2 }
0x2c83   :  { %3951 = vmatpush3.bf16.msra.mxu1 %v4923_v8 }
0x2d51   :  { %v2784_v56 = vpop.f32.mrb[20].mxu1 }
0x2d52   :  { %v2789_v5 = vrot.slane %v2784_v56, 4  ;;  %v3772_v22 = vpop.f32.mrb[21].mxu1  ;;  %v3043_v56 = vsel %vm3032_vm4, %v3042_v1, %v4957_v57  ;;  %v3282_v1 = vld [vmem:[%s5152_s18 + $0x18] sm:$0xff] }
0x2d54   :  { %v2791_v25 = vadd.f32 %v2789_v5, %v5008_v55  ;;  %v3044_v5 = vsel %vm3034_vm5, %v3043_v56, %v4899_v12 }
0x2d56   :  { %4245 = vtanh.f32 %v2791_v25  ;;  %v3447_v32 = vmul.f32 -1.442695, %v2791_v25 }
0x2d58   :  { %4247 = vpow2.f32 %v3447_v32 }
0x2d60   :  { %v4246_v31 = vpop.eup %4245 }
0x2d61   :  { %2804 = vrot.lane.b32.xlu0 %v4246_v31, %s4287_s1 }
0x2d62   :  { %v4248_v33 = vpop.eup %4247 }
0x2d63   :  { %v2795_v19 = vadd.f32 1.0, %v4248_v33 }
0x2d65   :  { %4249 = vrcp.f32 %v2795_v19 }
0x2d6f   :  { %v4250_v35 = vpop.eup %4249 }
0x2d70   :  { %v2802_v8 = vmul.f32 %v4250_v35, %v2800_v60 }
0x2dd3   :  { %v2805_v28 = vpop.permute.xlu0 %2804 }
0x2dd4   :  { %v2807_v37 = vmul.f32 %v4250_v35, %v2805_v28 }
0x2dd6   :  { %2809 = vrot.lane.b32.xlu1 %v2807_v37, %s4285_s21 }
0x2e48   :  { %v2810_v39 = vpop.permute.xlu1 %2809 }
0x2e49   :  { %v2812_v36 = vadd.f32 %v2810_v39, %v2802_v8  ;;  %v3050_v39 = vld [vmem:[%s5149_s14 + $0x8] sm:$0xff] }
0x2e4b   :  { %4251 = vtanh.f32 %v2812_v36  ;;  %v2907_v49 = vrot.slane %v2812_v36, 2  ;;  %v3051_v36 = vld [vmem:[%s5149_s14 + $0x10] sm:$0xff] }
0x2e55   :  { %v4252_v24 = vpop.eup %4251 }
0x2e56   :  { %2815 = vrot.lane.b32.xlu0 %v4252_v24, %s4287_s1 }
0x2ec8   :  { %v2816_v40 = vpop.permute.xlu0 %2815 }
0x2ec9   :  { %v5028_v41 = vmul.f32 %v4250_v35, %v2816_v40  ;;  %v3052_v40 = vld [vmem:[%s5149_s14 + $0x18] sm:$0xff] }
0x2ecb   :  { %v2820_v15 = vrot.slane %v5028_v41, 4 }
0x2ecd   :  { %2821 = vrot.lane.b32.xlu1 %v2820_v15, %s4285_s21 }
0x2f3f   :  { %v2822_v21 = vpop.permute.xlu1 %2821 }
0x2f40   :  { %3782 = vmatmul.mubr.msk.f32.vlgmr.msra.gmra.mrb[20].mxu0 %vm1301_vm1, %v2822_v21  ;;  %v3956_v21 = vpack.c.bf16 %v3052_v40, %v3051_v36 }
0x3013   :  { %v2891_v27 = vpop.f32.mrb[20].mxu0 }
0x3014   :  { %v2896_v42 = vrot.slane %v2891_v27, 6  ;;  %v3783_v43 = vpop.f32.mrb[21].mxu0  ;;  %v3045_v27 = vld [vmem:[%s5150_s13] sm:$0xff] }
0x3016   :  { %v2898_v46 = vadd.f32 %v2896_v42, %v5008_v55  ;;  %v3046_v42 = vld [vmem:[%s5150_s13 + $0x8] sm:$0xff] }
0x3017   :  { %v3960_v43 = vpack.c.bf16 %v3046_v42, %v3045_v27 }
0x3018   :  { %4253 = vtanh.f32 %v2898_v46  ;;  %v3449_v30 = vmul.f32 -1.442695, %v2898_v46 }
0x301a   :  { %4255 = vpow2.f32 %v3449_v30 }
0x3022   :  { %v4254_v45 = vpop.eup %4253 }
0x3023   :  { %2911 = vrot.lane.b32.xlu0 %v4254_v45, %s4287_s1 }
0x3024   :  { %v4256_v47 = vpop.eup %4255 }
0x3025   :  { %v2902_v26 = vadd.f32 1.0, %v4256_v47 }
0x3027   :  { %4257 = vrcp.f32 %v2902_v26 }
0x3031   :  { %v4258_v11 = vpop.eup %4257 }
0x3032   :  { %v2909_v50 = vmul.f32 %v4258_v11, %v2907_v49 }
0x3095   :  { %v2912_v34 = vpop.permute.xlu0 %2911 }
0x3096   :  { %v2914_v13 = vmul.f32 %v4258_v11, %v2912_v34  ;;  %v3048_v34 = vld [vmem:[%s5150_s13 + $0x18] sm:$0xff] }
0x3098   :  { %2916 = vrot.lane.b32.xlu1 %v2914_v13, %s4285_s21 }
0x310a   :  { %v2917_v54 = vpop.permute.xlu1 %2916 }
0x310b   :  { %v2919_v16 = vadd.f32 %v2917_v54, %v2909_v50 }
0x310d   :  { %4259 = vtanh.f32 %v2919_v16  ;;  %v3011_v28 = vrot.slane %v2919_v16, 2 }
0x310e   :  { %4261 = vtanh.f32 %v2236_v62 }
0x310f   :  { %4263 = vpow2.f32 %v3436_v7 }
0x3117   :  { %v4260_v48 = vpop.eup %4259 }
0x3118   :  { %2922 = vrot.lane.b32.xlu0 %v4260_v48, %s4287_s1  ;;  %v4262_v6 = vpop.eup %4261 }
0x3119   :  { %v4264_v9 = vpop.eup %4263 }
0x311a   :  { %v2240_v44 = vadd.f32 1.0, %v4264_v9 }
0x311c   :  { %4265 = vrcp.f32 %v2240_v44 }
0x3126   :  { %v4266_v29 = vpop.eup %4265 }
0x3127   :  { %v2247_v17 = vmul.f32 %v4266_v29, %v2245_v14  ;;  %v3279_v14 = vld [vmem:[%s5152_s18] sm:$0xff] }
0x318a   :  { %v2923_v63 = vpop.permute.xlu0 %2922 }
0x318b   :  { %v5039_v2 = vmul.f32 %v4258_v11, %v2923_v63  ;;  %v3047_v11 = vld [vmem:[%s5150_s13 + $0x10] sm:$0xff] }
0x318c   :  { %v3964_v49 = vpack.c.bf16 %v3048_v34, %v3047_v11 }
0x318d   :  { %v2927_v3 = vrot.slane %v5039_v2, 2 }
0x318f   :  { %2928 = vrot.lane.b32.xlu1 %v2927_v3, %s4285_s21 }
0x3193   :  { %2249 = vrot.lane.b32.xlu1 %v4262_v6, %s4287_s1 }
0x3201   :  { %v2929_v52 = vpop.permute.xlu1 %2928 }
0x3202   :  { %3793 = vmatmul.mubr.msk.f32.vlgmr.msra.gmra.mrb[22].mxu1 %vm1301_vm1, %v2929_v52 }
0x3205   :  { %v2250_v10 = vpop.permute.xlu1 %2249 }
0x3206   :  { %v2252_v59 = vmul.f32 %v4266_v29, %v2250_v10 }
0x3208   :  { %2254 = vrot.lane.b32.xlu1 %v2252_v59, %s4285_s21 }
0x327a   :  { %v2255_v58 = vpop.permute.xlu1 %2254 }
0x327b   :  { %v2257_v18 = vadd.f32 %v2255_v58, %v2247_v17  ;;  %v3280_v17 = vld [vmem:[%s5152_s18 + $0x8] sm:$0xff] }
0x327c   :  { %v3968_v58 = vpack.c.bf16 %v3280_v17, %v3279_v14 }
0x327d   :  { %4267 = vtanh.f32 %v2257_v18  ;;  %v3281_v18 = vld [vmem:[%s5152_s18 + $0x10] sm:$0xff] }
0x327e   :  { %3969 = vmatprep.subr.bf16.mxu1 %v3968_v58 }
0x327f   :  { %3971 = vmatpush3.bf16.msra.mxu1 %v3968_v58 }
0x3287   :  { %v4268_v20 = vpop.eup %4267 }
0x3288   :  { %2260 = vrot.lane.b32.xlu1 %v4268_v20, %s4287_s1  ;;  %v3972_v20 = vpack.c.bf16 %v3282_v1, %v3281_v18 }
0x328a   :  { %3973 = vmatprep.subr.bf16.mxu1 %v3972_v20 }
0x328b   :  { %3975 = vmatpush3.bf16.msra.mxu1 %v3972_v20 }
0x328c   :  { %3057 = vrot.lane.b32.xlu1 %v3044_v5, %s4285_s21 }
0x32d5   :  { %v2998_v51 = vpop.f32.mrb[22].mxu1 }
0x32d6   :  { %v3002_v22 = vadd.f32 %v2998_v51, %v5008_v55  ;;  %v3794_v25 = vpop.f32.mrb[23].mxu1 }
0x32d8   :  { %4269 = vtanh.f32 %v3002_v22  ;;  %v3451_v57 = vmul.f32 -1.442695, %v3002_v22 }
0x32da   :  { %4271 = vpow2.f32 %v3451_v57  ;;  %v3458_v57 = vld [vmem:[%s5154_s17] ss:$0 sm:$0xff] }
0x32e2   :  { %v4270_v31 = vpop.eup %4269 }
0x32e3   :  { %3015 = vrot.lane.b32.xlu0 %v4270_v31, %s4287_s1 }
0x32e4   :  { %v4272_v12 = vpop.eup %4271 }
0x32e5   :  { %v3006_v33 = vadd.f32 1.0, %v4272_v12 }
0x32e7   :  { %4273 = vrcp.f32 %v3006_v33 }
0x32f1   :  { %v4274_v19 = vpop.eup %4273 }
0x32f2   :  { %v3013_v37 = vmul.f32 %v4274_v19, %v3011_v28 }
0x32fa   :  { %v2261_v38 = vpop.permute.xlu1 %2260 }
0x32fb   :  { %v2263_v53 = vmul.f32 %v4266_v29, %v2261_v38 }
0x32fd   :  { %v3038_v32 = vsel %vm3034_vm5, %v4954_v4, %v2263_v53  ;;  %v3049_v4 = vld [vmem:[%s5149_s14] sm:$0xff] }
0x32fe   :  { %3142 = vrot.lane.b32.xlu1 %v3038_v32, %s4285_s21  ;;  %v3952_v24 = vpack.c.bf16 %v3050_v39, %v3049_v4  ;;  %v3058_v50 = vpop.permute.xlu1 %3057  ;;  %v3457_v53 = vld [vmem:[%s5153_s16] ss:$0 sm:$0xff] }
0x3300   :  { %3953 = vmatprep.subr.bf16.mxu0 %v3952_v24 }
0x3301   :  { %3955 = vmatpush3.bf16.msra.mxu0 %v3952_v24 }
0x3302   :  { %3957 = vmatprep.subr.bf16.mxu0 %v3956_v21 }
0x3305   :  { %3959 = vmatpush3.bf16.msra.mxu0 %v3956_v21 }
0x3306   :  { %3961 = vmatprep.subr.bf16.mxu0 %v3960_v43 }
0x3355   :  { %v3016_v35 = vpop.permute.xlu0 %3015 }
0x3356   :  { %v3018_v55 = vmul.f32 %v4274_v19, %v3016_v35 }
0x3358   :  { %3020 = vrot.lane.b32.xlu0 %v3018_v55, %s4285_s21 }
0x33ca   :  { %v3021_v60 = vpop.permute.xlu0 %3020 }
0x33cb   :  { %v3023_v8 = vadd.f32 %v3021_v60, %v3013_v37 }
0x33cd   :  { %4275 = vtanh.f32 %v3023_v8  ;;  %v3459_v8 = vld [vmem:[%s5155_s19] ss:$0 sm:$0xff] }
0x33d7   :  { %v4276_v15 = vpop.eup %4275 }
0x33d8   :  { %3026 = vrot.lane.b32.xlu0 %v4276_v15, %s4287_s1 }
0x344a   :  { %v3027_v46 = vpop.permute.xlu0 %3026 }
0x344b   :  { %v3029_v45 = vmul.f32 %v4274_v19, %v3027_v46 }
0x344d   :  { %v3039_v30 = vsel %vm3030_vm3, %v3029_v45, %v5039_v2 }
0x344e   :  { %v3040_v47 = vsel %vm3032_vm4, %v3039_v30, %v5028_v41  ;;  %v3456_v41 = vld [vmem:[%s5151_s15] ss:$0 sm:$0xff] }
0x344f   :  { %v3041_v26 = vsel %vm3034_vm5, %v3040_v47, %v5014_v0 }
0x3450   :  { %3055 = vrot.lane.b32.xlu0 %v3041_v26, %s4285_s21 }
0x3454   :  { %3140 = vrot.lane.b32.xlu0 %v4855_v23, %s4285_s21  ;;  %v3143_v23 = vpop.permute.xlu1 %3142 }
0x34c2   :  { %v3056_v13 = vpop.permute.xlu0 %3055 }
0x34c3   :  { %3803 = vmatprep.mubr.msk.f32.mxu0 %vm1301_vm1, %v3056_v13 }
0x34c4   :  { %3804 = vmatmul.mubr.msk.f32.vlgmr.msra.gmra.mrb[22].mxu0 %vm1301_vm1, %v3058_v50 }
0x34c5   :  { %3963 = vmatpush3.bf16.msra.mxu0 %v3960_v43 }
0x34c6   :  { %v3141_v0 = vpop.permute.xlu0 %3140  ;;  %3965 = vmatprep.subr.bf16.mxu0 %v3964_v49 }
0x34c7   :  { %3814 = vmatprep.mubr.msk.f32.mxu0 %vm1301_vm1, %v3141_v0 }
0x34c9   :  { %3967 = vmatpush3.bf16.msra.mxu0 %v3964_v49 }
0x34cc   :  { %3815 = vmatmul.mubr.msk.f32.vlgmr.msra.gmra.mrb[22].mxu0 %vm1301_vm1, %v3143_v23 }
0x359f   :  { %v3816_v54 = vpop.f32.mrb[22].mxu0 }
0x35a0   :  { %v3231_v16 = vadd.f32 %v3816_v54, %v3456_v41  ;;  %v3214_v48 = vpop.f32.mrb[23].mxu0 }
0x35a1   :  { %v3230_v61 = vadd.f32 %v3456_v41, %v3214_v48 }
0x35a2   :  { %v3237_v62 = vsel %vm1301_vm1, %v3231_v16, 0.0 }
0x35a3   :  { %3238 = vadd.xlane.f32.xlu1 %v3237_v62  ;;  %v3234_v63 = vsel %vm1301_vm1, %v3230_v61, 0.0 }
0x35a4   :  { %3235 = vadd.xlane.f32.xlu0 %v3234_v63 }
0x3630   :  { %v3239_v2 = vpop.xlane.xlu1 %3238 }
0x3631   :  { %v3242_v3 = vmul.f32 0.03125, %v3239_v2  ;;  %v3236_v6 = vpop.xlane.xlu0 %3235 }
0x3632   :  { %v3241_v7 = vmul.f32 0.03125, %v3236_v6 }
0x3633   :  { %v3244_v9 = vsub.f32 %v3231_v16, %v3242_v3 }
0x3634   :  { %v3243_v44 = vsub.f32 %v3230_v61, %v3241_v7 }
0x3635   :  { %v3246_v10 = vmul.f32 %v3244_v9, %v3244_v9 }
0x3636   :  { %v3245_v52 = vmul.f32 %v3243_v44, %v3243_v44 }
0x3637   :  { %v3250_v59 = vsel %vm1301_vm1, %v3246_v10, 0.0 }
0x3638   :  { %v3247_v29 = vsel %vm1301_vm1, %v3245_v52, 0.0 }
0x3639   :  { %3248 = vadd.xlane.f32.xlu0 %v3247_v29 }
0x363d   :  { %3251 = vadd.xlane.f32.xlu0 %v3250_v59 }
0x36c6   :  { %v3249_v56 = vpop.xlane.xlu0 %3248 }
0x36c7   :  { %v3253_v5 = vmul.f32 0.03125, %v3249_v56 }
0x36c9   :  { %v3255_v51 = vadd.f32 1e-05, %v3253_v5 }
0x36ca   :  { %v3252_v22 = vpop.xlane.xlu0 %3251 }
0x36cb   :  { %4277 = vrsqrt.f32 %v3255_v51  ;;  %v3254_v25 = vmul.f32 0.03125, %v3252_v22 }
0x36cd   :  { %v3256_v31 = vadd.f32 1e-05, %v3254_v25 }
0x36cf   :  { %4279 = vrsqrt.f32 %v3256_v31 }
0x36d5   :  { %v4278_v38 = vpop.eup %4277 }
0x36d6   :  { %v3259_v32 = vmul.f32 %v4278_v38, %v3243_v44 }
0x36d8   :  { %v3267_v12 = vmul.f32 %v3457_v53, %v3259_v32 }
0x36d9   :  { %v4280_v33 = vpop.eup %4279 }
0x36da   :  { %v3260_v19 = vmul.f32 %v4280_v33, %v3244_v9  ;;  %v3275_v35 = vadd.f32 %v3458_v57, %v3267_v12 }
0x36dc   :  { %v3268_v55 = vmul.f32 %v3457_v53, %v3260_v19  ;;  %v3277_v28 = vmax.f32 %v3275_v35, 0.0 }
0x36de   :  { %v3276_v37 = vadd.f32 %v3458_v57, %v3268_v55  ;;  %3825 = vmatprep.mubr.msk.f32.mxu1 %vm1301_vm1, %v3277_v28 }
0x36e0   :  { %v3278_v60 = vmax.f32 %v3276_v37, 0.0 }
0x36e2   :  { %3826 = vmatmul.mubr.msk.f32.vlgmr.msra.gmra.mrb[24].mxu1 %vm1301_vm1, %v3278_v60 }
0x37b5   :  { %v3827_v4 = vpop.f32.mrb[24].mxu1 }
0x37b6   :  { %v3368_v39 = vadd.f32 %v3827_v4, %v3459_v8  ;;  %v3362_v36 = vpop.f32.mrb[25].mxu1 }
0x37b7   :  { %v3363_v24 = vadd.f32 %v3459_v8, %v3362_v36 }
0x37b8   :  { %3372 = vst [vmem:[%s5156_s20 + $0x8] sm:$0xff] %v3368_v39 }
0x37b9   :  { %3371 = vst [vmem:[%s5156_s20] sm:$0xff] %v3363_v24 }

</bundles_post_ra>
